<compile_context>
chip_gen: v6e
topology: v6e:2x2x1
jax: 0.10.0
libtpu: 0.0.40
codegen_flags: <defaults>
</compile_context>

<pallas_src>
import functools
import math

import numpy as np
import jax
import jax.numpy as jnp
from jax.experimental import pallas as pl
from jax.experimental.pallas import tpu as pltpu


# ----------------------------------------------------------------------------
# Glue: dense normalized supports (replicates DiffConv.compute_support_index)
# TODO(synk): sparse scatter-add edge normalization stays plain-JAX glue; only
# the dense propagation + fused projection run inside the Pallas kernel.
# ----------------------------------------------------------------------------
def dense_supports(edge_index, edge_weight, num_nodes):
    src = edge_index[0]
    tgt = edge_index[1]
    if edge_weight is None:
        edge_weight = jnp.ones(src.shape[0], jnp.float32)
    edge_weight = edge_weight.astype(jnp.float32)

    # forward support: normalize by in-degree at target node
    deg_f = jnp.zeros((num_nodes,), jnp.float32).at[tgt].add(edge_weight)
    inv_f = jnp.where(deg_f > 0, 1.0 / deg_f, 0.0)
    w_f = inv_f[tgt] * edge_weight
    p_fwd = jnp.zeros((num_nodes, num_nodes), jnp.float32).at[tgt, src].add(w_f)

    # backward support: swap src/tgt, normalize by degree at original source
    deg_b = jnp.zeros((num_nodes,), jnp.float32).at[src].add(edge_weight)
    inv_b = jnp.where(deg_b > 0, 1.0 / deg_b, 0.0)
    w_b = inv_b[src] * edge_weight
    p_bwd = jnp.zeros((num_nodes, num_nodes), jnp.float32).at[src, tgt].add(w_b)
    return p_fwd, p_bwd


def _stacked_powers(p, k):
    """[P, P^2, ..., P^k] computed in f32 (one-time, shared by all layers)."""
    ps = []
    cur = p
    for _ in range(k):
        ps.append(cur)
        cur = jnp.dot(cur, p)
    return ps


# ----------------------------------------------------------------------------
# Pallas kernel: the FULL MultiGraphConv stack (all layers), all batches.
#   p_ref : [n_sup, N_pad, N_pad]  bf16   stacked support powers (fwd then bwd)
#   x_ref : [N_pad, C0_pp]         bf16   batch-packed input (x[b,n,f] -> col b*Cin+f)
#   per layer l: w_ref [nf, Cin_pp_l, Cout_pp] bf16 (block-diag over batch),
#                b_ref [1, Cout_pp] f32 (batch-tiled bias)
#   o_ref : [N_pad, Cout_pp]       bf16   packed output of the last layer
# ----------------------------------------------------------------------------
def _multi_graph_conv_kernel(p_ref, x_ref, *rest, n_layers, n_sup,
                             root_weight, activation):
    wb_refs = rest[:2 * n_layers]
    o_ref = rest[2 * n_layers]

    x = x_ref[...]                                        # packed bf16 activation
    for l in range(n_layers):
        w_ref = wb_refs[2 * l]
        b_ref = wb_refs[2 * l + 1]

        col = 0
        if root_weight:
            # root term seeds the f32 accumulator (no zeros materialization)
            acc = jnp.dot(x, w_ref[0], preferred_element_type=jnp.float32)
            col = 1
        else:
            acc = jnp.zeros((x.shape[0], w_ref.shape[-1]), jnp.float32)

        for c in range(n_sup):
            # hop from a precomputed power: independent of the other hops
            h = jnp.dot(p_ref[c], x, preferred_element_type=jnp.float32)
            acc = acc + jnp.dot(h.astype(jnp.bfloat16), w_ref[col],
                                preferred_element_type=jnp.float32)
            col += 1

        y = acc + b_ref[...]                              # bias once, epilogue
        if activation == "relu":
            y = jnp.maximum(y, 0.0)
        x = y.astype(jnp.bfloat16)                        # stays packed / bf16

    o_ref[...] = x                                        # full-lane dense store


# ----------------------------------------------------------------------------
# Wrapper helpers
# ----------------------------------------------------------------------------
def _round_up(x, m):
    return (x + m - 1) // m * m


def _padded_bytes_estimate(shapes_dtypes):
    """Conservative VMEM byte estimate: pad last two dims to hardware tiles."""
    total = 0
    for shape, dtype in shapes_dtypes:
        itemsize = jnp.dtype(dtype).itemsize
        s = list(shape) if len(shape) >= 2 else [1, *shape]
        s[-1] = _round_up(s[-1], 128)
        s[-2] = _round_up(s[-2], max(8, 32 // itemsize))
        n = 1
        for d in s:
            n *= d
        total += n * itemsize
    return total


def _vmem_capacity_bytes():
    try:
        return int(pltpu.get_tpu_info().vmem_capacity_bytes)
    except Exception:
        return 64 * 2 ** 20   # conservative fallback (v7x per-TensorCore)


def n_filters(k, root_weight, add_backward):
    nf = 2 * k if add_backward else k
    if root_weight:
        nf += 1
    return nf


def init_multi_graph_conv(key, in_channels, out_channels, k, n_layers=2,
                          root_weight=True, add_backward=True, bias=True):
    nf = n_filters(k, root_weight, add_backward)
    params = []
    c_in = in_channels
    for _ in range(n_layers):
        key, kw, kb = jax.random.split(key, 3)
        fan_in = c_in * nf
        bound = 1.0 / math.sqrt(fan_in)
        w = jax.random.uniform(kw, (nf, c_in, out_channels), jnp.float32,
                               -bound, bound)
        b = (jax.random.uniform(kb, (1, out_channels), jnp.float32, -bound, bound)
             if bias else jnp.zeros((1, out_channels), jnp.float32))
        params.append((w, b))
        c_in = out_channels
    return params


def pack_params(params, batch_size):
    """Precompute padded bf16 block-diagonal weights + packed bias (once)."""
    B = batch_size
    eye = jnp.eye(B, dtype=jnp.float32)
    packed = []
    for (w, b) in params:
        nf, cin, cout = w.shape
        cin_pp = _round_up(B * cin, 128)
        cout_pp = _round_up(B * cout, 128)
        # Wbig[c, p*cin+i, q*cout+o] = delta(p,q) * W[c,i,o]
        wbig = jnp.einsum('pq,cio->cpiqo', eye, w).reshape(nf, B * cin, B * cout)
        wbig = jnp.pad(wbig, ((0, 0), (0, cin_pp - B * cin),
                              (0, cout_pp - B * cout))).astype(jnp.bfloat16)
        bp = jnp.zeros((1, cout_pp), jnp.float32)
        bp = bp.at[0, :B * cout].set(jnp.tile(b.reshape(-1), B))
        packed.append((wbig, bp))
    return packed


# ----------------------------------------------------------------------------
# MultiGraphConv forward (single fused pallas_call for the whole layer stack)
# ----------------------------------------------------------------------------
def multi_graph_conv(x, edge_index, edge_weight, params, *, k,
                     root_weight=True, add_backward=True, activation=None,
                     packed_params=None):
    B, N, Fin = x.shape
    n_layers = len(params)
    nf = params[0][0].shape[0]
    Fout = params[-1][0].shape[-1]
    n_sup = k * (2 if add_backward else 1)

    N_pad = _round_up(N, 256)                 # MXU-native tile (128 suffices on v5e)
    C0_pp = _round_up(B * Fin, 128)
    Cout_pp = _round_up(B * Fout, 128)

    if packed_params is None:
        packed_params = pack_params(params, B)

    # Supports: dense, normalized, stacked k powers (f32 glue), padded + bf16.
    p_fwd, p_bwd = dense_supports(edge_index, edge_weight, N)
    p_list = _stacked_powers(p_fwd, k)
    if add_backward:
        p_list += _stacked_powers(p_bwd, k)
    p_stack = jnp.stack(p_list)                                       # [n_sup,N,N]
    p_stack = jnp.pad(p_stack, ((0, 0), (0, N_pad - N), (0, N_pad - N)))
    p_stack = p_stack.astype(jnp.bfloat16)

    # Batch folded into the lane axis: X[n, b*Fin + f] = x[b, n, f], then padded.
    xb = jnp.transpose(x, (1, 0, 2)).reshape(N, B * Fin)
    xb = jnp.pad(xb, ((0, N_pad - N), (0, C0_pp - B * Fin))).astype(jnp.bfloat16)

    operands = [p_stack, xb]
    for (wbig, bp) in packed_params:
        operands += [wbig, bp]

    kernel = functools.partial(
        _multi_graph_conv_kernel, n_layers=n_layers, n_sup=n_sup,
        root_weight=root_weight, activation=activation)

    out_sds = jax.ShapeDtypeStruct((N_pad, Cout_pp), jnp.bfloat16)

    # Cost estimate: actual HBM bytes (each operand + output once) + MXU flops.
    flops = 0
    cin_pp = C0_pp
    for _ in range(n_layers):
        flops += 2 * n_sup * N_pad * N_pad * cin_pp          # propagation
        flops += 2 * nf * N_pad * cin_pp * Cout_pp           # fused projection
        cin_pp = Cout_pp
    hbm_bytes = sum(int(o.size) * o.dtype.itemsize for o in operands)
    hbm_bytes += N_pad * Cout_pp * 2

    # VMEM limit: resident operands/output + f32 temporaries, capped below the
    # physical per-core capacity with headroom (valid on v5e/v6e/v7x).
    max_cpp = max(C0_pp, Cout_pp)
    resident = _padded_bytes_estimate(
        [(o.shape, o.dtype) for o in operands]
        + [((N_pad, Cout_pp), jnp.bfloat16),
           ((N_pad, max_cpp), jnp.float32),
           ((N_pad, max_cpp), jnp.float32)])
    cap = _vmem_capacity_bytes()
    vmem_limit = int(min(cap - 8 * 2 ** 20, max(4 * 2 ** 20, 2 * resident)))

    vmem_spec = pl.BlockSpec(memory_space=pltpu.MemorySpace.VMEM)
    out = pl.pallas_call(
        kernel,
        out_shape=out_sds,
        in_specs=[vmem_spec] * len(operands),
        out_specs=vmem_spec,
        compiler_params=pltpu.CompilerParams(vmem_limit_bytes=vmem_limit),
        cost_estimate=pl.CostEstimate(flops=flops, transcendentals=0,
                                      bytes_accessed=hbm_bytes),
    )(*operands)

    # One-time unpack at the module boundary: [N_pad, Cout_pp] -> [B, N, Fout]
    y = out[:N, :B * Fout].astype(jnp.float32)
    return jnp.transpose(y.reshape(N, B, Fout), (1, 0, 2))


# ----------------------------------------------------------------------------
# Pure-JAX reference (mirrors DiffConv.forward: concat of supports + Linear)
# ----------------------------------------------------------------------------
def multi_graph_conv_ref(x, edge_index, edge_weight, params, *, k,
                         root_weight=True, add_backward=True, activation=None):
    N = x.shape[1]
    p_fwd, p_bwd = dense_supports(edge_index, edge_weight, N)
    for (w, b) in params:
        outs = []
        if root_weight:
            outs.append(x)
        xs = x
        for _ in range(k):
            xs = jnp.einsum('ij,bjf->bif', p_fwd, xs)
            outs.append(xs)
        if add_backward:
            xs = x
            for _ in range(k):
                xs = jnp.einsum('ij,bjf->bif', p_bwd, xs)
                outs.append(xs)
        z = jnp.concatenate(outs, axis=-1)                 # [B, N, nf*Fin]
        w_flat = w.reshape(-1, w.shape[-1])                # [nf*Fin, Fout]
        y = jnp.einsum('bnc,cf->bnf', z, w_flat) + b
        if activation == "relu":
            y = jnp.maximum(y, 0.0)
        x = y
    return x


# ----------------------------------------------------------------------------
if __name__ == "__main__":
    key = jax.random.PRNGKey(0)
    B, N, F_IN, F_OUT, K, E, N_LAYERS = 2, 16, 4, 8, 2, 48, 2

    k_x, k_src, k_tgt, k_w, k_p = jax.random.split(key, 5)
    x = jax.random.normal(k_x, (B, N, F_IN), jnp.float32)
    edge_index = jnp.stack(
        [jax.random.randint(k_src, (E,), 0, N),
         jax.random.randint(k_tgt, (E,), 0, N)], axis=0).astype(jnp.int32)
    edge_weight = jax.random.uniform(k_w, (E,), jnp.float32, 0.1, 1.0)

    params = init_multi_graph_conv(k_p, F_IN, F_OUT, K, n_layers=N_LAYERS)
    packed = pack_params(params, B)        # precomputed once, reused per forward

    out = multi_graph_conv(x, edge_index, edge_weight, params, k=K,
                           packed_params=packed)
    out = jax.block_until_ready(out)

    ref = multi_graph_conv_ref(x, edge_index, edge_weight, params, k=K)
    assert out.shape == (B, N, F_OUT), out.shape
    np.testing.assert_allclose(np.asarray(out), np.asarray(ref),
                               rtol=2e-2, atol=2e-2)
    print("KERNEL_OK")
</pallas_src>

<mosaic_0001>
module attributes {stable_mosaic.version = 11 : i64} {
  func.func @_multi_graph_conv_kernel(%arg0: memref<4x256x256xbf16, #tpu.memory_space<vmem>>, %arg1: memref<256x128xbf16, #tpu.memory_space<vmem>>, %arg2: memref<5x128x128xbf16, #tpu.memory_space<vmem>>, %arg3: memref<1x128xf32, #tpu.memory_space<vmem>>, %arg4: memref<5x128x128xbf16, #tpu.memory_space<vmem>>, %arg5: memref<1x128xf32, #tpu.memory_space<vmem>>, %arg6: memref<256x128xbf16, #tpu.memory_space<vmem>>) attributes {dimension_semantics = [], scalar_prefetch = 0 : i64, scratch_operands = 0 : i64, tpu.core_type = #tpu.core_type<tc>} {
    %c0 = arith.constant 0 : index
    %c0_0 = arith.constant 0 : index
    %0 = vector.load %arg1[%c0, %c0_0] : memref<256x128xbf16, #tpu.memory_space<vmem>>, vector<256x128xbf16>
    %c0_1 = arith.constant 0 : index
    %c0_2 = arith.constant 0 : index
    %c0_3 = arith.constant 0 : index
    %1 = vector.load %arg2[%c0_1, %c0_2, %c0_3] : memref<5x128x128xbf16, #tpu.memory_space<vmem>>, vector<1x128x128xbf16>
    %2 = vector.shape_cast %1 : vector<1x128x128xbf16> to vector<128x128xbf16>
    %cst = arith.constant dense<0.000000e+00> : vector<256x128xf32>
    %3 = tpu.matmul %0, %2, %cst {dimension_numbers = #tpu.dot_dimension_numbers<[1], [0], [0], [1], [0, 0, 1, 1], [], []>} : vector<256x128xbf16>, vector<128x128xbf16>, vector<256x128xf32> -> vector<256x128xf32>
    %c0_4 = arith.constant 0 : index
    %c0_5 = arith.constant 0 : index
    %c0_6 = arith.constant 0 : index
    %4 = vector.load %arg0[%c0_4, %c0_5, %c0_6] : memref<4x256x256xbf16, #tpu.memory_space<vmem>>, vector<1x256x256xbf16>
    %5 = vector.shape_cast %4 : vector<1x256x256xbf16> to vector<256x256xbf16>
    %cst_7 = arith.constant dense<0.000000e+00> : vector<256x128xf32>
    %6 = tpu.matmul %5, %0, %cst_7 {dimension_numbers = #tpu.dot_dimension_numbers<[1], [0], [0], [1], [0, 0, 1, 1], [], []>} : vector<256x256xbf16>, vector<256x128xbf16>, vector<256x128xf32> -> vector<256x128xf32>
    %7 = arith.truncf %6 : vector<256x128xf32> to vector<256x128xbf16>
    %c1 = arith.constant 1 : index
    %c0_8 = arith.constant 0 : index
    %c0_9 = arith.constant 0 : index
    %8 = vector.load %arg2[%c1, %c0_8, %c0_9] : memref<5x128x128xbf16, #tpu.memory_space<vmem>>, vector<1x128x128xbf16>
    %9 = vector.shape_cast %8 : vector<1x128x128xbf16> to vector<128x128xbf16>
    %cst_10 = arith.constant dense<0.000000e+00> : vector<256x128xf32>
    %10 = tpu.matmul %7, %9, %cst_10 {dimension_numbers = #tpu.dot_dimension_numbers<[1], [0], [0], [1], [0, 0, 1, 1], [], []>} : vector<256x128xbf16>, vector<128x128xbf16>, vector<256x128xf32> -> vector<256x128xf32>
    %11 = arith.addf %3, %10 : vector<256x128xf32>
    %c1_11 = arith.constant 1 : index
    %c0_12 = arith.constant 0 : index
    %c0_13 = arith.constant 0 : index
    %12 = vector.load %arg0[%c1_11, %c0_12, %c0_13] : memref<4x256x256xbf16, #tpu.memory_space<vmem>>, vector<1x256x256xbf16>
    %13 = vector.shape_cast %12 : vector<1x256x256xbf16> to vector<256x256xbf16>
    %cst_14 = arith.constant dense<0.000000e+00> : vector<256x128xf32>
    %14 = tpu.matmul %13, %0, %cst_14 {dimension_numbers = #tpu.dot_dimension_numbers<[1], [0], [0], [1], [0, 0, 1, 1], [], []>} : vector<256x256xbf16>, vector<256x128xbf16>, vector<256x128xf32> -> vector<256x128xf32>
    %15 = arith.truncf %14 : vector<256x128xf32> to vector<256x128xbf16>
    %c2 = arith.constant 2 : index
    %c0_15 = arith.constant 0 : index
    %c0_16 = arith.constant 0 : index
    %16 = vector.load %arg2[%c2, %c0_15, %c0_16] : memref<5x128x128xbf16, #tpu.memory_space<vmem>>, vector<1x128x128xbf16>
    %17 = vector.shape_cast %16 : vector<1x128x128xbf16> to vector<128x128xbf16>
    %cst_17 = arith.constant dense<0.000000e+00> : vector<256x128xf32>
    %18 = tpu.matmul %15, %17, %cst_17 {dimension_numbers = #tpu.dot_dimension_numbers<[1], [0], [0], [1], [0, 0, 1, 1], [], []>} : vector<256x128xbf16>, vector<128x128xbf16>, vector<256x128xf32> -> vector<256x128xf32>
    %19 = arith.addf %11, %18 : vector<256x128xf32>
    %c2_18 = arith.constant 2 : index
    %c0_19 = arith.constant 0 : index
    %c0_20 = arith.constant 0 : index
    %20 = vector.load %arg0[%c2_18, %c0_19, %c0_20] : memref<4x256x256xbf16, #tpu.memory_space<vmem>>, vector<1x256x256xbf16>
    %21 = vector.shape_cast %20 : vector<1x256x256xbf16> to vector<256x256xbf16>
    %cst_21 = arith.constant dense<0.000000e+00> : vector<256x128xf32>
    %22 = tpu.matmul %21, %0, %cst_21 {dimension_numbers = #tpu.dot_dimension_numbers<[1], [0], [0], [1], [0, 0, 1, 1], [], []>} : vector<256x256xbf16>, vector<256x128xbf16>, vector<256x128xf32> -> vector<256x128xf32>
    %23 = arith.truncf %22 : vector<256x128xf32> to vector<256x128xbf16>
    %c3 = arith.constant 3 : index
    %c0_22 = arith.constant 0 : index
    %c0_23 = arith.constant 0 : index
    %24 = vector.load %arg2[%c3, %c0_22, %c0_23] : memref<5x128x128xbf16, #tpu.memory_space<vmem>>, vector<1x128x128xbf16>
    %25 = vector.shape_cast %24 : vector<1x128x128xbf16> to vector<128x128xbf16>
    %cst_24 = arith.constant dense<0.000000e+00> : vector<256x128xf32>
    %26 = tpu.matmul %23, %25, %cst_24 {dimension_numbers = #tpu.dot_dimension_numbers<[1], [0], [0], [1], [0, 0, 1, 1], [], []>} : vector<256x128xbf16>, vector<128x128xbf16>, vector<256x128xf32> -> vector<256x128xf32>
    %27 = arith.addf %19, %26 : vector<256x128xf32>
    %c3_25 = arith.constant 3 : index
    %c0_26 = arith.constant 0 : index
    %c0_27 = arith.constant 0 : index
    %28 = vector.load %arg0[%c3_25, %c0_26, %c0_27] : memref<4x256x256xbf16, #tpu.memory_space<vmem>>, vector<1x256x256xbf16>
    %29 = vector.shape_cast %28 : vector<1x256x256xbf16> to vector<256x256xbf16>
    %cst_28 = arith.constant dense<0.000000e+00> : vector<256x128xf32>
    %30 = tpu.matmul %29, %0, %cst_28 {dimension_numbers = #tpu.dot_dimension_numbers<[1], [0], [0], [1], [0, 0, 1, 1], [], []>} : vector<256x256xbf16>, vector<256x128xbf16>, vector<256x128xf32> -> vector<256x128xf32>
    %31 = arith.truncf %30 : vector<256x128xf32> to vector<256x128xbf16>
    %c4 = arith.constant 4 : index
    %c0_29 = arith.constant 0 : index
    %c0_30 = arith.constant 0 : index
    %32 = vector.load %arg2[%c4, %c0_29, %c0_30] : memref<5x128x128xbf16, #tpu.memory_space<vmem>>, vector<1x128x128xbf16>
    %33 = vector.shape_cast %32 : vector<1x128x128xbf16> to vector<128x128xbf16>
    %cst_31 = arith.constant dense<0.000000e+00> : vector<256x128xf32>
    %34 = tpu.matmul %31, %33, %cst_31 {dimension_numbers = #tpu.dot_dimension_numbers<[1], [0], [0], [1], [0, 0, 1, 1], [], []>} : vector<256x128xbf16>, vector<128x128xbf16>, vector<256x128xf32> -> vector<256x128xf32>
    %35 = arith.addf %27, %34 : vector<256x128xf32>
    %c0_32 = arith.constant 0 : index
    %c0_33 = arith.constant 0 : index
    %36 = vector.load %arg3[%c0_32, %c0_33] : memref<1x128xf32, #tpu.memory_space<vmem>>, vector<1x128xf32>
    %37 = vector.broadcast %36 : vector<1x128xf32> to vector<256x128xf32>
    %38 = arith.addf %35, %37 : vector<256x128xf32>
    %39 = arith.truncf %38 : vector<256x128xf32> to vector<256x128xbf16>
    %c0_34 = arith.constant 0 : index
    %c0_35 = arith.constant 0 : index
    %c0_36 = arith.constant 0 : index
    %40 = vector.load %arg4[%c0_34, %c0_35, %c0_36] : memref<5x128x128xbf16, #tpu.memory_space<vmem>>, vector<1x128x128xbf16>
    %41 = vector.shape_cast %40 : vector<1x128x128xbf16> to vector<128x128xbf16>
    %cst_37 = arith.constant dense<0.000000e+00> : vector<256x128xf32>
    %42 = tpu.matmul %39, %41, %cst_37 {dimension_numbers = #tpu.dot_dimension_numbers<[1], [0], [0], [1], [0, 0, 1, 1], [], []>} : vector<256x128xbf16>, vector<128x128xbf16>, vector<256x128xf32> -> vector<256x128xf32>
    %c0_38 = arith.constant 0 : index
    %c0_39 = arith.constant 0 : index
    %c0_40 = arith.constant 0 : index
    %43 = vector.load %arg0[%c0_38, %c0_39, %c0_40] : memref<4x256x256xbf16, #tpu.memory_space<vmem>>, vector<1x256x256xbf16>
    %44 = vector.shape_cast %43 : vector<1x256x256xbf16> to vector<256x256xbf16>
    %cst_41 = arith.constant dense<0.000000e+00> : vector<256x128xf32>
    %45 = tpu.matmul %44, %39, %cst_41 {dimension_numbers = #tpu.dot_dimension_numbers<[1], [0], [0], [1], [0, 0, 1, 1], [], []>} : vector<256x256xbf16>, vector<256x128xbf16>, vector<256x128xf32> -> vector<256x128xf32>
    %46 = arith.truncf %45 : vector<256x128xf32> to vector<256x128xbf16>
    %c1_42 = arith.constant 1 : index
    %c0_43 = arith.constant 0 : index
    %c0_44 = arith.constant 0 : index
    %47 = vector.load %arg4[%c1_42, %c0_43, %c0_44] : memref<5x128x128xbf16, #tpu.memory_space<vmem>>, vector<1x128x128xbf16>
    %48 = vector.shape_cast %47 : vector<1x128x128xbf16> to vector<128x128xbf16>
    %cst_45 = arith.constant dense<0.000000e+00> : vector<256x128xf32>
    %49 = tpu.matmul %46, %48, %cst_45 {dimension_numbers = #tpu.dot_dimension_numbers<[1], [0], [0], [1], [0, 0, 1, 1], [], []>} : vector<256x128xbf16>, vector<128x128xbf16>, vector<256x128xf32> -> vector<256x128xf32>
    %50 = arith.addf %42, %49 : vector<256x128xf32>
    %c1_46 = arith.constant 1 : index
    %c0_47 = arith.constant 0 : index
    %c0_48 = arith.constant 0 : index
    %51 = vector.load %arg0[%c1_46, %c0_47, %c0_48] : memref<4x256x256xbf16, #tpu.memory_space<vmem>>, vector<1x256x256xbf16>
    %52 = vector.shape_cast %51 : vector<1x256x256xbf16> to vector<256x256xbf16>
    %cst_49 = arith.constant dense<0.000000e+00> : vector<256x128xf32>
    %53 = tpu.matmul %52, %39, %cst_49 {dimension_numbers = #tpu.dot_dimension_numbers<[1], [0], [0], [1], [0, 0, 1, 1], [], []>} : vector<256x256xbf16>, vector<256x128xbf16>, vector<256x128xf32> -> vector<256x128xf32>
    %54 = arith.truncf %53 : vector<256x128xf32> to vector<256x128xbf16>
    %c2_50 = arith.constant 2 : index
    %c0_51 = arith.constant 0 : index
    %c0_52 = arith.constant 0 : index
    %55 = vector.load %arg4[%c2_50, %c0_51, %c0_52] : memref<5x128x128xbf16, #tpu.memory_space<vmem>>, vector<1x128x128xbf16>
    %56 = vector.shape_cast %55 : vector<1x128x128xbf16> to vector<128x128xbf16>
    %cst_53 = arith.constant dense<0.000000e+00> : vector<256x128xf32>
    %57 = tpu.matmul %54, %56, %cst_53 {dimension_numbers = #tpu.dot_dimension_numbers<[1], [0], [0], [1], [0, 0, 1, 1], [], []>} : vector<256x128xbf16>, vector<128x128xbf16>, vector<256x128xf32> -> vector<256x128xf32>
    %58 = arith.addf %50, %57 : vector<256x128xf32>
    %c2_54 = arith.constant 2 : index
    %c0_55 = arith.constant 0 : index
    %c0_56 = arith.constant 0 : index
    %59 = vector.load %arg0[%c2_54, %c0_55, %c0_56] : memref<4x256x256xbf16, #tpu.memory_space<vmem>>, vector<1x256x256xbf16>
    %60 = vector.shape_cast %59 : vector<1x256x256xbf16> to vector<256x256xbf16>
    %cst_57 = arith.constant dense<0.000000e+00> : vector<256x128xf32>
    %61 = tpu.matmul %60, %39, %cst_57 {dimension_numbers = #tpu.dot_dimension_numbers<[1], [0], [0], [1], [0, 0, 1, 1], [], []>} : vector<256x256xbf16>, vector<256x128xbf16>, vector<256x128xf32> -> vector<256x128xf32>
    %62 = arith.truncf %61 : vector<256x128xf32> to vector<256x128xbf16>
    %c3_58 = arith.constant 3 : index
    %c0_59 = arith.constant 0 : index
    %c0_60 = arith.constant 0 : index
    %63 = vector.load %arg4[%c3_58, %c0_59, %c0_60] : memref<5x128x128xbf16, #tpu.memory_space<vmem>>, vector<1x128x128xbf16>
    %64 = vector.shape_cast %63 : vector<1x128x128xbf16> to vector<128x128xbf16>
    %cst_61 = arith.constant dense<0.000000e+00> : vector<256x128xf32>
    %65 = tpu.matmul %62, %64, %cst_61 {dimension_numbers = #tpu.dot_dimension_numbers<[1], [0], [0], [1], [0, 0, 1, 1], [], []>} : vector<256x128xbf16>, vector<128x128xbf16>, vector<256x128xf32> -> vector<256x128xf32>
    %66 = arith.addf %58, %65 : vector<256x128xf32>
    %c3_62 = arith.constant 3 : index
    %c0_63 = arith.constant 0 : index
    %c0_64 = arith.constant 0 : index
    %67 = vector.load %arg0[%c3_62, %c0_63, %c0_64] : memref<4x256x256xbf16, #tpu.memory_space<vmem>>, vector<1x256x256xbf16>
    %68 = vector.shape_cast %67 : vector<1x256x256xbf16> to vector<256x256xbf16>
    %cst_65 = arith.constant dense<0.000000e+00> : vector<256x128xf32>
    %69 = tpu.matmul %68, %39, %cst_65 {dimension_numbers = #tpu.dot_dimension_numbers<[1], [0], [0], [1], [0, 0, 1, 1], [], []>} : vector<256x256xbf16>, vector<256x128xbf16>, vector<256x128xf32> -> vector<256x128xf32>
    %70 = arith.truncf %69 : vector<256x128xf32> to vector<256x128xbf16>
    %c4_66 = arith.constant 4 : index
    %c0_67 = arith.constant 0 : index
    %c0_68 = arith.constant 0 : index
    %71 = vector.load %arg4[%c4_66, %c0_67, %c0_68] : memref<5x128x128xbf16, #tpu.memory_space<vmem>>, vector<1x128x128xbf16>
    %72 = vector.shape_cast %71 : vector<1x128x128xbf16> to vector<128x128xbf16>
    %cst_69 = arith.constant dense<0.000000e+00> : vector<256x128xf32>
    %73 = tpu.matmul %70, %72, %cst_69 {dimension_numbers = #tpu.dot_dimension_numbers<[1], [0], [0], [1], [0, 0, 1, 1], [], []>} : vector<256x128xbf16>, vector<128x128xbf16>, vector<256x128xf32> -> vector<256x128xf32>
    %74 = arith.addf %66, %73 : vector<256x128xf32>
    %c0_70 = arith.constant 0 : index
    %c0_71 = arith.constant 0 : index
    %75 = vector.load %arg5[%c0_70, %c0_71] : memref<1x128xf32, #tpu.memory_space<vmem>>, vector<1x128xf32>
    %76 = vector.broadcast %75 : vector<1x128xf32> to vector<256x128xf32>
    %77 = arith.addf %74, %76 : vector<256x128xf32>
    %78 = arith.truncf %77 : vector<256x128xf32> to vector<256x128xbf16>
    %c0_72 = arith.constant 0 : index
    %c0_73 = arith.constant 0 : index
    %79 = vector.load %arg6[%c0_72, %c0_73] : memref<256x128xbf16, #tpu.memory_space<vmem>>, vector<256x128xbf16>
    tpu.vector_store %arg6[%c0_72, %c0_73], %78 {strides = array<i32>} : memref<256x128xbf16, #tpu.memory_space<vmem>>, vector<256x128xbf16>,
    return
  }
}

</mosaic_0001>

<bundles_post_ra>
// kernel: tpu_custom_call.1
= control target key start
LH: loop header
LB: loop body
LE: loop exit
PB: predicated region body
PF: predicated region fallthrough
CT: control target
= control target key end

     0   :  { %11 = vsyncpa [#allocation3], 0  ;;  %s8887_s0 = inlined_call_operand.hbm [shape: bf16[4,256,256], index: 0, kind: input, shape index: {}]   ;;  %s8888_s1 = inlined_call_operand.hbm [shape: bf16[256,128], index: 1, kind: input, shape index: {}]   ;;  %s8889_s2 = inlined_call_operand.hbm [shape: bf16[5,128,128], index: 2, kind: input, shape index: {}]   ;;  %s8890_s3 = inlined_call_operand.vmem [shape: f32[1,128], index: 3, kind: input, shape index: {}]   ;;  %s8891_s4 = inlined_call_operand.hbm [shape: bf16[5,128,128], index: 4, kind: input, shape index: {}]   ;;  %s8892_s5 = inlined_call_operand.vmem [shape: f32[1,128], index: 5, kind: input, shape index: {}]   ;;  %s8893_s6 = inlined_call_operand.hbm [shape: bf16[256,128], index: 6, kind: output, shape index: {}]  }
   0x1   :  { %12 = vsyncpa [#allocation6], 0 }
   0x2   :  { %13 = vsyncpa [#allocation9], 0 }
   0x3   :  { %14 = vsyncpa [#allocation4], 0  ;;  %s7668_s21 = smov [#allocation5]  }
   0x4   :  { %s32_s22 = sshll.u32 %s7668_s21, 4  ;;  %s33_s22 = int_to_ptr.vmem [resolvable:$true] %s32_s22 }
   0x5   :  { %s7568_s23 = scalar_lea.vmem %s33_s22, 2048  ;;  %p7573_p1 = scmp.lt.s32.totalorder %s33_s22, %s33_s22 }
   0x6   :  { %p7569_p0 = scmp.ne.s32.totalorder %s33_s22, %s7568_s23  ;;  %p7574_p2 = scmp.lt.s32.totalorder %s7568_s23, %s7568_s23 }
   0x8   :  { %p7575_p3 = por %p7574_p2, %p7573_p1 }
   0xa   :  { %p7576_p4 = pnand %p7575_p3, %p7569_p0 }
   0xc   :  { %7579 = shalt.err (!%p7576_p4)
}
   0xd   :  { %s7669_s24 = smov 64   ;;  %s7670_s25 = smov 4  }
   0xe   :  { %38 = dma.hbm_to_vmem [thread:$0]  %s8888_s1, 2048, %s33_s22, [#allocation6], %s7669_s24, %s7669_s24, %s7670_s25  }
   0xf   :  { %s7671_s28 = smov [#allocation2]  }
  0x10   :  { %s20_s29 = sshll.u32 %s7671_s28, 4  ;;  %s21_s29 = int_to_ptr.vmem [resolvable:$true] %s20_s29 }
  0x11   :  { %s7588_s30 = scalar_lea.vmem %s21_s29, 16384  ;;  %p7593_p6 = scmp.lt.s32.totalorder %s21_s29, %s21_s29 }
  0x12   :  { %p7589_p5 = scmp.ne.s32.totalorder %s21_s29, %s7588_s30  ;;  %p7594_p7 = scmp.lt.s32.totalorder %s7588_s30, %s7588_s30 }
  0x14   :  { %p7595_p8 = por %p7594_p7, %p7593_p6 }
  0x16   :  { %p7596_p9 = pnand %p7595_p8, %p7589_p5 }
  0x18   :  { %7599 = shalt.err (!%p7596_p9)
}
  0x19   :  { %s7672_s7 = smov 128   ;;  %s7673_s8 = smov 8  }
  0x1a   :  { %26 = dma.hbm_to_vmem [thread:$0]  %s8887_s0, 16384, %s21_s29, [#allocation3], %s7672_s7, %s7672_s7, %s7673_s8  }
  0x1b   :  { %s7674_s11 = smov [#allocation7]   ;;  %s7675_s13 = smov [#allocation8]  }
  0x1c   :  { %s44_s12 = sshll.u32 %s7674_s11, 4  ;;  %s58_s1 = sshll.u32 %s7675_s13, 4  ;;  %s45_s12 = int_to_ptr.vmem [resolvable:$true] %s44_s12  ;;  %s59_s1 = int_to_ptr.vmem [resolvable:$true] %s58_s1 }
  0x1d   :  { %s7608_s14 = scalar_lea.vmem %s45_s12, 5120  ;;  %p7613_p11 = scmp.lt.s32.totalorder %s45_s12, %s45_s12 }
  0x1e   :  { %p7609_p10 = scmp.ne.s32.totalorder %s45_s12, %s7608_s14  ;;  %p7614_p12 = scmp.lt.s32.totalorder %s7608_s14, %s7608_s14 }
  0x20   :  { %p7615_p13 = por %p7614_p12, %p7613_p11 }
  0x22   :  { %p7616_p0 = pnand %p7615_p13, %p7609_p10 }
  0x24   :  { %7619 = shalt.err (!%p7616_p0)
}
  0x25   :  { %50 = dma.hbm_to_vmem [thread:$0]  %s8889_s2, 5120, %s45_s12, [#allocation6], %s7669_s24, %s7669_s24, %s7670_s25  }
  0x26   :  { %s7628_s0 = scalar_lea.vmem %s59_s1, 5120  ;;  %p7633_p2 = scmp.lt.s32.totalorder %s59_s1, %s59_s1 }
  0x27   :  { %p7629_p1 = scmp.ne.s32.totalorder %s59_s1, %s7628_s0  ;;  %p7634_p3 = scmp.lt.s32.totalorder %s7628_s0, %s7628_s0 }
  0x29   :  { %p7635_p4 = por %p7634_p3, %p7633_p2 }
  0x2b   :  { %p7636_p5 = pnand %p7635_p4, %p7629_p1 }
  0x2d   :  { %7639 = shalt.err (!%p7636_p5)
}
  0x2e   :  { %64 = dma.hbm_to_vmem [thread:$0]  %s8891_s4, 5120, %s59_s1, [#allocation9], %s7669_s24, %s7669_s24, %s7670_s25  }
  0x2f   :  { %7660 = dma.done.wait [#allocation3], 16384  }
  0x30   :  { %7661 = vsyncadd [#allocation3], 4294950912 }
  0x31   :  { %7662 = dma.done.wait [#allocation6], 7168  }
  0x32   :  { %7663 = vsyncadd [#allocation6], 4294960128 }
  0x33   :  { %7664 = dma.done.wait [#allocation9], 5120  }
  0x34   :  { %7665 = vsyncadd [#allocation9], 4294962176  ;;  %v7128_v0 = vld [vmem:[#allocation5 + $0x78] sm:$0xff]   ;;  %v7130_v2 = vld [vmem:[#allocation5 + $0x70] sm:$0xff]  }
  0x35   :  { %v7129_v1 = vld [vmem:[#allocation5 + $0x38] sm:$0xff]   ;;  %5503 = vmatprep.subr.bf16.mxu0 %v7128_v0  ;;  %v7131_v3 = vld [vmem:[#allocation5 + $0x30] sm:$0xff]   ;;  %v7132_v4 = vld [vmem:[#allocation5 + $0x68] sm:$0xff]  }
  0x36   :  { %5504 = vmatpush3.bf16.msra.mxu0 %v7129_v1  ;;  %v7133_v5 = vld [vmem:[#allocation5 + $0x28] sm:$0xff]   ;;  %v7134_v6 = vld [vmem:[#allocation5 + $0x60] sm:$0xff]   ;;  %v7136_v8 = vld [vmem:[#allocation5 + $0x58] sm:$0xff]  }
  0x37   :  { %5505 = vmatprep.subr.bf16.mxu0 %v7130_v2  ;;  %v7135_v7 = vld [vmem:[#allocation5 + $0x20] sm:$0xff]   ;;  %v7137_v9 = vld [vmem:[#allocation5 + $0x18] sm:$0xff]   ;;  %v7138_v10 = vld [vmem:[#allocation5 + $0x50] sm:$0xff]  }
  0x38   :  { %v7146_v11 = vld [vmem:[#allocation2 + $0x4] ss:$8 sps:$4 sm:$0xff]   ;;  %v7139_v12 = vld [vmem:[#allocation5 + $0x10] sm:$0xff]   ;;  %v7144_v17 = vld [vmem:[#allocation2] ss:$8 sps:$4 sm:$0xff]  }
  0x39   :  { %448 = vmatprep.mubr.bf16.mxu0 %v7146_v11  ;;  %v7140_v13 = vld [vmem:[#allocation5 + $0x48] sm:$0xff]   ;;  %v7142_v15 = vld [vmem:[#allocation5 + $0x40] sm:$0xff]   ;;  %v7147_v18 = vld [vmem:[#allocation2 + $0x14] ss:$8 sps:$4 sm:$0xff]  }
  0x3a   :  { %5506 = vmatpush3.bf16.msra.mxu0 %v7131_v3  ;;  %v7141_v14 = vld [vmem:[#allocation5 + $0x8] sm:$0xff]   ;;  %v7143_v16 = vld [vmem:[#allocation5] sm:$0xff]   ;;  %v7149_v19 = vld [vmem:[#allocation2 + $0x10] ss:$8 sps:$4 sm:$0xff]  }
  0x3b   :  { %5507 = vmatprep.subr.bf16.mxu0 %v7132_v4  ;;  %v7150_v20 = vld [vmem:[#allocation2 + $0x24] ss:$8 sps:$4 sm:$0xff]   ;;  %v7152_v21 = vld [vmem:[#allocation2 + $0x20] ss:$8 sps:$4 sm:$0xff]   ;;  %v7153_v22 = vld [vmem:[#allocation2 + $0x34] ss:$8 sps:$4 sm:$0xff]  }
  0x3c   :  { %v7155_v23 = vld [vmem:[#allocation2 + $0x30] ss:$8 sps:$4 sm:$0xff]   ;;  %v7156_v24 = vld [vmem:[#allocation2 + $0x44] ss:$8 sps:$4 sm:$0xff]   ;;  %v7158_v25 = vld [vmem:[#allocation2 + $0x40] ss:$8 sps:$4 sm:$0xff]  }
  0x3d   :  { %v7159_v26 = vld [vmem:[#allocation2 + $0x54] ss:$8 sps:$4 sm:$0xff]   ;;  %v7161_v27 = vld [vmem:[#allocation2 + $0x50] ss:$8 sps:$4 sm:$0xff]   ;;  %v7162_v28 = vld [vmem:[#allocation2 + $0x64] ss:$8 sps:$4 sm:$0xff]  }
  0x3e   :  { %5508 = vmatpush3.bf16.msra.mxu0 %v7133_v5  ;;  %v7164_v29 = vld [vmem:[#allocation2 + $0x60] ss:$8 sps:$4 sm:$0xff]   ;;  %v7165_v30 = vld [vmem:[#allocation2 + $0x74] ss:$8 sps:$4 sm:$0xff]   ;;  %v7167_v33 = vld [vmem:[#allocation2 + $0x70] ss:$8 sps:$4 sm:$0xff]  }
  0x3f   :  { %5509 = vmatprep.subr.bf16.mxu0 %v7134_v6  ;;  %v7213_v31 = vld [vmem:[#allocation7 + $0x78] sm:$0xff]   ;;  %v7214_v32 = vld [vmem:[#allocation7 + $0x70] sm:$0xff]   ;;  %v7168_v34 = vld [vmem:[#allocation2 + $0x84] ss:$8 sps:$4 sm:$0xff]  }
  0x40   :  { %6639 = vmatprep.subr.bf16.mxu1 %v7213_v31  ;;  %v7218_v35 = vld [vmem:[#allocation7 + $0x68] sm:$0xff]   ;;  %v7219_v36 = vld [vmem:[#allocation7 + $0x60] sm:$0xff]   ;;  %v7171_v38 = vld [vmem:[#allocation2 + $0x94] ss:$8 sps:$4 sm:$0xff]  }
  0x41   :  { %6640 = vmatpush3.bf16.msra.mxu1 %v7213_v31  ;;  %v7170_v37 = vld [vmem:[#allocation2 + $0x80] ss:$8 sps:$4 sm:$0xff]   ;;  %v7223_v39 = vld [vmem:[#allocation7 + $0x58] sm:$0xff]   ;;  %v7174_v41 = vld [vmem:[#allocation2 + $0xa4] ss:$8 sps:$4 sm:$0xff]  }
  0x42   :  { %5510 = vmatpush3.bf16.msra.mxu0 %v7135_v7  ;;  %6641 = vmatprep.subr.bf16.mxu1 %v7214_v32  ;;  %v7173_v40 = vld [vmem:[#allocation2 + $0x90] ss:$8 sps:$4 sm:$0xff]   ;;  %v7228_v43 = vld [vmem:[#allocation7 + $0x48] sm:$0xff]   ;;  %v7177_v45 = vld [vmem:[#allocation2 + $0xb4] ss:$8 sps:$4 sm:$0xff]  }
  0x43   :  { %5511 = vmatprep.subr.bf16.mxu0 %v7136_v8  ;;  %v7224_v42 = vld [vmem:[#allocation7 + $0x50] sm:$0xff]   ;;  %v7176_v44 = vld [vmem:[#allocation2 + $0xa0] ss:$8 sps:$4 sm:$0xff]   ;;  %v7180_v48 = vld [vmem:[#allocation2 + $0xc4] ss:$8 sps:$4 sm:$0xff]  }
  0x44   :  { %v7229_v46 = vld [vmem:[#allocation7 + $0x40] sm:$0xff]   ;;  %v7179_v47 = vld [vmem:[#allocation2 + $0xb0] ss:$8 sps:$4 sm:$0xff]   ;;  %v7183_v50 = vld [vmem:[#allocation2 + $0xd4] ss:$8 sps:$4 sm:$0xff]  }
  0x45   :  { %6642 = vmatpush3.bf16.msra.mxu1 %v7214_v32  ;;  %v7182_v49 = vld [vmem:[#allocation2 + $0xc0] ss:$8 sps:$4 sm:$0xff]   ;;  %v7185_v51 = vld [vmem:[#allocation2 + $0xd0] ss:$8 sps:$4 sm:$0xff]   ;;  %v7186_v52 = vld [vmem:[#allocation2 + $0xe4] ss:$8 sps:$4 sm:$0xff]  }
  0x46   :  { %5512 = vmatpush3.bf16.msra.mxu0 %v7137_v9  ;;  %6643 = vmatprep.subr.bf16.mxu1 %v7218_v35  ;;  %v7188_v53 = vld [vmem:[#allocation2 + $0xe0] ss:$8 sps:$4 sm:$0xff]   ;;  %v7189_v54 = vld [vmem:[#allocation2 + $0xf4] ss:$8 sps:$4 sm:$0xff]   ;;  %v7191_v55 = vld [vmem:[#allocation2 + $0xf0] ss:$8 sps:$4 sm:$0xff]  }
  0x47   :  { %5513 = vmatprep.subr.bf16.mxu0 %v7138_v10  ;;  %v7194_v56 = vld [vmem:[#allocation2 + $0x104] ss:$8 sps:$4 sm:$0xff]   ;;  %v7192_v57 = vld [vmem:[#allocation2 + $0x100] ss:$8 sps:$4 sm:$0xff]   ;;  %v7195_v58 = vld [vmem:[#allocation2 + $0x114] ss:$8 sps:$4 sm:$0xff]  }
  0x48   :  { %v7197_v59 = vld [vmem:[#allocation2 + $0x110] ss:$8 sps:$4 sm:$0xff]   ;;  %v7198_v60 = vld [vmem:[#allocation2 + $0x124] ss:$8 sps:$4 sm:$0xff]   ;;  %v7200_v61 = vld [vmem:[#allocation2 + $0x120] ss:$8 sps:$4 sm:$0xff]  }
  0x49   :  { %6644 = vmatpush3.bf16.msra.mxu1 %v7218_v35  ;;  %v7201_v62 = vld [vmem:[#allocation2 + $0x134] ss:$8 sps:$4 sm:$0xff]   ;;  %v7203_v63 = vld [vmem:[#allocation2 + $0x130] ss:$8 sps:$4 sm:$0xff]   ;;  %v7238_v35 = vld [vmem:[#allocation2 + $0x1c4] ss:$8 sps:$4 sm:$0xff]  }
  0x4a   :  { %5514 = vmatpush3.bf16.msra.mxu0 %v7139_v12  ;;  %6645 = vmatprep.subr.bf16.mxu1 %v7219_v36  ;;  %v7225_v11 = vld [vmem:[#allocation2 + $0x194] ss:$8 sps:$4 sm:$0xff]  }
  0x4b   :  { %5515 = vmatprep.subr.bf16.mxu0 %v7140_v13  ;;  %v7249_v31 = vld [vmem:[#allocation7 + $0x30] sm:$0xff]  }
  0x4d   :  { %6646 = vmatpush3.bf16.msra.mxu1 %v7219_v36  ;;  %v7250_v36 = vld [vmem:[#allocation7 + $0x28] sm:$0xff]  }
  0x4e   :  { %5516 = vmatpush3.bf16.msra.mxu0 %v7141_v14  ;;  %6647 = vmatprep.subr.bf16.mxu1 %v7223_v39 }
  0x4f   :  { %5517 = vmatprep.subr.bf16.mxu0 %v7142_v15 }
  0x51   :  { %6648 = vmatpush3.bf16.msra.mxu1 %v7223_v39 }
  0x52   :  { %5518 = vmatpush3.bf16.msra.mxu0 %v7143_v16  ;;  %6649 = vmatprep.subr.bf16.mxu1 %v7224_v42 }
  0x53   :  { %5663 = vmatprep.subr.bf16.mxu0 %v7128_v0  ;;  %v7204_v0 = vld [vmem:[#allocation2 + $0x144] ss:$8 sps:$4 sm:$0xff]  }
  0x55   :  { %449 = vmatmul.mubr.bf16.vlgmr.msra.gmra.mxu0 %v7144_v17  ;;  %6650 = vmatpush3.bf16.msra.mxu1 %v7224_v42  ;;  %v7251_v42 = vld [vmem:[#allocation7 + $0x20] sm:$0xff]  }
  0x56   :  { %456 = vmatprep.mubr.bf16.mxu0 %v7147_v18  ;;  %5664 = vmatpush3.bf16.msra.mxu0 %v7129_v1  ;;  %v7206_v1 = vld [vmem:[#allocation2 + $0x140] ss:$8 sps:$4 sm:$0xff]  }
  0x57   :  { %5665 = vmatprep.subr.bf16.mxu0 %v7130_v2  ;;  %6651 = vmatprep.subr.bf16.mxu1 %v7228_v43  ;;  %v7207_v2 = vld [vmem:[#allocation2 + $0x154] ss:$8 sps:$4 sm:$0xff]  }
  0x59   :  { %6652 = vmatpush3.bf16.msra.mxu1 %v7228_v43 }
  0x5a   :  { %5666 = vmatpush3.bf16.msra.mxu0 %v7131_v3  ;;  %6653 = vmatprep.subr.bf16.mxu1 %v7229_v46  ;;  %v7209_v3 = vld [vmem:[#allocation2 + $0x150] ss:$8 sps:$4 sm:$0xff]  }
  0x5b   :  { %5667 = vmatprep.subr.bf16.mxu0 %v7132_v4  ;;  %v7210_v4 = vld [vmem:[#allocation2 + $0x164] ss:$8 sps:$4 sm:$0xff]  }
  0x5d   :  { %457 = vmatmul.mubr.bf16.gmra.mxu0 %v7149_v19  ;;  %6654 = vmatpush3.bf16.msra.mxu1 %v7229_v46  ;;  %v7241_v46 = vld [vmem:[#allocation2 + $0x1d4] ss:$8 sps:$4 sm:$0xff]  }
  0x5e   :  { %464 = vmatprep.mubr.bf16.mxu0 %v7150_v20  ;;  %5668 = vmatpush3.bf16.msra.mxu0 %v7133_v5  ;;  %v7248_v5 = vld [vmem:[#allocation7 + $0x38] sm:$0xff]  }
  0x5f   :  { %5669 = vmatprep.subr.bf16.mxu0 %v7134_v6  ;;  %6687 = vmatprep.subr.bf16.mxu1 %v7248_v5  ;;  %v7212_v6 = vld [vmem:[#allocation2 + $0x160] ss:$8 sps:$4 sm:$0xff]  }
  0x62   :  { %5670 = vmatpush3.bf16.msra.mxu0 %v7135_v7  ;;  %v7215_v7 = vld [vmem:[#allocation2 + $0x174] ss:$8 sps:$4 sm:$0xff]  }
  0x63   :  { %5671 = vmatprep.subr.bf16.mxu0 %v7136_v8  ;;  %v7217_v8 = vld [vmem:[#allocation2 + $0x170] ss:$8 sps:$4 sm:$0xff]  }
  0x65   :  { %465 = vmatmul.mubr.bf16.gmra.mxu0 %v7152_v21 }
  0x66   :  { %472 = vmatprep.mubr.bf16.mxu0 %v7153_v22  ;;  %5672 = vmatpush3.bf16.msra.mxu0 %v7137_v9  ;;  %v7220_v9 = vld [vmem:[#allocation2 + $0x184] ss:$8 sps:$4 sm:$0xff]  }
  0x67   :  { %5673 = vmatprep.subr.bf16.mxu0 %v7138_v10  ;;  %v7222_v10 = vld [vmem:[#allocation2 + $0x180] ss:$8 sps:$4 sm:$0xff]  }
  0x6a   :  { %5674 = vmatpush3.bf16.msra.mxu0 %v7139_v12 }
  0x6b   :  { %5675 = vmatprep.subr.bf16.mxu0 %v7140_v13 }
  0x6d   :  { %473 = vmatmul.mubr.bf16.gmra.mxu0 %v7155_v23 }
  0x6e   :  { %480 = vmatprep.mubr.bf16.mxu0 %v7156_v24  ;;  %5676 = vmatpush3.bf16.msra.mxu0 %v7141_v14  ;;  %v7232_v24 = vld [vmem:[#allocation2 + $0x1a0] ss:$8 sps:$4 sm:$0xff]  }
  0x6f   :  { %5677 = vmatprep.subr.bf16.mxu0 %v7142_v15  ;;  %v7227_v15 = vld [vmem:[#allocation2 + $0x190] ss:$8 sps:$4 sm:$0xff]  }
  0x72   :  { %5678 = vmatpush3.bf16.msra.mxu0 %v7143_v16  ;;  %v7230_v16 = vld [vmem:[#allocation2 + $0x1a4] ss:$8 sps:$4 sm:$0xff]  }
  0x75   :  { %481 = vmatmul.mubr.bf16.gmra.mxu0 %v7158_v25  ;;  %v7233_v25 = vld [vmem:[#allocation2 + $0x1b4] ss:$8 sps:$4 sm:$0xff]  }
  0x76   :  { %488 = vmatprep.mubr.bf16.mxu0 %v7159_v26 }
  0x7d   :  { %489 = vmatmul.mubr.bf16.gmra.mxu0 %v7161_v27 }
  0x7e   :  { %496 = vmatprep.mubr.bf16.mxu0 %v7162_v28 }
  0x85   :  { %497 = vmatmul.mubr.bf16.gmra.mxu0 %v7164_v29 }
  0x86   :  { %504 = vmatprep.mubr.bf16.mxu0 %v7165_v30 }
  0x8d   :  { %505 = vmatmul.mubr.bf16.gmra.mxu0 %v7167_v33 }
  0x8e   :  { %512 = vmatprep.mubr.bf16.mxu0 %v7168_v34  ;;  %v7235_v34 = vld [vmem:[#allocation2 + $0x1b0] ss:$8 sps:$4 sm:$0xff]  }
  0x95   :  { %513 = vmatmul.mubr.bf16.gmra.mxu0 %v7170_v37 }
  0x96   :  { %520 = vmatprep.mubr.bf16.mxu0 %v7171_v38 }
  0x9d   :  { %521 = vmatmul.mubr.bf16.gmra.mxu0 %v7173_v40 }
  0x9e   :  { %528 = vmatprep.mubr.bf16.mxu0 %v7174_v41 }
  0xa5   :  { %529 = vmatmul.mubr.bf16.gmra.mxu0 %v7176_v44 }
  0xa6   :  { %536 = vmatprep.mubr.bf16.mxu0 %v7177_v45  ;;  %v7236_v45 = vld [vmem:[#allocation2 + $0x1c0] ss:$8 sps:$4 sm:$0xff]  }
  0xad   :  { %537 = vmatmul.mubr.bf16.gmra.mxu0 %v7179_v47  ;;  %v7252_v47 = vld [vmem:[#allocation7 + $0x18] sm:$0xff]  }
  0xae   :  { %544 = vmatprep.mubr.bf16.mxu0 %v7180_v48 }
  0xb5   :  { %545 = vmatmul.mubr.bf16.gmra.mxu0 %v7182_v49 }
  0xb6   :  { %552 = vmatprep.mubr.bf16.mxu0 %v7183_v50 }
  0xbd   :  { %553 = vmatmul.mubr.bf16.gmra.mxu0 %v7185_v51 }
  0xbe   :  { %560 = vmatprep.mubr.bf16.mxu0 %v7186_v52 }
  0xc5   :  { %561 = vmatmul.mubr.bf16.gmra.mxu0 %v7188_v53  ;;  %v7253_v53 = vld [vmem:[#allocation7 + $0x10] sm:$0xff]  }
  0xc6   :  { %568 = vmatprep.mubr.bf16.mxu0 %v7189_v54 }
  0xcd   :  { %569 = vmatmul.mubr.bf16.gmra.mxu0 %v7191_v55 }
  0xce   :  { %1253 = vmatprep.mubr.bf16.mxu0 %v7194_v56  ;;  %v7239_v56 = vld [vmem:[#allocation2 + $0x1d0] ss:$8 sps:$4 sm:$0xff]  }
  0xd5   :  { %1254 = vmatmul.mubr.bf16.vlgmr.msra.gmra.mxu0 %v7192_v57  ;;  %v7244_v57 = vld [vmem:[#allocation2 + $0x1e4] ss:$8 sps:$4 sm:$0xff]  }
  0xd6   :  { %1261 = vmatprep.mubr.bf16.mxu0 %v7195_v58  ;;  %v7254_v58 = vld [vmem:[#allocation7 + $0x8] sm:$0xff]  }
  0xdd   :  { %1262 = vmatmul.mubr.bf16.gmra.mxu0 %v7197_v59 }
  0xde   :  { %1269 = vmatprep.mubr.bf16.mxu0 %v7198_v60 }
  0xe5   :  { %1270 = vmatmul.mubr.bf16.gmra.mxu0 %v7200_v61 }
  0xe6   :  { %1277 = vmatprep.mubr.bf16.mxu0 %v7201_v62 }
  0xed   :  { %1278 = vmatmul.mubr.bf16.gmra.mxu0 %v7203_v63 }
  0xee   :  { %1285 = vmatprep.mubr.bf16.mxu0 %v7204_v0  ;;  %v7255_v0 = vld [vmem:[#allocation7] sm:$0xff]  }
  0xf5   :  { %1286 = vmatmul.mubr.bf16.gmra.mxu0 %v7206_v1 }
  0xf6   :  { %1293 = vmatprep.mubr.bf16.mxu0 %v7207_v2 }
  0xfd   :  { %1294 = vmatmul.mubr.bf16.gmra.mxu0 %v7209_v3  ;;  %v7242_v3 = vld [vmem:[#allocation2 + $0x1e0] ss:$8 sps:$4 sm:$0xff]  }
  0xfe   :  { %1301 = vmatprep.mubr.bf16.mxu0 %v7210_v4  ;;  %v7247_v4 = vld [vmem:[#allocation2 + $0x1f4] ss:$8 sps:$4 sm:$0xff]  }
 0x105   :  { %1302 = vmatmul.mubr.bf16.gmra.mxu0 %v7212_v6 }
 0x106   :  { %1309 = vmatprep.mubr.bf16.mxu0 %v7215_v7 }
 0x10d   :  { %1310 = vmatmul.mubr.bf16.gmra.mxu0 %v7217_v8 }
 0x10e   :  { %1317 = vmatprep.mubr.bf16.mxu0 %v7220_v9 }
 0x115   :  { %v5519_v12 = vpop.f32.mrf.mxu0  ;;  %1318 = vmatmul.mubr.bf16.gmra.mxu0 %v7222_v10 }
 0x116   :  { %1325 = vmatprep.mubr.bf16.mxu0 %v7225_v11 }
 0x117   :  { %v5520_v13 = vpop.f32.mrf.mxu0 }
 0x118   :  { %v5521_v18 = vadd.f32 %v5520_v13, %v5519_v12  ;;  %v7245_v13 = vld [vmem:[#allocation2 + $0x1f0] ss:$8 sps:$4 sm:$0xff]  }
 0x119   :  { %v5522_v14 = vpop.f32.mrf.mxu0 }
 0x11b   :  { %v5523_v17 = vpop.f32.mrf.mxu0 }
 0x11c   :  { %v5524_v19 = vadd.f32 %v5523_v17, %v5522_v14 }
 0x11d   :  { %v5525_v20 = vpop.f32.mrf.mxu0  ;;  %1326 = vmatmul.mubr.bf16.gmra.mxu0 %v7227_v15 }
 0x11e   :  { %v577_v21 = vpack.c.bf16 %v5524_v19, %v5521_v18  ;;  %1333 = vmatprep.mubr.bf16.mxu0 %v7230_v16 }
 0x11f   :  { %v5526_v22 = vpop.f32.mrf.mxu0 }
 0x120   :  { %6655 = vmatprep.mubr.bf16.mxu1 %v577_v21  ;;  %v5527_v27 = vadd.f32 %v5526_v22, %v5525_v20 }
 0x121   :  { %v5528_v23 = vpop.f32.mrf.mxu0 }
 0x123   :  { %v5529_v26 = vpop.f32.mrf.mxu0 }
 0x124   :  { %v5530_v28 = vadd.f32 %v5529_v26, %v5528_v23 }
 0x125   :  { %v5531_v29 = vpop.f32.mrf.mxu0  ;;  %1334 = vmatmul.mubr.bf16.gmra.mxu0 %v7232_v24 }
 0x126   :  { %v578_v30 = vpack.c.bf16 %v5530_v28, %v5527_v27  ;;  %1341 = vmatprep.mubr.bf16.mxu0 %v7233_v25 }
 0x127   :  { %v5532_v32 = vpop.f32.mrf.mxu0 }
 0x128   :  { %6656 = vmatmul.mubr.bf16.vlgmr.msra.gmra.mxu1 %v578_v30  ;;  %v5533_v38 = vadd.f32 %v5532_v32, %v5531_v29 }
 0x129   :  { %v5534_v33 = vpop.f32.mrf.mxu0  ;;  %6688 = vmatpush3.bf16.msra.mxu1 %v7248_v5  ;;  %v7733_v5 = vld [vmem:[#allocation7 + $0xb8] sm:$0xff]  }
 0x12a   :  { %6689 = vmatprep.subr.bf16.mxu1 %v7249_v31 }
 0x12b   :  { %v5535_v37 = vpop.f32.mrf.mxu0 }
 0x12c   :  { %v5536_v39 = vadd.f32 %v5535_v37, %v5534_v33 }
 0x12d   :  { %v5537_v40 = vpop.f32.mrf.mxu0  ;;  %1342 = vmatmul.mubr.bf16.gmra.mxu0 %v7235_v34  ;;  %6690 = vmatpush3.bf16.msra.mxu1 %v7249_v31 }
 0x12e   :  { %v579_v41 = vpack.c.bf16 %v5536_v39, %v5533_v38  ;;  %1349 = vmatprep.mubr.bf16.mxu0 %v7238_v35  ;;  %6691 = vmatprep.subr.bf16.mxu1 %v7250_v36 }
 0x12f   :  { %v5538_v43 = vpop.f32.mrf.mxu0 }
 0x130   :  { %6659 = vmatprep.mubr.bf16.mxu1 %v579_v41  ;;  %v5539_v49 = vadd.f32 %v5538_v43, %v5537_v40 }
 0x131   :  { %v5540_v44 = vpop.f32.mrf.mxu0  ;;  %6692 = vmatpush3.bf16.msra.mxu1 %v7250_v36 }
 0x132   :  { %6693 = vmatprep.subr.bf16.mxu1 %v7251_v42 }
 0x133   :  { %v5541_v48 = vpop.f32.mrf.mxu0 }
 0x134   :  { %v5542_v50 = vadd.f32 %v5541_v48, %v5540_v44 }
 0x135   :  { %v5543_v51 = vpop.f32.mrf.mxu0  ;;  %1350 = vmatmul.mubr.bf16.gmra.mxu0 %v7236_v45  ;;  %6694 = vmatpush3.bf16.msra.mxu1 %v7251_v42 }
 0x136   :  { %v580_v52 = vpack.c.bf16 %v5542_v50, %v5539_v49  ;;  %1357 = vmatprep.mubr.bf16.mxu0 %v7241_v46  ;;  %6695 = vmatprep.subr.bf16.mxu1 %v7252_v47 }
 0x137   :  { %v5544_v54 = vpop.f32.mrf.mxu0 }
 0x138   :  { %6660 = vmatmul.mubr.bf16.gmra.mxu1 %v580_v52  ;;  %v5545_v60 = vadd.f32 %v5544_v54, %v5543_v51 }
 0x139   :  { %v5546_v55 = vpop.f32.mrf.mxu0  ;;  %6696 = vmatpush3.bf16.msra.mxu1 %v7252_v47 }
 0x13a   :  { %6697 = vmatprep.subr.bf16.mxu1 %v7253_v53 }
 0x13b   :  { %v5547_v59 = vpop.f32.mrf.mxu0 }
 0x13c   :  { %v5548_v61 = vadd.f32 %v5547_v59, %v5546_v55 }
 0x13d   :  { %v5549_v62 = vpop.f32.mrf.mxu0  ;;  %1358 = vmatmul.mubr.bf16.gmra.mxu0 %v7239_v56  ;;  %6698 = vmatpush3.bf16.msra.mxu1 %v7253_v53 }
 0x13e   :  { %v581_v63 = vpack.c.bf16 %v5548_v61, %v5545_v60  ;;  %1365 = vmatprep.mubr.bf16.mxu0 %v7244_v57  ;;  %6699 = vmatprep.subr.bf16.mxu1 %v7254_v58 }
 0x13f   :  { %v5550_v1 = vpop.f32.mrf.mxu0 }
 0x140   :  { %6663 = vmatprep.mubr.bf16.mxu1 %v581_v63  ;;  %v5551_v7 = vadd.f32 %v5550_v1, %v5549_v62 }
 0x141   :  { %v5552_v2 = vpop.f32.mrf.mxu0  ;;  %6700 = vmatpush3.bf16.msra.mxu1 %v7254_v58 }
 0x142   :  { %6701 = vmatprep.subr.bf16.mxu1 %v7255_v0 }
 0x143   :  { %v5553_v6 = vpop.f32.mrf.mxu0 }
 0x144   :  { %v5554_v8 = vadd.f32 %v5553_v6, %v5552_v2 }
 0x145   :  { %v5555_v9 = vpop.f32.mrf.mxu0  ;;  %1366 = vmatmul.mubr.bf16.gmra.mxu0 %v7242_v3  ;;  %6702 = vmatpush3.bf16.msra.mxu1 %v7255_v0 }
 0x146   :  { %v582_v10 = vpack.c.bf16 %v5554_v8, %v5551_v7  ;;  %1373 = vmatprep.mubr.bf16.mxu0 %v7247_v4  ;;  %6735 = vmatprep.subr.bf16.mxu1 %v7733_v5 }
 0x147   :  { %v5556_v11 = vpop.f32.mrf.mxu0 }
 0x148   :  { %6664 = vmatmul.mubr.bf16.gmra.mxu1 %v582_v10  ;;  %v5557_v15 = vadd.f32 %v5556_v11, %v5555_v9 }
 0x149   :  { %v5558_v12 = vpop.f32.mrf.mxu0 }
 0x14b   :  { %v5559_v14 = vpop.f32.mrf.mxu0 }
 0x14c   :  { %v5560_v16 = vadd.f32 %v5559_v14, %v5558_v12 }
 0x14d   :  { %v5561_v17 = vpop.f32.mrf.mxu0  ;;  %1374 = vmatmul.mubr.bf16.gmra.mxu0 %v7245_v13 }
 0x14e   :  { %v583_v18 = vpack.c.bf16 %v5560_v16, %v5557_v15 }
 0x14f   :  { %v5562_v19 = vpop.f32.mrf.mxu0 }
 0x150   :  { %6667 = vmatprep.mubr.bf16.mxu1 %v583_v18  ;;  %v5563_v22 = vadd.f32 %v5562_v19, %v5561_v17 }
 0x151   :  { %v5564_v20 = vpop.f32.mrf.mxu0 }
 0x153   :  { %v5565_v21 = vpop.f32.mrf.mxu0 }
 0x154   :  { %v5566_v23 = vadd.f32 %v5565_v21, %v5564_v20  ;;  %v7742_v21 = vld [vmem:[#allocation5] sm:$0xff]  }
 0x155   :  { %v5567_v24 = vpop.f32.mrf.mxu0  ;;  %8912 = vst [vmem:[#allocation15_spill] sm:$0xff] %v7742_v21 }
 0x156   :  { %v584_v25 = vpack.c.bf16 %v5566_v23, %v5563_v22 }
 0x157   :  { %v5568_v26 = vpop.f32.mrf.mxu0 }
 0x158   :  { %6668 = vmatmul.mubr.bf16.gmra.mxu1 %v584_v25  ;;  %v5569_v29 = vadd.f32 %v5568_v26, %v5567_v24  ;;  %v7257_v24 = vld [vmem:[#allocation7 + $0xb0] sm:$0xff]   ;;  %v7751_v26 = vld [vmem:[#allocation5 + $0x8] sm:$0xff]  }
 0x159   :  { %v5570_v27 = vpop.f32.mrf.mxu0  ;;  %8913 = vst [vmem:[#allocation16_spill] sm:$0xff] %v7751_v26 }
 0x15b   :  { %v5571_v28 = vpop.f32.mrf.mxu0 }
 0x15c   :  { %v5572_v30 = vadd.f32 %v5571_v28, %v5570_v27  ;;  %v7756_v28 = vld [vmem:[#allocation5 + $0x10] sm:$0xff]  }
 0x15d   :  { %v5573_v31 = vpop.f32.mrf.mxu0  ;;  %8914 = vst [vmem:[#allocation17_spill] sm:$0xff] %v7756_v28 }
 0x15e   :  { %v585_v32 = vpack.c.bf16 %v5572_v30, %v5569_v29  ;;  %v7258_v29 = vld [vmem:[#allocation7 + $0xa8] sm:$0xff]  }
 0x15f   :  { %v5574_v33 = vpop.f32.mrf.mxu0 }
 0x160   :  { %6671 = vmatprep.mubr.bf16.mxu1 %v585_v32  ;;  %v5575_v36 = vadd.f32 %v5574_v33, %v5573_v31  ;;  %v7259_v32 = vld [vmem:[#allocation7 + $0xa0] sm:$0xff]  }
 0x161   :  { %v5576_v34 = vpop.f32.mrf.mxu0 }
 0x163   :  { %v5577_v35 = vpop.f32.mrf.mxu0 }
 0x164   :  { %v5578_v37 = vadd.f32 %v5577_v35, %v5576_v34  ;;  %v7766_v34 = vld [vmem:[#allocation5 + $0x18] sm:$0xff]  }
 0x165   :  { %v5579_v38 = vpop.f32.mrf.mxu0  ;;  %8915 = vst [vmem:[#allocation18_spill] sm:$0xff] %v7766_v34 }
 0x166   :  { %v586_v39 = vpack.c.bf16 %v5578_v37, %v5575_v36  ;;  %v7771_v36 = vld [vmem:[#allocation5 + $0x20] sm:$0xff]  }
 0x167   :  { %v5580_v40 = vpop.f32.mrf.mxu0 }
 0x168   :  { %6672 = vmatmul.mubr.bf16.gmra.mxu1 %v586_v39  ;;  %v5581_v43 = vadd.f32 %v5580_v40, %v5579_v38  ;;  %v7261_v39 = vld [vmem:[#allocation7 + $0x90] sm:$0xff]  }
 0x169   :  { %v5582_v41 = vpop.f32.mrf.mxu0 }
 0x16b   :  { %v5583_v42 = vpop.f32.mrf.mxu0 }
 0x16c   :  { %v5584_v44 = vadd.f32 %v5583_v42, %v5582_v41  ;;  %v7780_v41 = vld [vmem:[#allocation5 + $0x28] sm:$0xff]  }
 0x16d   :  { %v5585_v45 = vpop.f32.mrf.mxu0 }
 0x16e   :  { %v587_v46 = vpack.c.bf16 %v5584_v44, %v5581_v43  ;;  %v7785_v43 = vld [vmem:[#allocation5 + $0x30] sm:$0xff]   ;;  %v7262_v44 = vld [vmem:[#allocation7 + $0x88] sm:$0xff]  }
 0x16f   :  { %v5586_v47 = vpop.f32.mrf.mxu0 }
 0x170   :  { %6675 = vmatprep.mubr.bf16.mxu1 %v587_v46  ;;  %v5587_v50 = vadd.f32 %v5586_v47, %v5585_v45  ;;  %v7263_v47 = vld [vmem:[#allocation7 + $0x80] sm:$0xff]  }
 0x171   :  { %v5588_v48 = vpop.f32.mrf.mxu0 }
 0x173   :  { %v5589_v49 = vpop.f32.mrf.mxu0 }
 0x174   :  { %v5590_v51 = vadd.f32 %v5589_v49, %v5588_v48  ;;  %v7790_v49 = vld [vmem:[#allocation5 + $0x38] sm:$0xff]  }
 0x175   :  { %v5591_v52 = vpop.f32.mrf.mxu0 }
 0x176   :  { %v588_v53 = vpack.c.bf16 %v5590_v51, %v5587_v50  ;;  %v7793_v51 = vld [vmem:[#allocation5 + $0x40] sm:$0xff]  }
 0x177   :  { %v5592_v54 = vpop.f32.mrf.mxu0  ;;  %8916 = vst [vmem:[#allocation19_spill] sm:$0xff] %v7793_v51 }
 0x178   :  { %6676 = vmatmul.mubr.bf16.gmra.mxu1 %v588_v53  ;;  %v5593_v57 = vadd.f32 %v5592_v54, %v5591_v52  ;;  %v7798_v54 = vld [vmem:[#allocation5 + $0x78] sm:$0xff]  }
 0x179   :  { %v5594_v55 = vpop.f32.mrf.mxu0 }
 0x17b   :  { %v5595_v56 = vpop.f32.mrf.mxu0 }
 0x17c   :  { %v5596_v58 = vadd.f32 %v5595_v56, %v5594_v55  ;;  %v7803_v56 = vld [vmem:[#allocation5 + $0x48] sm:$0xff]  }
 0x17d   :  { %v5597_v59 = vpop.f32.mrf.mxu0  ;;  %8917 = vst [vmem:[#allocation20_spill] sm:$0xff] %v7803_v56 }
 0x17e   :  { %v589_v60 = vpack.c.bf16 %v5596_v58, %v5593_v57  ;;  %v7806_v58 = vld [vmem:[#allocation5 + $0x50] sm:$0xff]  }
 0x17f   :  { %v5598_v61 = vpop.f32.mrf.mxu0  ;;  %8918 = vst [vmem:[#allocation21_spill] sm:$0xff] %v7806_v58 }
 0x180   :  { %6679 = vmatprep.mubr.bf16.mxu1 %v589_v60  ;;  %v5599_v0 = vadd.f32 %v5598_v61, %v5597_v59 }
 0x181   :  { %v5600_v62 = vpop.f32.mrf.mxu0 }
 0x183   :  { %v5601_v63 = vpop.f32.mrf.mxu0 }
 0x184   :  { %v5602_v1 = vadd.f32 %v5601_v63, %v5600_v62  ;;  %v7809_v62 = vld [vmem:[#allocation5 + $0x58] sm:$0xff]  }
 0x185   :  { %v5603_v2 = vpop.f32.mrf.mxu0 }
 0x186   :  { %v590_v3 = vpack.c.bf16 %v5602_v1, %v5599_v0  ;;  %v7812_v0 = vld [vmem:[#allocation5 + $0x60] sm:$0xff]  }
 0x187   :  { %v5604_v4 = vpop.f32.mrf.mxu0 }
 0x188   :  { %6680 = vmatmul.mubr.bf16.gmra.mxu1 %v590_v3  ;;  %v5605_v8 = vadd.f32 %v5604_v4, %v5603_v2  ;;  %v7819_v4 = vld [vmem:[#allocation5 + $0x68] sm:$0xff]  }
 0x189   :  { %v5606_v6 = vpop.f32.mrf.mxu0 }
 0x18b   :  { %v5607_v7 = vpop.f32.mrf.mxu0 }
 0x18c   :  { %v5608_v9 = vadd.f32 %v5607_v7, %v5606_v6  ;;  %v7822_v7 = vld [vmem:[#allocation5 + $0x70] sm:$0xff]  }
 0x18d   :  { %v5609_v10 = vpop.f32.mrf.mxu0 }
 0x18e   :  { %v591_v11 = vpack.c.bf16 %v5608_v9, %v5605_v8 }
 0x18f   :  { %v5610_v12 = vpop.f32.mrf.mxu0 }
 0x190   :  { %6683 = vmatprep.mubr.bf16.mxu1 %v591_v11  ;;  %v5611_v15 = vadd.f32 %v5610_v12, %v5609_v10 }
 0x191   :  { %v5612_v13 = vpop.f32.mrf.mxu0 }
 0x193   :  { %v5613_v14 = vpop.f32.mrf.mxu0 }
 0x194   :  { %v5614_v16 = vadd.f32 %v5613_v14, %v5612_v13 }
 0x195   :  { %v7736_v17 = vpop.f32.mrf.mxu0 }
 0x196   :  { %v592_v18 = vpack.c.bf16 %v5614_v16, %v5611_v15 }
 0x197   :  { %v7738_v19 = vpop.f32.mrf.mxu0 }
 0x198   :  { %6684 = vmatmul.mubr.bf16.gmra.mxu1 %v592_v18  ;;  %v5681_v10 = vadd.f32 %v7738_v19, %v7736_v17 }
 0x199   :  { %v7740_v20 = vpop.f32.mrf.mxu0  ;;  %6703 = vmatprep.mubr.bf16.mxu1 %v7742_v21 }
 0x19b   :  { %v7745_v22 = vpop.f32.mrf.mxu0 }
 0x19c   :  { %v5684_v8 = vadd.f32 %v7745_v22, %v7740_v20 }
 0x19d   :  { %v7747_v23 = vpop.f32.mrf.mxu0 }
 0x19e   :  { %v1382_v12 = vpack.c.bf16 %v5684_v8, %v5681_v10 }
 0x19f   :  { %v7749_v25 = vpop.f32.mrf.mxu0 }
 0x1a0   :  { %6704 = vmatmul.mubr.bf16.vlgmr.msra.gmra.mxu1 %v7751_v26  ;;  %v5687_v20 = vadd.f32 %v7749_v25, %v7747_v23 }
 0x1a1   :  { %v7754_v27 = vpop.f32.mrf.mxu0  ;;  %6707 = vmatprep.mubr.bf16.mxu1 %v7756_v28  ;;  %6736 = vmatpush3.bf16.msra.mxu1 %v7733_v5  ;;  %v7260_v5 = vld [vmem:[#allocation7 + $0x98] sm:$0xff]  }
 0x1a2   :  { %6737 = vmatprep.subr.bf16.mxu1 %v7257_v24 }
 0x1a3   :  { %v7760_v30 = vpop.f32.mrf.mxu0 }
 0x1a4   :  { %v5690_v15 = vadd.f32 %v7760_v30, %v7754_v27 }
 0x1a5   :  { %v7762_v31 = vpop.f32.mrf.mxu0  ;;  %6738 = vmatpush3.bf16.msra.mxu1 %v7257_v24 }
 0x1a6   :  { %6739 = vmatprep.subr.bf16.mxu1 %v7258_v29  ;;  %v1383_v22 = vpack.c.bf16 %v5690_v15, %v5687_v20 }
 0x1a7   :  { %v7764_v33 = vpop.f32.mrf.mxu0 }
 0x1a8   :  { %6708 = vmatmul.mubr.bf16.gmra.mxu1 %v7766_v34  ;;  %v5693_v17 = vadd.f32 %v7764_v33, %v7762_v31 }
 0x1a9   :  { %v7769_v35 = vpop.f32.mrf.mxu0  ;;  %6711 = vmatprep.mubr.bf16.mxu1 %v7771_v36  ;;  %6740 = vmatpush3.bf16.msra.mxu1 %v7258_v29 }
 0x1aa   :  { %6741 = vmatprep.subr.bf16.mxu1 %v7259_v32 }
 0x1ab   :  { %v7774_v37 = vpop.f32.mrf.mxu0 }
 0x1ac   :  { %v5696_v16 = vadd.f32 %v7774_v37, %v7769_v35 }
 0x1ad   :  { %v7776_v38 = vpop.f32.mrf.mxu0  ;;  %6742 = vmatpush3.bf16.msra.mxu1 %v7259_v32 }
 0x1ae   :  { %6743 = vmatprep.subr.bf16.mxu1 %v7260_v5  ;;  %v1384_v24 = vpack.c.bf16 %v5696_v16, %v5693_v17 }
 0x1af   :  { %v7778_v40 = vpop.f32.mrf.mxu0 }
 0x1b0   :  { %6712 = vmatmul.mubr.bf16.gmra.mxu1 %v7780_v41  ;;  %v5699_v23 = vadd.f32 %v7778_v40, %v7776_v38 }
 0x1b1   :  { %v7783_v42 = vpop.f32.mrf.mxu0  ;;  %6715 = vmatprep.mubr.bf16.mxu1 %v7785_v43  ;;  %6744 = vmatpush3.bf16.msra.mxu1 %v7260_v5 }
 0x1b2   :  { %6745 = vmatprep.subr.bf16.mxu1 %v7261_v39 }
 0x1b3   :  { %v5701_v45 = vpop.f32.mrf.mxu0 }
 0x1b4   :  { %v5702_v27 = vadd.f32 %v5701_v45, %v7783_v42 }
 0x1b5   :  { %v7788_v46 = vpop.f32.mrf.mxu0  ;;  %6746 = vmatpush3.bf16.msra.mxu1 %v7261_v39 }
 0x1b6   :  { %6747 = vmatprep.subr.bf16.mxu1 %v7262_v44  ;;  %v1385_v33 = vpack.c.bf16 %v5702_v27, %v5699_v23 }
 0x1b7   :  { %v5704_v48 = vpop.f32.mrf.mxu0 }
 0x1b8   :  { %6716 = vmatmul.mubr.bf16.gmra.mxu1 %v7790_v49  ;;  %v5705_v25 = vadd.f32 %v5704_v48, %v7788_v46 }
 0x1b9   :  { %v5706_v50 = vpop.f32.mrf.mxu0  ;;  %6719 = vmatprep.mubr.bf16.mxu1 %v7793_v51  ;;  %6748 = vmatpush3.bf16.msra.mxu1 %v7262_v44 }
 0x1ba   :  { %6749 = vmatprep.subr.bf16.mxu1 %v7263_v47 }
 0x1bb   :  { %v5707_v52 = vpop.f32.mrf.mxu0 }
 0x1bc   :  { %v5708_v30 = vadd.f32 %v5707_v52, %v5706_v50 }
 0x1bd   :  { %v7796_v53 = vpop.f32.mrf.mxu0  ;;  %6750 = vmatpush3.bf16.msra.mxu1 %v7263_v47 }
 0x1be   :  { %5799 = vmatprep.subr.bf16.mxu1 %v7798_v54  ;;  %v1386_v5 = vpack.c.bf16 %v5708_v30, %v5705_v25 }
 0x1bf   :  { %v7801_v55 = vpop.f32.mrf.mxu0 }
 0x1c0   :  { %6720 = vmatmul.mubr.bf16.gmra.mxu1 %v7803_v56  ;;  %v5711_v40 = vadd.f32 %v7801_v55, %v7796_v53 }
 0x1c1   :  { %v5712_v57 = vpop.f32.mrf.mxu0  ;;  %6723 = vmatprep.mubr.bf16.mxu1 %v7806_v58 }
 0x1c3   :  { %v5713_v59 = vpop.f32.mrf.mxu0 }
 0x1c4   :  { %v5714_v42 = vadd.f32 %v5713_v59, %v5712_v57 }
 0x1c5   :  { %v5715_v60 = vpop.f32.mrf.mxu0 }
 0x1c6   :  { %v1387_v47 = vpack.c.bf16 %v5714_v42, %v5711_v40 }
 0x1c7   :  { %v5716_v61 = vpop.f32.mrf.mxu0 }
 0x1c8   :  { %6724 = vmatmul.mubr.bf16.gmra.mxu1 %v7809_v62  ;;  %v5717_v45 = vadd.f32 %v5716_v61, %v5715_v60 }
 0x1c9   :  { %v5718_v63 = vpop.f32.mrf.mxu0  ;;  %6727 = vmatprep.mubr.bf16.mxu1 %v7812_v0 }
 0x1cb   :  { %v5719_v1 = vpop.f32.mrf.mxu0 }
 0x1cc   :  { %v5720_v44 = vadd.f32 %v5719_v1, %v5718_v63 }
 0x1cd   :  { %v7815_v2 = vpop.f32.mrf.mxu0 }
 0x1ce   :  { %v1388_v48 = vpack.c.bf16 %v5720_v44, %v5717_v45 }
 0x1cf   :  { %v7817_v3 = vpop.f32.mrf.mxu0 }
 0x1d0   :  { %6728 = vmatmul.mubr.bf16.gmra.mxu1 %v7819_v4  ;;  %v5723_v53 = vadd.f32 %v7817_v3, %v7815_v2 }
 0x1d1   :  { %v5724_v6 = vpop.f32.mrf.mxu0  ;;  %6731 = vmatprep.mubr.bf16.mxu1 %v7822_v7 }
 0x1d3   :  { %v5725_v9 = vpop.f32.mrf.mxu0 }
 0x1d4   :  { %v5726_v57 = vadd.f32 %v5725_v9, %v5724_v6 }
 0x1d5   :  { %v5727_v11 = vpop.f32.mrf.mxu0 }
 0x1d6   :  { %v1389_v61 = vpack.c.bf16 %v5726_v57, %v5723_v53 }
 0x1d7   :  { %v5728_v13 = vpop.f32.mrf.mxu0 }
 0x1d8   :  { %6732 = vmatmul.mubr.bf16.gmra.mxu1 %v7798_v54  ;;  %v5729_v55 = vadd.f32 %v5728_v13, %v5727_v11 }
 0x1d9   :  { %v5730_v14 = vpop.f32.mrf.mxu0  ;;  %6751 = vmatprep.mubr.bf16.mxu1 %v1382_v12 }
 0x1db   :  { %v5731_v18 = vpop.f32.mrf.mxu0 }
 0x1dc   :  { %v5732_v59 = vadd.f32 %v5731_v18, %v5730_v14 }
 0x1dd   :  { %v5733_v19 = vpop.f32.mrf.mxu0 }
 0x1de   :  { %v1390_v8 = vpack.c.bf16 %v5732_v59, %v5729_v55  ;;  %v7266_v55 = vld [vmem:[#allocation2 + $0x204] ss:$8 sps:$4 sm:$0xff]  }
 0x1df   :  { %v5734_v29 = vpop.f32.mrf.mxu0 }
 0x1e0   :  { %6752 = vmatmul.mubr.bf16.vlgmr.msra.gmra.mxu1 %v1383_v22  ;;  %v5735_v11 = vadd.f32 %v5734_v29, %v5733_v19 }
 0x1e1   :  { %v5736_v32 = vpop.f32.mrf.mxu0  ;;  %6755 = vmatprep.mubr.bf16.mxu1 %v1384_v24  ;;  %5800 = vmatpush3.bf16.msra.mxu1 %v7790_v49 }
 0x1e2   :  { %5801 = vmatprep.subr.bf16.mxu1 %v7822_v7 }
 0x1e3   :  { %v5737_v35 = vpop.f32.mrf.mxu0 }
 0x1e4   :  { %v5738_v9 = vadd.f32 %v5737_v35, %v5736_v32 }
 0x1e5   :  { %v5739_v31 = vpop.f32.mrf.mxu0  ;;  %5802 = vmatpush3.bf16.msra.mxu1 %v7785_v43 }
 0x1e6   :  { %5803 = vmatprep.subr.bf16.mxu1 %v7819_v4  ;;  %v1391_v15 = vpack.c.bf16 %v5738_v9, %v5735_v11  ;;  %v7269_v11 = vld [vmem:[#allocation2 + $0x210] ss:$8 sps:$4 sm:$0xff]  }
 0x1e7   :  { %v5740_v37 = vpop.f32.mrf.mxu0 }
 0x1e8   :  { %6756 = vmatmul.mubr.bf16.gmra.mxu1 %v1385_v33  ;;  %v7857_v1 = vpop.f32.mrf.mxu1  ;;  %v5741_v13 = vadd.f32 %v5740_v37, %v5739_v31 }
 0x1e9   :  { %v5742_v39 = vpop.f32.mrf.mxu0  ;;  %6759 = vmatprep.mubr.bf16.mxu1 %v1386_v5  ;;  %5804 = vmatpush3.bf16.msra.mxu1 %v7780_v41 }
 0x1ea   :  { %5805 = vmatprep.subr.bf16.mxu1 %v7812_v0  ;;  %v7861_v12 = vpop.f32.mrf.mxu1 }
 0x1eb   :  { %v5743_v38 = vpop.f32.mrf.mxu0 }
 0x1ec   :  { %v5744_v2 = vadd.f32 %v5743_v38, %v5742_v39  ;;  %v7865_v16 = vpop.f32.mrf.mxu1 }
 0x1ed   :  { %v5745_v46 = vpop.f32.mrf.mxu0  ;;  %5806 = vmatpush3.bf16.msra.mxu1 %v7771_v36 }
 0x1ee   :  { %5807 = vmatprep.subr.bf16.mxu1 %v7809_v62  ;;  %v1392_v18 = vpack.c.bf16 %v5744_v2, %v5741_v13  ;;  %v7867_v22 = vpop.f32.mrf.mxu1  ;;  %v7270_v13 = vld [vmem:[#allocation2 + $0x224] ss:$8 sps:$4 sm:$0xff]  }
 0x1ef   :  { %v5746_v50 = vpop.f32.mrf.mxu0  ;;  %8919 = vst [vmem:[#allocation22_spill] sm:$0xff] %v7867_v22  ;;  %v7311_v22 = vld [vmem:[#allocation2 + $0x2f4] ss:$8 sps:$4 sm:$0xff]  }
 0x1f0   :  { %6760 = vmatmul.mubr.bf16.gmra.mxu1 %v1387_v47  ;;  %v5747_v30 = vadd.f32 %v5746_v50, %v5745_v46 }
 0x1f1   :  { %v5748_v52 = vpop.f32.mrf.mxu0  ;;  %6763 = vmatprep.mubr.bf16.mxu1 %v1388_v48  ;;  %5808 = vmatpush3.bf16.msra.mxu1 %v7766_v34 }
 0x1f2   :  { %5809 = vmatprep.subr.bf16.mxu1 %v7806_v58 }
 0x1f3   :  { %v5749_v63 = vpop.f32.mrf.mxu0 }
 0x1f4   :  { %v5750_v24 = vadd.f32 %v5749_v63, %v5748_v52 }
 0x1f5   :  { %v5751_v60 = vpop.f32.mrf.mxu0  ;;  %5810 = vmatpush3.bf16.msra.mxu1 %v7756_v28 }
 0x1f6   :  { %5811 = vmatprep.subr.bf16.mxu1 %v7803_v56  ;;  %v1393_v23 = vpack.c.bf16 %v5750_v24, %v5747_v30 }
 0x1f7   :  { %v5752_v10 = vpop.f32.mrf.mxu0 }
 0x1f8   :  { %6764 = vmatmul.mubr.bf16.gmra.mxu1 %v1389_v61  ;;  %v7869_v35 = vpop.f32.mrf.mxu1  ;;  %v5753_v19 = vadd.f32 %v5752_v10, %v5751_v60  ;;  %v7264_v10 = vld [vmem:[#allocation2 + $0x200] ss:$8 sps:$4 sm:$0xff]  }
 0x1f9   :  { %v5754_v6 = vpop.f32.mrf.mxu0  ;;  %6767 = vmatprep.mubr.bf16.mxu1 %v1390_v8  ;;  %5812 = vmatpush3.bf16.msra.mxu1 %v7751_v26 }
 0x1fa   :  { %5813 = vmatprep.subr.bf16.mxu1 %v7793_v51  ;;  %v7871_v33 = vpop.f32.mrf.mxu1 }
 0x1fb   :  { %v5755_v3 = vpop.f32.mrf.mxu0 }
 0x1fc   :  { %v5756_v32 = vadd.f32 %v5755_v3, %v5754_v6  ;;  %v7873_v42 = vpop.f32.mrf.mxu1  ;;  %v7267_v6 = vld [vmem:[#allocation2 + $0x214] ss:$8 sps:$4 sm:$0xff]  }
 0x1fd   :  { %v5757_v14 = vpop.f32.mrf.mxu0  ;;  %5814 = vmatpush3.bf16.msra.mxu1 %v7742_v21 }
 0x1fe   :  { %v1394_v25 = vpack.c.bf16 %v5756_v32, %v5753_v19  ;;  %v7875_v50 = vpop.f32.mrf.mxu1  ;;  %v7275_v32 = vld [vmem:[#allocation2 + $0x230] ss:$8 sps:$4 sm:$0xff]  }
 0x1ff   :  { %v5758_v20 = vpop.f32.mrf.mxu0  ;;  %8920 = vst [vmem:[#allocation23_spill] sm:$0xff] %v7875_v50 }
 0x200   :  { %6768 = vmatmul.mubr.bf16.gmra.mxu1 %v1391_v15  ;;  %v5759_v44 = vadd.f32 %v5758_v20, %v5757_v14  ;;  %v7273_v20 = vld [vmem:[#allocation2 + $0x234] ss:$8 sps:$4 sm:$0xff]  }
 0x201   :  { %v5760_v17 = vpop.f32.mrf.mxu0  ;;  %6771 = vmatprep.mubr.bf16.mxu1 %v1392_v18  ;;  %v7272_v18 = vld [vmem:[#allocation2 + $0x220] ss:$8 sps:$4 sm:$0xff]  }
 0x203   :  { %v5761_v27 = vpop.f32.mrf.mxu0 }
 0x204   :  { %v5762_v37 = vadd.f32 %v5761_v27, %v5760_v17  ;;  %v7278_v27 = vld [vmem:[#allocation2 + $0x244] ss:$8 sps:$4 sm:$0xff]  }
 0x205   :  { %v5763_v29 = vpop.f32.mrf.mxu0 }
 0x206   :  { %v1395_v46 = vpack.c.bf16 %v5762_v37, %v5759_v44  ;;  %v7279_v37 = vld [vmem:[#allocation2 + $0x250] ss:$8 sps:$4 sm:$0xff]  }
 0x207   :  { %v5764_v31 = vpop.f32.mrf.mxu0 }
 0x208   :  { %6772 = vmatmul.mubr.bf16.gmra.mxu1 %v1393_v23  ;;  %v5765_v38 = vadd.f32 %v5764_v31, %v5763_v29  ;;  %v7877_v57 = vpop.f32.mrf.mxu1  ;;  %v7276_v23 = vld [vmem:[#allocation2 + $0x240] ss:$8 sps:$4 sm:$0xff]  }
 0x209   :  { %v5766_v5 = vpop.f32.mrf.mxu0  ;;  %6775 = vmatprep.mubr.bf16.mxu1 %v1394_v25  ;;  %v7281_v25 = vld [vmem:[#allocation2 + $0x254] ss:$8 sps:$4 sm:$0xff]  }
 0x20a   :  { %v7879_v60 = vpop.f32.mrf.mxu1 }
 0x20b   :  { %v5767_v39 = vpop.f32.mrf.mxu0 }
 0x20c   :  { %v5768_v40 = vadd.f32 %v5767_v39, %v5766_v5  ;;  %v7881_v8 = vpop.f32.mrf.mxu1  ;;  %v7284_v39 = vld [vmem:[#allocation2 + $0x264] ss:$8 sps:$4 sm:$0xff]  }
 0x20d   :  { %v5769_v45 = vpop.f32.mrf.mxu0 }
 0x20e   :  { %v1396_v47 = vpack.c.bf16 %v5768_v40, %v5765_v38  ;;  %v7883_v9 = vpop.f32.mrf.mxu1  ;;  %v7312_v40 = vld [vmem:[#allocation7 + $0xf8] sm:$0xff]  }
 0x20f   :  { %v5770_v48 = vpop.f32.mrf.mxu0  ;;  %8921 = vst [vmem:[#allocation24_spill] sm:$0xff] %v7883_v9  ;;  %6783 = vmatprep.subr.bf16.mxu0 %v7312_v40 }
 0x210   :  { %6776 = vmatmul.mubr.bf16.gmra.mxu1 %v1395_v46  ;;  %v5771_v63 = vadd.f32 %v5770_v48, %v5769_v45  ;;  %v7282_v45 = vld [vmem:[#allocation2 + $0x260] ss:$8 sps:$4 sm:$0xff]   ;;  %v7287_v46 = vld [vmem:[#allocation2 + $0x274] ss:$8 sps:$4 sm:$0xff]   ;;  %6784 = vmatpush3.bf16.msra.mxu0 %v7312_v40 }
 0x211   :  { %v5772_v52 = vpop.f32.mrf.mxu0  ;;  %6779 = vmatprep.mubr.bf16.mxu1 %v1396_v47  ;;  %v7317_v40 = vld [vmem:[#allocation7 + $0xd0] sm:$0xff]  }
 0x213   :  { %v5773_v59 = vpop.f32.mrf.mxu0 }
 0x214   :  { %v5774_v53 = vadd.f32 %v5773_v59, %v5772_v52  ;;  %v7285_v52 = vld [vmem:[#allocation2 + $0x270] ss:$8 sps:$4 sm:$0xff]   ;;  %v7290_v59 = vld [vmem:[#allocation2 + $0x284] ss:$8 sps:$4 sm:$0xff]  }
 0x216   :  { %v1397_v61 = vpack.c.bf16 %v5774_v53, %v5771_v63  ;;  %v7313_v63 = vld [vmem:[#allocation7 + $0xf0] sm:$0xff]  }
 0x217   :  { %6785 = vmatprep.subr.bf16.mxu0 %v7313_v63 }
 0x218   :  { %6780 = vmatmul.mubr.bf16.gmra.mxu1 %v1397_v61  ;;  %v7885_v2 = vpop.f32.mrf.mxu1  ;;  %6786 = vmatpush3.bf16.msra.mxu0 %v7313_v63  ;;  %v7314_v61 = vld [vmem:[#allocation7 + $0xe8] sm:$0xff]  }
 0x219   :  { %1881 = vmatprep.mubr.bf16.mxu1 %v7266_v55  ;;  %6787 = vmatprep.subr.bf16.mxu0 %v7314_v61 }
 0x21a   :  { %v7887_v3 = vpop.f32.mrf.mxu1 }
 0x21c   :  { %v7889_v14 = vpop.f32.mrf.mxu1  ;;  %6788 = vmatpush3.bf16.msra.mxu0 %v7314_v61  ;;  %v7294_v61 = vld [vmem:[#allocation2 + $0x2a0] ss:$8 sps:$4 sm:$0xff]  }
 0x21e   :  { %v7891_v15 = vpop.f32.mrf.mxu1 }
 0x21f   :  { %8922 = vst [vmem:[#allocation25_spill] sm:$0xff] %v7891_v15 }
 0x220   :  { %1882 = vmatmul.mubr.bf16.vlgmr.msra.gmra.mxu1 %v7264_v10 }
 0x221   :  { %1889 = vmatprep.mubr.bf16.mxu1 %v7267_v6 }
 0x228   :  { %1890 = vmatmul.mubr.bf16.gmra.mxu1 %v7269_v11  ;;  %v7893_v17 = vpop.f32.mrf.mxu1  ;;  %v7288_v11 = vld [vmem:[#allocation2 + $0x280] ss:$8 sps:$4 sm:$0xff]  }
 0x229   :  { %1897 = vmatprep.mubr.bf16.mxu1 %v7270_v13  ;;  %v7293_v13 = vld [vmem:[#allocation2 + $0x294] ss:$8 sps:$4 sm:$0xff]  }
 0x22a   :  { %v7895_v24 = vpop.f32.mrf.mxu1 }
 0x22c   :  { %v7897_v30 = vpop.f32.mrf.mxu1 }
 0x22e   :  { %v7899_v19 = vpop.f32.mrf.mxu1 }
 0x22f   :  { %8923 = vst [vmem:[#allocation26_spill] sm:$0xff] %v7899_v19  ;;  %v7302_v19 = vld [vmem:[#allocation2 + $0x2c4] ss:$8 sps:$4 sm:$0xff]  }
 0x230   :  { %1898 = vmatmul.mubr.bf16.gmra.mxu1 %v7272_v18  ;;  %v7315_v18 = vld [vmem:[#allocation7 + $0xe0] sm:$0xff]  }
 0x231   :  { %1905 = vmatprep.mubr.bf16.mxu1 %v7273_v20  ;;  %6789 = vmatprep.subr.bf16.mxu0 %v7315_v18 }
 0x232   :  { %6790 = vmatpush3.bf16.msra.mxu0 %v7315_v18 }
 0x238   :  { %1906 = vmatmul.mubr.bf16.gmra.mxu1 %v7275_v32  ;;  %v7901_v29 = vpop.f32.mrf.mxu1 }
 0x239   :  { %1913 = vmatprep.mubr.bf16.mxu1 %v7278_v27  ;;  %v7316_v27 = vld [vmem:[#allocation7 + $0xd8] sm:$0xff]  }
 0x23a   :  { %v7903_v31 = vpop.f32.mrf.mxu1  ;;  %6791 = vmatprep.subr.bf16.mxu0 %v7316_v27 }
 0x23b   :  { %6792 = vmatpush3.bf16.msra.mxu0 %v7316_v27 }
 0x23c   :  { %v7905_v5 = vpop.f32.mrf.mxu1  ;;  %6793 = vmatprep.subr.bf16.mxu0 %v7317_v40 }
 0x23e   :  { %v7907_v44 = vpop.f32.mrf.mxu1 }
 0x23f   :  { %8924 = vst [vmem:[#allocation27_spill] sm:$0xff] %v7907_v44  ;;  %6794 = vmatpush3.bf16.msra.mxu0 %v7317_v40  ;;  %v7297_v40 = vld [vmem:[#allocation2 + $0x2b0] ss:$8 sps:$4 sm:$0xff]  }
 0x240   :  { %1914 = vmatmul.mubr.bf16.gmra.mxu1 %v7276_v23 }
 0x241   :  { %1921 = vmatprep.mubr.bf16.mxu1 %v7281_v25 }
 0x248   :  { %1922 = vmatmul.mubr.bf16.gmra.mxu1 %v7279_v37  ;;  %v7909_v38 = vpop.f32.mrf.mxu1  ;;  %v7291_v37 = vld [vmem:[#allocation2 + $0x290] ss:$8 sps:$4 sm:$0xff]  }
 0x249   :  { %1929 = vmatprep.mubr.bf16.mxu1 %v7284_v39  ;;  %v7296_v39 = vld [vmem:[#allocation2 + $0x2a4] ss:$8 sps:$4 sm:$0xff]  }
 0x24a   :  { %v7911_v47 = vpop.f32.mrf.mxu1 }
 0x24c   :  { %v7913_v48 = vpop.f32.mrf.mxu1 }
 0x24e   :  { %v7915_v53 = vpop.f32.mrf.mxu1 }
 0x24f   :  { %8925 = vst [vmem:[#allocation28_spill] sm:$0xff] %v7915_v53 }
 0x250   :  { %1930 = vmatmul.mubr.bf16.gmra.mxu1 %v7282_v45 }
 0x251   :  { %1937 = vmatprep.mubr.bf16.mxu1 %v7287_v46 }
 0x258   :  { %v7917_v55 = vpop.f32.mrf.mxu1  ;;  %1938 = vmatmul.mubr.bf16.gmra.mxu1 %v7285_v52  ;;  %v7318_v52 = vld [vmem:[#allocation7 + $0xc8] sm:$0xff]  }
 0x259   :  { %1945 = vmatprep.mubr.bf16.mxu1 %v7290_v59  ;;  %6795 = vmatprep.subr.bf16.mxu0 %v7318_v52 }
 0x25a   :  { %v7919_v10 = vpop.f32.mrf.mxu1  ;;  %6796 = vmatpush3.bf16.msra.mxu0 %v7318_v52 }
 0x25c   :  { %v7921_v6 = vpop.f32.mrf.mxu1 }
 0x25e   :  { %v7923_v20 = vpop.f32.mrf.mxu1 }
 0x25f   :  { %8926 = vst [vmem:[#allocation29_spill] sm:$0xff] %v7923_v20 }
 0x260   :  { %v7925_v32 = vpop.f32.mrf.mxu1  ;;  %1946 = vmatmul.mubr.bf16.gmra.mxu1 %v7288_v11  ;;  %v7299_v11 = vld [vmem:[#allocation2 + $0x2b4] ss:$8 sps:$4 sm:$0xff]  }
 0x261   :  { %1953 = vmatprep.mubr.bf16.mxu1 %v7293_v13  ;;  %v7319_v13 = vld [vmem:[#allocation7 + $0xc0] sm:$0xff]   ;;  %v910_v58 = vadd.f32 %v7925_v32, %v7857_v1 }
 0x262   :  { %v7927_v23 = vpop.f32.mrf.mxu1  ;;  %6797 = vmatprep.subr.bf16.mxu0 %v7319_v13 }
 0x263   :  { %6798 = vmatpush3.bf16.msra.mxu0 %v7319_v13 }
 0x264   :  { %v7929_v25 = vpop.f32.mrf.mxu1  ;;  %5935 = vmatprep.subr.bf16.mxu0 %v7798_v54 }
 0x266   :  { %v7931_v45 = vpop.f32.mrf.mxu1 }
 0x267   :  { %8927 = vst [vmem:[#allocation30_spill] sm:$0xff] %v7931_v45 }
 0x268   :  { %v7933_v46 = vpop.f32.mrf.mxu1  ;;  %1954 = vmatmul.mubr.bf16.gmra.mxu1 %v7291_v37 }
 0x269   :  { %1961 = vmatprep.mubr.bf16.mxu1 %v7296_v39  ;;  %v926_v1 = vadd.f32 %v7933_v46, %v7869_v35 }
 0x26a   :  { %v7935_v59 = vpop.f32.mrf.mxu1 }
 0x26c   :  { %v7937_v63 = vpop.f32.mrf.mxu1 }
 0x26e   :  { %v7939_v18 = vpop.f32.mrf.mxu1 }
 0x26f   :  { %8928 = vst [vmem:[#allocation31_spill] sm:$0xff] %v7939_v18  ;;  %v7308_v18 = vld [vmem:[#allocation2 + $0x2e4] ss:$8 sps:$4 sm:$0xff]  }
 0x270   :  { %v7941_v27 = vpop.f32.mrf.mxu1  ;;  %1962 = vmatmul.mubr.bf16.gmra.mxu1 %v7294_v61  ;;  %v7300_v61 = vld [vmem:[#allocation2 + $0x2c0] ss:$8 sps:$4 sm:$0xff]  }
 0x271   :  { %1969 = vmatprep.mubr.bf16.mxu1 %v7299_v11  ;;  %v7305_v11 = vld [vmem:[#allocation2 + $0x2d4] ss:$8 sps:$4 sm:$0xff]   ;;  %v942_v35 = vadd.f32 %v7941_v27, %v7877_v57 }
 0x272   :  { %v7944_v37 = vpop.f32.mrf.mxu1 }
 0x274   :  { %v7946_v39 = vpop.f32.mrf.mxu1 }
 0x276   :  { %v7948_v44 = vpop.f32.mrf.mxu1 }
 0x277   :  { %8929 = vst [vmem:[#allocation32_spill] sm:$0xff] %v7948_v44  ;;  %v7303_v44 = vld [vmem:[#allocation2 + $0x2d0] ss:$8 sps:$4 sm:$0xff]  }
 0x278   :  { %v7950_v52 = vpop.f32.mrf.mxu1  ;;  %1970 = vmatmul.mubr.bf16.gmra.mxu1 %v7297_v40 }
 0x279   :  { %1977 = vmatprep.mubr.bf16.mxu1 %v7302_v19  ;;  %v958_v57 = vadd.f32 %v7950_v52, %v7885_v2 }
 0x27a   :  { %v7952_v20 = vpop.f32.mrf.mxu1 }
 0x27c   :  { %v7954_v53 = vpop.f32.mrf.mxu1 }
 0x27e   :  { %v7956_v13 = vpop.f32.mrf.mxu1 }
 0x27f   :  { %8930 = vst [vmem:[#allocation33_spill] sm:$0xff] %v7956_v13  ;;  %v7306_v13 = vld [vmem:[#allocation2 + $0x2e0] ss:$8 sps:$4 sm:$0xff]  }
 0x280   :  { %v7958_v54 = vpop.f32.mrf.mxu1  ;;  %1978 = vmatmul.mubr.bf16.gmra.mxu1 %v7300_v61 }
 0x281   :  { %1985 = vmatprep.mubr.bf16.mxu1 %v7305_v11  ;;  %v974_v2 = vadd.f32 %v7958_v54, %v7893_v17 }
 0x282   :  { %v7960_v15 = vpop.f32.mrf.mxu1 }
 0x284   :  { %v7962_v9 = vpop.f32.mrf.mxu1 }
 0x286   :  { %v7964_v40 = vpop.f32.mrf.mxu1 }
 0x287   :  { %8931 = vst [vmem:[#allocation34_spill] sm:$0xff] %v7964_v40  ;;  %v7309_v40 = vld [vmem:[#allocation2 + $0x2f0] ss:$8 sps:$4 sm:$0xff]  }
 0x288   :  { %v7966_v19 = vpop.f32.mrf.mxu1  ;;  %1986 = vmatmul.mubr.bf16.gmra.mxu1 %v7303_v44 }
 0x289   :  { %1993 = vmatprep.mubr.bf16.mxu1 %v7308_v18  ;;  %v990_v17 = vadd.f32 %v7966_v19, %v7901_v29 }
 0x28a   :  { %v7968_v50 = vpop.f32.mrf.mxu1 }
 0x28c   :  { %v7970_v45 = vpop.f32.mrf.mxu1 }
 0x28e   :  { %v7972_v61 = vpop.f32.mrf.mxu1 }
 0x28f   :  { %8932 = vst [vmem:[#allocation35_spill] sm:$0xff] %v7972_v61 }
 0x290   :  { %v7974_v11 = vpop.f32.mrf.mxu1  ;;  %1994 = vmatmul.mubr.bf16.gmra.mxu1 %v7306_v13 }
 0x291   :  { %2001 = vmatprep.mubr.bf16.mxu1 %v7311_v22  ;;  %v1006_v29 = vadd.f32 %v7974_v11, %v7909_v38 }
 0x292   :  { %v7976_v21 = vpop.f32.mrf.mxu1 }
 0x294   :  { %v7978_v51 = vpop.f32.mrf.mxu1 }
 0x296   :  { %v7980_v26 = vpop.f32.mrf.mxu1 }
 0x297   :  { %8933 = vst [vmem:[#allocation36_spill] sm:$0xff] %v7980_v26 }
 0x298   :  { %v6733_v44 = vpop.f32.mrf.mxu1  ;;  %2002 = vmatmul.mubr.bf16.gmra.mxu1 %v7309_v40  ;;  %v902_v40 = vadd.f32 %v7927_v23, %v7861_v12  ;;  %v918_v12 = vadd.f32 %v7935_v59, %v7871_v33  ;;  %v934_v33 = vadd.f32 %v7944_v37, %v7879_v60  ;;  %v950_v60 = vadd.f32 %v7952_v20, %v7887_v3 }
 0x299   :  { %v7983_v18 = vadd.f32 %v6733_v44, %v7917_v55  ;;  %v966_v3 = vadd.f32 %v7960_v15, %v7895_v24  ;;  %v982_v15 = vadd.f32 %v7968_v50, %v7903_v31  ;;  %v998_v50 = vadd.f32 %v7976_v21, %v7911_v47 }
 0x29a   :  { %v1013_v56 = vpop.f32.mrf.mxu1 }
 0x29b   :  { %v7986_v28 = vadd.f32 %v1013_v56, %v7919_v10  ;;  %v913_v56 = vadd.f32 %v7929_v25, %v7865_v16  ;;  %v929_v16 = vadd.f32 %v7937_v63, %v7873_v42  ;;  %v945_v42 = vadd.f32 %v7946_v39, %v7881_v8 }
 0x29c   :  { %v6734_v61 = vpop.f32.mrf.mxu1  ;;  %v961_v8 = vadd.f32 %v7954_v53, %v7889_v14  ;;  %v977_v14 = vadd.f32 %v7962_v9, %v7897_v30  ;;  %v993_v9 = vadd.f32 %v7970_v45, %v7905_v5  ;;  %v1009_v5 = vadd.f32 %v7978_v51, %v7913_v48 }
 0x29d   :  { %v7989_v13 = vadd.f32 %v6734_v61, %v7921_v6 }
 0x29e   :  { %v7991_v22 = vpop.f32.mrf.mxu1 }
 0x2a0   :  { %v6753_v34 = vpop.f32.mrf.mxu1 }
 0x2a1   :  { %v7997_v26 = vadd.f32 %v6753_v34, %v910_v58 }
 0x2a2   :  { %v1497_v55 = vpop.f32.mrf.mxu1 }
 0x2a3   :  { %v8001_v10 = vadd.f32 %v1497_v55, %v902_v40 }
 0x2a4   :  { %v6754_v44 = vpop.f32.mrf.mxu1 }
 0x2a5   :  { %v8003_v6 = vadd.f32 %v6754_v44, %v913_v56 }
 0x2a6   :  { %v8005_v61 = vpop.f32.mrf.mxu1 }
 0x2a8   :  { %v6757_v32 = vpop.f32.mrf.mxu1 }
 0x2a9   :  { %v8011_v34 = vadd.f32 %v6757_v32, %v926_v1 }
 0x2aa   :  { %v1513_v58 = vpop.f32.mrf.mxu1 }
 0x2ab   :  { %v8015_v23 = vadd.f32 %v1513_v58, %v918_v12 }
 0x2ac   :  { %v6758_v25 = vpop.f32.mrf.mxu1 }
 0x2ad   :  { %v8017_v40 = vadd.f32 %v6758_v25, %v929_v16 }
 0x2ae   :  { %v8019_v55 = vpop.f32.mrf.mxu1 }
 0x2b0   :  { %v6761_v46 = vpop.f32.mrf.mxu1 }
 0x2b1   :  { %v8025_v59 = vadd.f32 %v6761_v46, %v942_v35 }
 0x2b2   :  { %v1529_v56 = vpop.f32.mrf.mxu1 }
 0x2b3   :  { %v8029_v63 = vadd.f32 %v1529_v56, %v934_v33 }
 0x2b4   :  { %v6762_v44 = vpop.f32.mrf.mxu1 }
 0x2b5   :  { %v8031_v1 = vadd.f32 %v6762_v44, %v945_v42 }
 0x2b6   :  { %v8033_v32 = vpop.f32.mrf.mxu1 }
 0x2b8   :  { %v6765_v27 = vpop.f32.mrf.mxu1 }
 0x2b9   :  { %v8039_v37 = vadd.f32 %v6765_v27, %v958_v57 }
 0x2ba   :  { %v1545_v12 = vpop.f32.mrf.mxu1 }
 0x2bb   :  { %v8043_v39 = vadd.f32 %v1545_v12, %v950_v60 }
 0x2bc   :  { %v6766_v58 = vpop.f32.mrf.mxu1 }
 0x2bd   :  { %v8045_v16 = vadd.f32 %v6766_v58, %v961_v8 }
 0x2be   :  { %v8047_v25 = vpop.f32.mrf.mxu1 }
 0x2c0   :  { %v6769_v52 = vpop.f32.mrf.mxu1 }
 0x2c1   :  { %v8053_v20 = vadd.f32 %v6769_v52, %v974_v2 }
 0x2c2   :  { %v1561_v35 = vpop.f32.mrf.mxu1 }
 0x2c3   :  { %v8057_v53 = vadd.f32 %v1561_v35, %v966_v3 }
 0x2c4   :  { %v6770_v46 = vpop.f32.mrf.mxu1 }
 0x2c5   :  { %v8059_v33 = vadd.f32 %v6770_v46, %v977_v14 }
 0x2c6   :  { %v8061_v56 = vpop.f32.mrf.mxu1 }
 0x2c8   :  { %v6773_v54 = vpop.f32.mrf.mxu1 }
 0x2c9   :  { %v8067_v24 = vadd.f32 %v6773_v54, %v990_v17 }
 0x2ca   :  { %v1577_v42 = vpop.f32.mrf.mxu1 }
 0x2cb   :  { %v8071_v30 = vadd.f32 %v1577_v42, %v982_v15 }
 0x2cc   :  { %v6774_v44 = vpop.f32.mrf.mxu1 }
 0x2cd   :  { %v8073_v57 = vadd.f32 %v6774_v44, %v993_v9 }
 0x2ce   :  { %v8075_v27 = vpop.f32.mrf.mxu1 }
 0x2d0   :  { %v6777_v19 = vpop.f32.mrf.mxu1 }
 0x2d1   :  { %v8081_v31 = vadd.f32 %v6777_v19, %v1006_v29 }
 0x2d2   :  { %v1593_v60 = vpop.f32.mrf.mxu1 }
 0x2d3   :  { %v8085_v45 = vadd.f32 %v1593_v60, %v998_v50 }
 0x2d4   :  { %v6778_v12 = vpop.f32.mrf.mxu1 }
 0x2d5   :  { %v8087_v8 = vadd.f32 %v6778_v12, %v1009_v5 }
 0x2d6   :  { %v8089_v58 = vpop.f32.mrf.mxu1 }
 0x2d8   :  { %v6781_v2 = vpop.f32.mrf.mxu1 }
 0x2d9   :  { %v8092_v38 = vadd.f32 %v6781_v2, %v7983_v18 }
 0x2da   :  { %v1609_v11 = vpop.f32.mrf.mxu1 }
 0x2db   :  { %v8095_v21 = vadd.f32 %v1609_v11, %v7986_v28 }
 0x2dc   :  { %v6782_v47 = vpop.f32.mrf.mxu1 }
 0x2dd   :  { %v8098_v52 = vadd.f32 %v6782_v47, %v7989_v13 }
 0x2de   :  { %v8100_v51 = vpop.f32.mrf.mxu1 }
 0x2e0   :  { %v5815_v48 = vpop.f32.mrf.mxu1 }
 0x2e2   :  { %v5816_v3 = vpop.f32.mrf.mxu1 }
 0x2e3   :  { %v5817_v46 = vadd.f32 %v5816_v3, %v5815_v48 }
 0x2e4   :  { %v5818_v35 = vpop.f32.mrf.mxu1 }
 0x2e6   :  { %v5819_v14 = vpop.f32.mrf.mxu1 }
 0x2e7   :  { %v5820_v17 = vadd.f32 %v5819_v14, %v5818_v35 }
 0x2e8   :  { %v5821_v54 = vpop.f32.mrf.mxu1 }
 0x2e9   :  { %v2010_v15 = vpack.c.bf16 %v5820_v17, %v5817_v46  ;;  %v8935_v17 = vld [vmem:[#allocation21_spill] sm:$0xff] }
 0x2ea   :  { %v5822_v18 = vpop.f32.mrf.mxu1 }
 0x2eb   :  { %6799 = vmatprep.mubr.bf16.mxu0 %v2010_v15  ;;  %v5823_v28 = vadd.f32 %v5822_v18, %v5821_v54  ;;  %v8936_v18 = vld [vmem:[#allocation17_spill] sm:$0xff] }
 0x2ec   :  { %v5824_v42 = vpop.f32.mrf.mxu1 }
 0x2ee   :  { %v5825_v9 = vpop.f32.mrf.mxu1 }
 0x2ef   :  { %v5826_v44 = vadd.f32 %v5825_v9, %v5824_v42  ;;  %v8937_v9 = vld [vmem:[#allocation20_spill] sm:$0xff] }
 0x2f0   :  { %v5827_v29 = vpop.f32.mrf.mxu1 }
 0x2f1   :  { %v2011_v19 = vpack.c.bf16 %v5826_v44, %v5823_v28  ;;  %v8939_v44 = vld [vmem:[#allocation19_spill] sm:$0xff] }
 0x2f2   :  { %v5828_v13 = vpop.f32.mrf.mxu1 }
 0x2f3   :  { %6800 = vmatmul.mubr.bf16.vlgmr.msra.gmra.mxu0 %v2011_v19  ;;  %v5829_v5 = vadd.f32 %v5828_v13, %v5827_v29 }
 0x2f4   :  { %v5830_v50 = vpop.f32.mrf.mxu1  ;;  %5936 = vmatpush3.bf16.msra.mxu0 %v7790_v49 }
 0x2f5   :  { %5937 = vmatprep.subr.bf16.mxu0 %v7822_v7 }
 0x2f6   :  { %v5831_v60 = vpop.f32.mrf.mxu1 }
 0x2f7   :  { %v5832_v12 = vadd.f32 %v5831_v60, %v5830_v50  ;;  %v8940_v60 = vld [vmem:[#allocation15_spill] sm:$0xff] }
 0x2f8   :  { %v5833_v2 = vpop.f32.mrf.mxu1  ;;  %5938 = vmatpush3.bf16.msra.mxu0 %v7785_v43 }
 0x2f9   :  { %v2012_v11 = vpack.c.bf16 %v5832_v12, %v5829_v5  ;;  %5939 = vmatprep.subr.bf16.mxu0 %v7819_v4  ;;  %v8934_v4 = vld [vmem:[#allocation18_spill] sm:$0xff] }
 0x2fa   :  { %v5834_v47 = vpop.f32.mrf.mxu1 }
 0x2fb   :  { %6803 = vmatprep.mubr.bf16.mxu0 %v2012_v11  ;;  %v5835_v49 = vadd.f32 %v5834_v47, %v5833_v2 }
 0x2fc   :  { %v5836_v48 = vpop.f32.mrf.mxu1  ;;  %5940 = vmatpush3.bf16.msra.mxu0 %v7780_v41 }
 0x2fd   :  { %5941 = vmatprep.subr.bf16.mxu0 %v7812_v0 }
 0x2fe   :  { %v5837_v3 = vpop.f32.mrf.mxu1 }
 0x2ff   :  { %v5838_v35 = vadd.f32 %v5837_v3, %v5836_v48 }
 0x300   :  { %v5839_v7 = vpop.f32.mrf.mxu1  ;;  %5942 = vmatpush3.bf16.msra.mxu0 %v7771_v36 }
 0x301   :  { %v2013_v14 = vpack.c.bf16 %v5838_v35, %v5835_v49  ;;  %5943 = vmatprep.subr.bf16.mxu0 %v7809_v62  ;;  %v8938_v62 = vld [vmem:[#allocation16_spill] sm:$0xff] }
 0x302   :  { %v5840_v43 = vpop.f32.mrf.mxu1 }
 0x303   :  { %6804 = vmatmul.mubr.bf16.gmra.mxu0 %v2013_v14  ;;  %v5841_v41 = vadd.f32 %v5840_v43, %v5839_v7 }
 0x304   :  { %v5842_v46 = vpop.f32.mrf.mxu1  ;;  %5944 = vmatpush3.bf16.msra.mxu0 %v8934_v4 }
 0x305   :  { %5945 = vmatprep.subr.bf16.mxu0 %v8935_v17 }
 0x306   :  { %v5843_v54 = vpop.f32.mrf.mxu1 }
 0x307   :  { %v5844_v15 = vadd.f32 %v5843_v54, %v5842_v46 }
 0x308   :  { %v5845_v0 = vpop.f32.mrf.mxu1  ;;  %5946 = vmatpush3.bf16.msra.mxu0 %v8936_v18 }
 0x309   :  { %v2014_v42 = vpack.c.bf16 %v5844_v15, %v5841_v41  ;;  %5947 = vmatprep.subr.bf16.mxu0 %v8937_v9 }
 0x30a   :  { %v5846_v36 = vpop.f32.mrf.mxu1 }
 0x30b   :  { %6807 = vmatprep.mubr.bf16.mxu0 %v2014_v42  ;;  %v5847_v19 = vadd.f32 %v5846_v36, %v5845_v0 }
 0x30c   :  { %v5848_v28 = vpop.f32.mrf.mxu1  ;;  %5948 = vmatpush3.bf16.msra.mxu0 %v8938_v62 }
 0x30d   :  { %5949 = vmatprep.subr.bf16.mxu0 %v8939_v44 }
 0x30e   :  { %v5849_v29 = vpop.f32.mrf.mxu1 }
 0x30f   :  { %v5850_v13 = vadd.f32 %v5849_v29, %v5848_v28 }
 0x310   :  { %v5851_v50 = vpop.f32.mrf.mxu1  ;;  %5950 = vmatpush3.bf16.msra.mxu0 %v8940_v60 }
 0x311   :  { %v2015_v5 = vpack.c.bf16 %v5850_v13, %v5847_v19 }
 0x312   :  { %v5852_v12 = vpop.f32.mrf.mxu1 }
 0x313   :  { %6808 = vmatmul.mubr.bf16.gmra.mxu0 %v2015_v5  ;;  %v5853_v47 = vadd.f32 %v5852_v12, %v5851_v50 }
 0x314   :  { %v5854_v2 = vpop.f32.mrf.mxu1 }
 0x316   :  { %v5855_v11 = vpop.f32.mrf.mxu1 }
 0x317   :  { %v5856_v48 = vadd.f32 %v5855_v11, %v5854_v2 }
 0x318   :  { %v5857_v3 = vpop.f32.mrf.mxu1 }
 0x319   :  { %v2016_v49 = vpack.c.bf16 %v5856_v48, %v5853_v47 }
 0x31a   :  { %v5858_v35 = vpop.f32.mrf.mxu1 }
 0x31b   :  { %6811 = vmatprep.mubr.bf16.mxu0 %v2016_v49  ;;  %v5859_v43 = vadd.f32 %v5858_v35, %v5857_v3 }
 0x31c   :  { %v5860_v7 = vpop.f32.mrf.mxu1 }
 0x31e   :  { %v5861_v14 = vpop.f32.mrf.mxu1 }
 0x31f   :  { %v5862_v46 = vadd.f32 %v5861_v14, %v5860_v7 }
 0x320   :  { %v5863_v4 = vpop.f32.mrf.mxu1 }
 0x321   :  { %v2017_v17 = vpack.c.bf16 %v5862_v46, %v5859_v43 }
 0x322   :  { %v5864_v54 = vpop.f32.mrf.mxu1 }
 0x323   :  { %6812 = vmatmul.mubr.bf16.gmra.mxu0 %v2017_v17  ;;  %v5865_v0 = vadd.f32 %v5864_v54, %v5863_v4 }
 0x324   :  { %v5866_v41 = vpop.f32.mrf.mxu1 }
 0x326   :  { %v5867_v15 = vpop.f32.mrf.mxu1 }
 0x327   :  { %v5868_v18 = vadd.f32 %v5867_v15, %v5866_v41 }
 0x328   :  { %v5869_v42 = vpop.f32.mrf.mxu1 }
 0x329   :  { %v2018_v9 = vpack.c.bf16 %v5868_v18, %v5865_v0 }
 0x32a   :  { %v5870_v36 = vpop.f32.mrf.mxu1 }
 0x32b   :  { %6815 = vmatprep.mubr.bf16.mxu0 %v2018_v9  ;;  %v5871_v44 = vadd.f32 %v5870_v36, %v5869_v42 }
 0x32c   :  { %v5872_v28 = vpop.f32.mrf.mxu1 }
 0x32e   :  { %v5873_v62 = vpop.f32.mrf.mxu1 }
 0x32f   :  { %v5874_v29 = vadd.f32 %v5873_v62, %v5872_v28 }
 0x330   :  { %v5875_v19 = vpop.f32.mrf.mxu1 }
 0x331   :  { %v2019_v13 = vpack.c.bf16 %v5874_v29, %v5871_v44 }
 0x332   :  { %v5876_v50 = vpop.f32.mrf.mxu1 }
 0x333   :  { %6816 = vmatmul.mubr.bf16.gmra.mxu0 %v2019_v13  ;;  %v5877_v12 = vadd.f32 %v5876_v50, %v5875_v19 }
 0x334   :  { %v5878_v60 = vpop.f32.mrf.mxu1 }
 0x336   :  { %v5879_v5 = vpop.f32.mrf.mxu1 }
 0x337   :  { %v5880_v2 = vadd.f32 %v5879_v5, %v5878_v60 }
 0x338   :  { %v5881_v11 = vpop.f32.mrf.mxu1 }
 0x339   :  { %v2020_v47 = vpack.c.bf16 %v5880_v2, %v5877_v12 }
 0x33a   :  { %v5882_v48 = vpop.f32.mrf.mxu1 }
 0x33b   :  { %6819 = vmatprep.mubr.bf16.mxu0 %v2020_v47  ;;  %v5883_v35 = vadd.f32 %v5882_v48, %v5881_v11 }
 0x33c   :  { %v5884_v3 = vpop.f32.mrf.mxu1 }
 0x33e   :  { %v5885_v49 = vpop.f32.mrf.mxu1 }
 0x33f   :  { %v5886_v7 = vadd.f32 %v5885_v49, %v5884_v3  ;;  %v7322_v49 = vld [vmem:[#allocation2 + $0x304] ss:$8 sps:$4 sm:$0xff]  }
 0x340   :  { %v5887_v14 = vpop.f32.mrf.mxu1 }
 0x341   :  { %v2021_v43 = vpack.c.bf16 %v5886_v7, %v5883_v35  ;;  %v7320_v7 = vld [vmem:[#allocation2 + $0x300] ss:$8 sps:$4 sm:$0xff]  }
 0x342   :  { %v5888_v46 = vpop.f32.mrf.mxu1 }
 0x343   :  { %6820 = vmatmul.mubr.bf16.gmra.mxu0 %v2021_v43  ;;  %v5889_v54 = vadd.f32 %v5888_v46, %v5887_v14  ;;  %v7325_v14 = vld [vmem:[#allocation2 + $0x314] ss:$8 sps:$4 sm:$0xff]   ;;  %v7323_v43 = vld [vmem:[#allocation2 + $0x310] ss:$8 sps:$4 sm:$0xff]   ;;  %v7328_v46 = vld [vmem:[#allocation2 + $0x324] ss:$8 sps:$4 sm:$0xff]  }
 0x344   :  { %v5890_v4 = vpop.f32.mrf.mxu1 }
 0x346   :  { %v5891_v17 = vpop.f32.mrf.mxu1 }
 0x347   :  { %v5892_v41 = vadd.f32 %v5891_v17, %v5890_v4  ;;  %v7326_v4 = vld [vmem:[#allocation2 + $0x320] ss:$8 sps:$4 sm:$0xff]   ;;  %v7331_v17 = vld [vmem:[#allocation2 + $0x334] ss:$8 sps:$4 sm:$0xff]  }
 0x348   :  { %v5893_v15 = vpop.f32.mrf.mxu1 }
 0x349   :  { %v2022_v0 = vpack.c.bf16 %v5892_v41, %v5889_v54  ;;  %v7329_v54 = vld [vmem:[#allocation2 + $0x330] ss:$8 sps:$4 sm:$0xff]   ;;  %v7334_v41 = vld [vmem:[#allocation2 + $0x344] ss:$8 sps:$4 sm:$0xff]  }
 0x34a   :  { %v5894_v18 = vpop.f32.mrf.mxu1 }
 0x34b   :  { %6823 = vmatprep.mubr.bf16.mxu0 %v2022_v0  ;;  %v5895_v36 = vadd.f32 %v5894_v18, %v5893_v15  ;;  %v7332_v15 = vld [vmem:[#allocation2 + $0x340] ss:$8 sps:$4 sm:$0xff]   ;;  %v7337_v0 = vld [vmem:[#allocation2 + $0x354] ss:$8 sps:$4 sm:$0xff]   ;;  %v7335_v18 = vld [vmem:[#allocation2 + $0x350] ss:$8 sps:$4 sm:$0xff]  }
 0x34c   :  { %v5896_v42 = vpop.f32.mrf.mxu1 }
 0x34e   :  { %v5897_v9 = vpop.f32.mrf.mxu1 }
 0x34f   :  { %v5898_v28 = vadd.f32 %v5897_v9, %v5896_v42  ;;  %v7340_v42 = vld [vmem:[#allocation2 + $0x364] ss:$8 sps:$4 sm:$0xff]   ;;  %v7368_v9 = vld [vmem:[#allocation7 + $0x138] sm:$0xff]  }
 0x350   :  { %v5899_v62 = vpop.f32.mrf.mxu1  ;;  %6831 = vmatprep.subr.bf16.mxu1 %v7368_v9 }
 0x351   :  { %v2023_v44 = vpack.c.bf16 %v5898_v28, %v5895_v36  ;;  %v7338_v36 = vld [vmem:[#allocation2 + $0x360] ss:$8 sps:$4 sm:$0xff]   ;;  %v7343_v28 = vld [vmem:[#allocation2 + $0x374] ss:$8 sps:$4 sm:$0xff]   ;;  %6832 = vmatpush3.bf16.msra.mxu1 %v7368_v9 }
 0x352   :  { %v5900_v29 = vpop.f32.mrf.mxu1  ;;  %v7361_v9 = vld [vmem:[#allocation2 + $0x3d4] ss:$8 sps:$4 sm:$0xff]  }
 0x353   :  { %6824 = vmatmul.mubr.bf16.gmra.mxu0 %v2023_v44  ;;  %v5901_v50 = vadd.f32 %v5900_v29, %v5899_v62  ;;  %v7369_v62 = vld [vmem:[#allocation7 + $0x130] sm:$0xff]   ;;  %v7346_v29 = vld [vmem:[#allocation2 + $0x384] ss:$8 sps:$4 sm:$0xff]  }
 0x354   :  { %v5902_v19 = vpop.f32.mrf.mxu1  ;;  %6833 = vmatprep.subr.bf16.mxu1 %v7369_v62  ;;  %v7341_v44 = vld [vmem:[#allocation2 + $0x370] ss:$8 sps:$4 sm:$0xff]  }
 0x355   :  { %6834 = vmatpush3.bf16.msra.mxu1 %v7369_v62 }
 0x356   :  { %v5903_v13 = vpop.f32.mrf.mxu1 }
 0x357   :  { %v5904_v60 = vadd.f32 %v5903_v13, %v5902_v19  ;;  %v7370_v19 = vld [vmem:[#allocation7 + $0x128] sm:$0xff]  }
 0x358   :  { %v5905_v5 = vpop.f32.mrf.mxu1  ;;  %6835 = vmatprep.subr.bf16.mxu1 %v7370_v19  ;;  %v7344_v13 = vld [vmem:[#allocation2 + $0x380] ss:$8 sps:$4 sm:$0xff]  }
 0x359   :  { %v2024_v12 = vpack.c.bf16 %v5904_v60, %v5901_v50  ;;  %6836 = vmatpush3.bf16.msra.mxu1 %v7370_v19  ;;  %v7349_v50 = vld [vmem:[#allocation2 + $0x394] ss:$8 sps:$4 sm:$0xff]   ;;  %v7371_v60 = vld [vmem:[#allocation7 + $0x120] sm:$0xff]  }
 0x35a   :  { %v5906_v2 = vpop.f32.mrf.mxu1  ;;  %6837 = vmatprep.subr.bf16.mxu1 %v7371_v60 }
 0x35b   :  { %6827 = vmatprep.mubr.bf16.mxu0 %v2024_v12  ;;  %v5907_v48 = vadd.f32 %v5906_v2, %v5905_v5  ;;  %v7372_v5 = vld [vmem:[#allocation7 + $0x118] sm:$0xff]   ;;  %v7352_v2 = vld [vmem:[#allocation2 + $0x3a4] ss:$8 sps:$4 sm:$0xff]  }
 0x35c   :  { %v5908_v11 = vpop.f32.mrf.mxu1  ;;  %v7347_v12 = vld [vmem:[#allocation2 + $0x390] ss:$8 sps:$4 sm:$0xff]  }
 0x35d   :  { %6838 = vmatpush3.bf16.msra.mxu1 %v7371_v60  ;;  %v7365_v60 = vld [vmem:[#allocation2 + $0x3f0] ss:$8 sps:$4 sm:$0xff]  }
 0x35e   :  { %v5909_v47 = vpop.f32.mrf.mxu1  ;;  %6839 = vmatprep.subr.bf16.mxu1 %v7372_v5 }
 0x35f   :  { %v5910_v3 = vadd.f32 %v5909_v47, %v5908_v11  ;;  %v7373_v11 = vld [vmem:[#allocation7 + $0x110] sm:$0xff]  }
 0x361   :  { %v2025_v35 = vpack.c.bf16 %v5910_v3, %v5907_v48  ;;  %6840 = vmatpush3.bf16.msra.mxu1 %v7372_v5  ;;  %v7374_v3 = vld [vmem:[#allocation7 + $0x108] sm:$0xff]  }
 0x362   :  { %6841 = vmatprep.subr.bf16.mxu1 %v7373_v11 }
 0x363   :  { %6828 = vmatmul.mubr.bf16.gmra.mxu0 %v2025_v35 }
 0x364   :  { %2509 = vmatprep.mubr.bf16.mxu0 %v7322_v49 }
 0x365   :  { %6842 = vmatpush3.bf16.msra.mxu1 %v7373_v11 }
 0x366   :  { %6843 = vmatprep.subr.bf16.mxu1 %v7374_v3 }
 0x369   :  { %6844 = vmatpush3.bf16.msra.mxu1 %v7374_v3 }
 0x36b   :  { %2510 = vmatmul.mubr.bf16.vlgmr.msra.gmra.mxu0 %v7320_v7 }
 0x36c   :  { %2517 = vmatprep.mubr.bf16.mxu0 %v7325_v14  ;;  %v7350_v14 = vld [vmem:[#allocation2 + $0x3a0] ss:$8 sps:$4 sm:$0xff]  }
 0x373   :  { %2518 = vmatmul.mubr.bf16.gmra.mxu0 %v7323_v43 }
 0x374   :  { %2525 = vmatprep.mubr.bf16.mxu0 %v7328_v46  ;;  %v7355_v46 = vld [vmem:[#allocation2 + $0x3b4] ss:$8 sps:$4 sm:$0xff]  }
 0x37b   :  { %2526 = vmatmul.mubr.bf16.gmra.mxu0 %v7326_v4  ;;  %v7375_v4 = vld [vmem:[#allocation7 + $0x100] sm:$0xff]  }
 0x37c   :  { %2533 = vmatprep.mubr.bf16.mxu0 %v7331_v17  ;;  %6845 = vmatprep.subr.bf16.mxu1 %v7375_v4  ;;  %v7358_v17 = vld [vmem:[#allocation2 + $0x3c4] ss:$8 sps:$4 sm:$0xff]  }
 0x37d   :  { %6846 = vmatpush3.bf16.msra.mxu1 %v7375_v4 }
 0x383   :  { %2534 = vmatmul.mubr.bf16.gmra.mxu0 %v7329_v54 }
 0x384   :  { %2541 = vmatprep.mubr.bf16.mxu0 %v7334_v41 }
 0x38b   :  { %2542 = vmatmul.mubr.bf16.gmra.mxu0 %v7332_v15 }
 0x38c   :  { %2549 = vmatprep.mubr.bf16.mxu0 %v7337_v0 }
 0x393   :  { %2550 = vmatmul.mubr.bf16.gmra.mxu0 %v7335_v18  ;;  %v7356_v18 = vld [vmem:[#allocation2 + $0x3c0] ss:$8 sps:$4 sm:$0xff]  }
 0x394   :  { %2557 = vmatprep.mubr.bf16.mxu0 %v7340_v42 }
 0x39b   :  { %2558 = vmatmul.mubr.bf16.gmra.mxu0 %v7338_v36  ;;  %v7359_v36 = vld [vmem:[#allocation2 + $0x3d0] ss:$8 sps:$4 sm:$0xff]  }
 0x39c   :  { %2565 = vmatprep.mubr.bf16.mxu0 %v7343_v28  ;;  %v7364_v28 = vld [vmem:[#allocation2 + $0x3e4] ss:$8 sps:$4 sm:$0xff]  }
 0x3a3   :  { %2566 = vmatmul.mubr.bf16.gmra.mxu0 %v7341_v44 }
 0x3a4   :  { %2573 = vmatprep.mubr.bf16.mxu0 %v7346_v29 }
 0x3ab   :  { %2574 = vmatmul.mubr.bf16.gmra.mxu0 %v7344_v13 }
 0x3ac   :  { %2581 = vmatprep.mubr.bf16.mxu0 %v7349_v50  ;;  %v7367_v50 = vld [vmem:[#allocation2 + $0x3f4] ss:$8 sps:$4 sm:$0xff]  }
 0x3b3   :  { %v6801_v47 = vpop.f32.mrf.mxu0  ;;  %2582 = vmatmul.mubr.bf16.gmra.mxu0 %v7347_v12 }
 0x3b4   :  { %v8118_v48 = vadd.f32 %v6801_v47, %v7997_v26  ;;  %2589 = vmatprep.mubr.bf16.mxu0 %v7352_v2  ;;  %v7353_v26 = vld [vmem:[#allocation2 + $0x3b0] ss:$8 sps:$4 sm:$0xff]  }
 0x3b5   :  { %v2125_v49 = vpop.f32.mrf.mxu0 }
 0x3b6   :  { %v8121_v35 = vadd.f32 %v2125_v49, %v8001_v10 }
 0x3b7   :  { %v6802_v7 = vpop.f32.mrf.mxu0 }
 0x3b8   :  { %v8124_v43 = vadd.f32 %v6802_v7, %v8003_v6 }
 0x3b9   :  { %v8126_v54 = vpop.f32.mrf.mxu0 }
 0x3bb   :  { %2590 = vmatmul.mubr.bf16.gmra.mxu0 %v7350_v14 }
 0x3bc   :  { %2597 = vmatprep.mubr.bf16.mxu0 %v7355_v46 }
 0x3c3   :  { %v6805_v41 = vpop.f32.mrf.mxu0  ;;  %2598 = vmatmul.mubr.bf16.gmra.mxu0 %v7353_v26 }
 0x3c4   :  { %v8129_v10 = vadd.f32 %v6805_v41, %v8011_v34  ;;  %2605 = vmatprep.mubr.bf16.mxu0 %v7358_v17 }
 0x3c5   :  { %v2141_v15 = vpop.f32.mrf.mxu0 }
 0x3c6   :  { %v8132_v6 = vadd.f32 %v2141_v15, %v8015_v23 }
 0x3c7   :  { %v6806_v0 = vpop.f32.mrf.mxu0 }
 0x3c8   :  { %v8135_v42 = vadd.f32 %v6806_v0, %v8017_v40  ;;  %v7362_v40 = vld [vmem:[#allocation2 + $0x3e0] ss:$8 sps:$4 sm:$0xff]  }
 0x3c9   :  { %v8137_v62 = vpop.f32.mrf.mxu0 }
 0x3cb   :  { %2606 = vmatmul.mubr.bf16.gmra.mxu0 %v7356_v18 }
 0x3cc   :  { %2613 = vmatprep.mubr.bf16.mxu0 %v7361_v9 }
 0x3d3   :  { %v6809_v44 = vpop.f32.mrf.mxu0  ;;  %2614 = vmatmul.mubr.bf16.gmra.mxu0 %v7359_v36 }
 0x3d4   :  { %v8140_v34 = vadd.f32 %v6809_v44, %v8025_v59  ;;  %2621 = vmatprep.mubr.bf16.mxu0 %v7364_v28 }
 0x3d5   :  { %v2157_v23 = vpop.f32.mrf.mxu0 }
 0x3d6   :  { %v8143_v29 = vadd.f32 %v2157_v23, %v8029_v63 }
 0x3d7   :  { %v6810_v19 = vpop.f32.mrf.mxu0 }
 0x3d8   :  { %v8146_v13 = vadd.f32 %v6810_v19, %v8031_v1 }
 0x3d9   :  { %v8148_v5 = vpop.f32.mrf.mxu0 }
 0x3db   :  { %2622 = vmatmul.mubr.bf16.gmra.mxu0 %v7362_v40 }
 0x3dc   :  { %2629 = vmatprep.mubr.bf16.mxu0 %v7367_v50 }
 0x3e3   :  { %v6813_v12 = vpop.f32.mrf.mxu0  ;;  %2630 = vmatmul.mubr.bf16.gmra.mxu0 %v7365_v60 }
 0x3e4   :  { %v8151_v59 = vadd.f32 %v6813_v12, %v8039_v37 }
 0x3e5   :  { %v2173_v2 = vpop.f32.mrf.mxu0 }
 0x3e6   :  { %v8154_v63 = vadd.f32 %v2173_v2, %v8043_v39 }
 0x3e7   :  { %v6814_v11 = vpop.f32.mrf.mxu0 }
 0x3e8   :  { %v8157_v47 = vadd.f32 %v6814_v11, %v8045_v16 }
 0x3e9   :  { %v8159_v1 = vpop.f32.mrf.mxu0 }
 0x3f3   :  { %v6817_v3 = vpop.f32.mrf.mxu0 }
 0x3f4   :  { %v8162_v49 = vadd.f32 %v6817_v3, %v8053_v20 }
 0x3f5   :  { %v2189_v7 = vpop.f32.mrf.mxu0 }
 0x3f6   :  { %v8165_v14 = vadd.f32 %v2189_v7, %v8057_v53 }
 0x3f7   :  { %v6818_v37 = vpop.f32.mrf.mxu0 }
 0x3f8   :  { %v8168_v46 = vadd.f32 %v6818_v37, %v8059_v33 }
 0x3f9   :  { %v8170_v39 = vpop.f32.mrf.mxu0 }
 0x403   :  { %v6821_v4 = vpop.f32.mrf.mxu0 }
 0x404   :  { %v8173_v16 = vadd.f32 %v6821_v4, %v8067_v24 }
 0x405   :  { %v2205_v26 = vpop.f32.mrf.mxu0 }
 0x406   :  { %v8176_v17 = vadd.f32 %v2205_v26, %v8071_v30 }
 0x407   :  { %v6822_v20 = vpop.f32.mrf.mxu0 }
 0x408   :  { %v8179_v41 = vadd.f32 %v6822_v20, %v8073_v57 }
 0x409   :  { %v8181_v53 = vpop.f32.mrf.mxu0 }
 0x413   :  { %v6825_v15 = vpop.f32.mrf.mxu0 }
 0x414   :  { %v8184_v33 = vadd.f32 %v6825_v15, %v8081_v31 }
 0x415   :  { %v2221_v0 = vpop.f32.mrf.mxu0 }
 0x416   :  { %v8187_v18 = vadd.f32 %v2221_v0, %v8085_v45 }
 0x417   :  { %v6826_v24 = vpop.f32.mrf.mxu0 }
 0x418   :  { %v8190_v9 = vadd.f32 %v6826_v24, %v8087_v8 }
 0x419   :  { %v8192_v30 = vpop.f32.mrf.mxu0 }
 0x423   :  { %v6829_v36 = vpop.f32.mrf.mxu0 }
 0x424   :  { %v8195_v57 = vadd.f32 %v6829_v36, %v8092_v38 }
 0x425   :  { %v2237_v28 = vpop.f32.mrf.mxu0 }
 0x426   :  { %v8198_v44 = vadd.f32 %v2237_v28, %v8095_v21 }
 0x427   :  { %v6830_v31 = vpop.f32.mrf.mxu0 }
 0x428   :  { %v8201_v23 = vadd.f32 %v6830_v31, %v8098_v52 }
 0x429   :  { %v8203_v45 = vpop.f32.mrf.mxu0 }
 0x42b   :  { %v5951_v19 = vpop.f32.mrf.mxu0 }
 0x42d   :  { %v5952_v40 = vpop.f32.mrf.mxu0 }
 0x42e   :  { %v5953_v60 = vadd.f32 %v5952_v40, %v5951_v19 }
 0x42f   :  { %v5954_v8 = vpop.f32.mrf.mxu0 }
 0x431   :  { %v5955_v50 = vpop.f32.mrf.mxu0 }
 0x432   :  { %v5956_v12 = vadd.f32 %v5955_v50, %v5954_v8 }
 0x433   :  { %v5957_v2 = vpop.f32.mrf.mxu0 }
 0x434   :  { %v2638_v11 = vpack.c.bf16 %v5956_v12, %v5953_v60 }
 0x435   :  { %v5958_v38 = vpop.f32.mrf.mxu0 }
 0x436   :  { %6847 = vmatprep.mubr.bf16.mxu1 %v2638_v11  ;;  %v5959_v21 = vadd.f32 %v5958_v38, %v5957_v2 }
 0x437   :  { %v5960_v3 = vpop.f32.mrf.mxu0 }
 0x439   :  { %v5961_v7 = vpop.f32.mrf.mxu0 }
 0x43a   :  { %v5962_v37 = vadd.f32 %v5961_v7, %v5960_v3 }
 0x43b   :  { %v5963_v4 = vpop.f32.mrf.mxu0 }
 0x43c   :  { %v2639_v26 = vpack.c.bf16 %v5962_v37, %v5959_v21 }
 0x43d   :  { %v5964_v52 = vpop.f32.mrf.mxu0 }
 0x43e   :  { %6848 = vmatmul.mubr.bf16.vlgmr.msra.gmra.mxu1 %v2639_v26  ;;  %v5965_v0 = vadd.f32 %v5964_v52, %v5963_v4 }
 0x43f   :  { %v5966_v20 = vpop.f32.mrf.mxu0 }
 0x441   :  { %v5967_v15 = vpop.f32.mrf.mxu0 }
 0x442   :  { %v5968_v24 = vadd.f32 %v5967_v15, %v5966_v20 }
 0x443   :  { %v5969_v36 = vpop.f32.mrf.mxu0 }
 0x444   :  { %v2640_v28 = vpack.c.bf16 %v5968_v24, %v5965_v0 }
 0x445   :  { %v5970_v31 = vpop.f32.mrf.mxu0 }
 0x446   :  { %6851 = vmatprep.mubr.bf16.mxu1 %v2640_v28  ;;  %v5971_v8 = vadd.f32 %v5970_v31, %v5969_v36 }
 0x447   :  { %v5972_v19 = vpop.f32.mrf.mxu0 }
 0x449   :  { %v5973_v40 = vpop.f32.mrf.mxu0 }
 0x44a   :  { %v5974_v50 = vadd.f32 %v5973_v40, %v5972_v19 }
 0x44b   :  { %v5975_v60 = vpop.f32.mrf.mxu0 }
 0x44c   :  { %v2641_v12 = vpack.c.bf16 %v5974_v50, %v5971_v8 }
 0x44d   :  { %v5976_v2 = vpop.f32.mrf.mxu0 }
 0x44e   :  { %6852 = vmatmul.mubr.bf16.gmra.mxu1 %v2641_v12  ;;  %v5977_v3 = vadd.f32 %v5976_v2, %v5975_v60 }
 0x44f   :  { %v5978_v11 = vpop.f32.mrf.mxu0 }
 0x451   :  { %v5979_v38 = vpop.f32.mrf.mxu0 }
 0x452   :  { %v5980_v7 = vadd.f32 %v5979_v38, %v5978_v11 }
 0x453   :  { %v5981_v21 = vpop.f32.mrf.mxu0 }
 0x454   :  { %v2642_v37 = vpack.c.bf16 %v5980_v7, %v5977_v3 }
 0x455   :  { %v5982_v4 = vpop.f32.mrf.mxu0 }
 0x456   :  { %6855 = vmatprep.mubr.bf16.mxu1 %v2642_v37  ;;  %v5983_v20 = vadd.f32 %v5982_v4, %v5981_v21 }
 0x457   :  { %v5984_v26 = vpop.f32.mrf.mxu0 }
 0x459   :  { %v5985_v52 = vpop.f32.mrf.mxu0 }
 0x45a   :  { %v5986_v15 = vadd.f32 %v5985_v52, %v5984_v26 }
 0x45b   :  { %v5987_v0 = vpop.f32.mrf.mxu0 }
 0x45c   :  { %v2643_v24 = vpack.c.bf16 %v5986_v15, %v5983_v20 }
 0x45d   :  { %v5988_v36 = vpop.f32.mrf.mxu0 }
 0x45e   :  { %6856 = vmatmul.mubr.bf16.gmra.mxu1 %v2643_v24  ;;  %v5989_v19 = vadd.f32 %v5988_v36, %v5987_v0 }
 0x45f   :  { %v5990_v28 = vpop.f32.mrf.mxu0 }
 0x461   :  { %v5991_v31 = vpop.f32.mrf.mxu0 }
 0x462   :  { %v5992_v40 = vadd.f32 %v5991_v31, %v5990_v28 }
 0x463   :  { %v5993_v8 = vpop.f32.mrf.mxu0 }
 0x464   :  { %v2644_v50 = vpack.c.bf16 %v5992_v40, %v5989_v19 }
 0x465   :  { %v5994_v60 = vpop.f32.mrf.mxu0 }
 0x466   :  { %6859 = vmatprep.mubr.bf16.mxu1 %v2644_v50  ;;  %v5995_v11 = vadd.f32 %v5994_v60, %v5993_v8 }
 0x467   :  { %v5996_v12 = vpop.f32.mrf.mxu0 }
 0x469   :  { %v5997_v2 = vpop.f32.mrf.mxu0 }
 0x46a   :  { %v5998_v38 = vadd.f32 %v5997_v2, %v5996_v12 }
 0x46b   :  { %v5999_v3 = vpop.f32.mrf.mxu0 }
 0x46c   :  { %v2645_v7 = vpack.c.bf16 %v5998_v38, %v5995_v11 }
 0x46d   :  { %v6000_v21 = vpop.f32.mrf.mxu0 }
 0x46e   :  { %6860 = vmatmul.mubr.bf16.gmra.mxu1 %v2645_v7  ;;  %v6001_v26 = vadd.f32 %v6000_v21, %v5999_v3 }
 0x46f   :  { %v6002_v37 = vpop.f32.mrf.mxu0 }
 0x471   :  { %v6003_v4 = vpop.f32.mrf.mxu0 }
 0x472   :  { %v6004_v52 = vadd.f32 %v6003_v4, %v6002_v37 }
 0x473   :  { %v6005_v20 = vpop.f32.mrf.mxu0 }
 0x474   :  { %v2646_v15 = vpack.c.bf16 %v6004_v52, %v6001_v26 }
 0x475   :  { %v6006_v0 = vpop.f32.mrf.mxu0 }
 0x476   :  { %6863 = vmatprep.mubr.bf16.mxu1 %v2646_v15  ;;  %v6007_v28 = vadd.f32 %v6006_v0, %v6005_v20 }
 0x477   :  { %v6008_v24 = vpop.f32.mrf.mxu0 }
 0x479   :  { %v6009_v36 = vpop.f32.mrf.mxu0 }
 0x47a   :  { %v6010_v31 = vadd.f32 %v6009_v36, %v6008_v24 }
 0x47b   :  { %v6011_v19 = vpop.f32.mrf.mxu0 }
 0x47c   :  { %v2647_v40 = vpack.c.bf16 %v6010_v31, %v6007_v28 }
 0x47d   :  { %v6012_v8 = vpop.f32.mrf.mxu0 }
 0x47e   :  { %6864 = vmatmul.mubr.bf16.gmra.mxu1 %v2647_v40  ;;  %v6013_v12 = vadd.f32 %v6012_v8, %v6011_v19 }
 0x47f   :  { %v6014_v50 = vpop.f32.mrf.mxu0 }
 0x481   :  { %v6015_v60 = vpop.f32.mrf.mxu0 }
 0x482   :  { %v6016_v2 = vadd.f32 %v6015_v60, %v6014_v50 }
 0x483   :  { %v6017_v11 = vpop.f32.mrf.mxu0 }
 0x484   :  { %v2648_v38 = vpack.c.bf16 %v6016_v2, %v6013_v12 }
 0x485   :  { %v6018_v3 = vpop.f32.mrf.mxu0 }
 0x486   :  { %6867 = vmatprep.mubr.bf16.mxu1 %v2648_v38  ;;  %v6019_v37 = vadd.f32 %v6018_v3, %v6017_v11 }
 0x487   :  { %v6020_v7 = vpop.f32.mrf.mxu0 }
 0x489   :  { %v6021_v21 = vpop.f32.mrf.mxu0 }
 0x48a   :  { %v6022_v4 = vadd.f32 %v6021_v21, %v6020_v7 }
 0x48b   :  { %v6023_v26 = vpop.f32.mrf.mxu0 }
 0x48c   :  { %v2649_v52 = vpack.c.bf16 %v6022_v4, %v6019_v37 }
 0x48d   :  { %v6024_v20 = vpop.f32.mrf.mxu0 }
 0x48e   :  { %6868 = vmatmul.mubr.bf16.gmra.mxu1 %v2649_v52  ;;  %v6025_v24 = vadd.f32 %v6024_v20, %v6023_v26 }
 0x48f   :  { %v6026_v15 = vpop.f32.mrf.mxu0 }
 0x491   :  { %v6027_v0 = vpop.f32.mrf.mxu0 }
 0x492   :  { %v6028_v36 = vadd.f32 %v6027_v0, %v6026_v15 }
 0x493   :  { %v6029_v28 = vpop.f32.mrf.mxu0 }
 0x494   :  { %v2650_v31 = vpack.c.bf16 %v6028_v36, %v6025_v24  ;;  %v7432_v36 = vld [vmem:[#allocation2 + $0x4] ss:$8 sps:$4 sm:$0xff]  }
 0x495   :  { %v6030_v19 = vpop.f32.mrf.mxu0 }
 0x496   :  { %6871 = vmatprep.mubr.bf16.mxu1 %v2650_v31  ;;  %v6031_v50 = vadd.f32 %v6030_v19, %v6029_v28  ;;  %v8941_v31 = vld [vmem:[#allocation22_spill] sm:$0xff] }
 0x497   :  { %v6032_v40 = vpop.f32.mrf.mxu0  ;;  %v8942_v19 = vld [vmem:[#allocation30_spill] sm:$0xff] }
 0x499   :  { %v6033_v8 = vpop.f32.mrf.mxu0 }
 0x49a   :  { %v6034_v60 = vadd.f32 %v6033_v8, %v6032_v40  ;;  %v905_v40 = vadd.f32 %v8942_v19, %v8941_v31 }
 0x49b   :  { %v6035_v12 = vpop.f32.mrf.mxu0 }
 0x49c   :  { %v2651_v2 = vpack.c.bf16 %v6034_v60, %v6031_v50  ;;  %v1625_v60 = vadd.f32 %v8005_v61, %v905_v40 }
 0x49d   :  { %v6036_v11 = vpop.f32.mrf.mxu0 }
 0x49e   :  { %6872 = vmatmul.mubr.bf16.gmra.mxu1 %v2651_v2  ;;  %v6037_v7 = vadd.f32 %v6036_v11, %v6035_v12  ;;  %v8213_v2 = vld [vmem:[%s8890_s3] ss:$0 sm:$0xff] }
 0x49f   :  { %v6038_v38 = vpop.f32.mrf.mxu0 }
 0x4a1   :  { %v6039_v3 = vpop.f32.mrf.mxu0 }
 0x4a2   :  { %v6040_v21 = vadd.f32 %v6039_v3, %v6038_v38  ;;  %v2253_v38 = vadd.f32 %v8126_v54, %v1625_v60 }
 0x4a3   :  { %v6041_v37 = vpop.f32.mrf.mxu0 }
 0x4a4   :  { %v2652_v4 = vpack.c.bf16 %v6040_v21, %v6037_v7 }
 0x4a5   :  { %v6042_v26 = vpop.f32.mrf.mxu0 }
 0x4a6   :  { %6875 = vmatprep.mubr.bf16.mxu1 %v2652_v4  ;;  %v6043_v15 = vadd.f32 %v6042_v26, %v6041_v37 }
 0x4a7   :  { %v6044_v52 = vpop.f32.mrf.mxu0 }
 0x4a9   :  { %v6045_v20 = vpop.f32.mrf.mxu0 }
 0x4aa   :  { %v6046_v0 = vadd.f32 %v6045_v20, %v6044_v52  ;;  %v8945_v20 = vld [vmem:[#allocation23_spill] sm:$0xff] }
 0x4ac   :  { %v2653_v24 = vpack.c.bf16 %v6046_v0, %v6043_v15  ;;  %v8946_v15 = vld [vmem:[#allocation31_spill] sm:$0xff] }
 0x4ad   :  { %v921_v54 = vadd.f32 %v8946_v15, %v8945_v20 }
 0x4ae   :  { %6876 = vmatmul.mubr.bf16.gmra.mxu1 %v2653_v24 }
 0x4af   :  { %3015 = vmatprep.mubr.bf16.mxu1 %v7432_v36  ;;  %v1629_v24 = vadd.f32 %v8019_v55, %v921_v54 }
 0x4b1   :  { %v2257_v31 = vadd.f32 %v8137_v62, %v1629_v24 }
 0x4fe   :  { %v6849_v28 = vpop.f32.mrf.mxu1 }
 0x4ff   :  { %v2882_v8 = vadd.f32 %v6849_v28, %v8118_v48 }
 0x500   :  { %v2753_v50 = vpop.f32.mrf.mxu1 }
 0x501   :  { %v2880_v12 = vadd.f32 %v2753_v50, %v8121_v35  ;;  %v2921_v21 = vadd.f32 %v8213_v2, %v2882_v8 }
 0x502   :  { %v6850_v11 = vpop.f32.mrf.mxu1 }
 0x503   :  { %v2883_v3 = vadd.f32 %v6850_v11, %v8124_v43  ;;  %v2919_v61 = vadd.f32 %v8213_v2, %v2880_v12 }
 0x504   :  { %v2756_v7 = vpop.f32.mrf.mxu1 }
 0x505   :  { %v2922_v48 = vadd.f32 %v8213_v2, %v2883_v3  ;;  %v2881_v37 = vadd.f32 %v2756_v7, %v2253_v38  ;;  %v8949_v38 = vld [vmem:[#allocation24_spill] sm:$0xff] }
 0x506   :  { %v8950_v3 = vld [vmem:[#allocation32_spill] sm:$0xff] }
 0x507   :  { %v8220_v4 = vpack.c.bf16 %v2922_v48, %v2921_v21  ;;  %v2920_v35 = vadd.f32 %v8213_v2, %v2881_v37  ;;  %v937_v62 = vadd.f32 %v8950_v3, %v8949_v38 }
 0x509   :  { %8943 = vst [vmem:[#allocation18_spill] sm:$0xff] %v8220_v4  ;;  %v8223_v26 = vpack.c.bf16 %v2920_v35, %v2919_v61 }
 0x50b   :  { %8944 = vst [vmem:[#allocation21_spill] sm:$0xff] %v8223_v26 }
 0x50e   :  { %v6853_v52 = vpop.f32.mrf.mxu1 }
 0x50f   :  { %v2886_v43 = vadd.f32 %v6853_v52, %v8129_v10 }
 0x510   :  { %v2769_v0 = vpop.f32.mrf.mxu1 }
 0x511   :  { %v2884_v36 = vadd.f32 %v2769_v0, %v8132_v6  ;;  %v2925_v8 = vadd.f32 %v8213_v2, %v2886_v43 }
 0x512   :  { %v6854_v28 = vpop.f32.mrf.mxu1 }
 0x513   :  { %v2887_v19 = vadd.f32 %v6854_v28, %v8135_v42  ;;  %v2923_v12 = vadd.f32 %v8213_v2, %v2884_v36  ;;  %v1633_v42 = vadd.f32 %v8033_v32, %v937_v62  ;;  %v8954_v36 = vld [vmem:[#allocation33_spill] sm:$0xff] }
 0x514   :  { %v2772_v40 = vpop.f32.mrf.mxu1 }
 0x515   :  { %v2926_v50 = vadd.f32 %v8213_v2, %v2887_v19  ;;  %v2885_v60 = vadd.f32 %v2772_v40, %v2257_v31  ;;  %v2261_v37 = vadd.f32 %v8148_v5, %v1633_v42  ;;  %v8953_v5 = vld [vmem:[#allocation25_spill] sm:$0xff] }
 0x517   :  { %v8235_v11 = vpack.c.bf16 %v2926_v50, %v2925_v8  ;;  %v2924_v10 = vadd.f32 %v8213_v2, %v2885_v60 }
 0x519   :  { %8947 = vst [vmem:[#allocation17_spill] sm:$0xff] %v8235_v11  ;;  %v8238_v55 = vpack.c.bf16 %v2924_v10, %v2923_v12 }
 0x51b   :  { %8948 = vst [vmem:[#allocation20_spill] sm:$0xff] %v8238_v55 }
 0x51e   :  { %v6857_v6 = vpop.f32.mrf.mxu1 }
 0x51f   :  { %v2890_v21 = vadd.f32 %v6857_v6, %v8140_v34 }
 0x520   :  { %v2785_v7 = vpop.f32.mrf.mxu1 }
 0x521   :  { %v2888_v61 = vadd.f32 %v2785_v7, %v8143_v29  ;;  %v2929_v20 = vadd.f32 %v8213_v2, %v2890_v21  ;;  %v953_v29 = vadd.f32 %v8954_v36, %v8953_v5  ;;  %v8958_v5 = vld [vmem:[#allocation36_spill] sm:$0xff] }
 0x522   :  { %v6858_v48 = vpop.f32.mrf.mxu1 }
 0x523   :  { %v2891_v35 = vadd.f32 %v6858_v48, %v8146_v13  ;;  %v2927_v43 = vadd.f32 %v8213_v2, %v2888_v61  ;;  %v1637_v13 = vadd.f32 %v8047_v25, %v953_v29 }
 0x524   :  { %v2788_v52 = vpop.f32.mrf.mxu1 }
 0x525   :  { %v2930_v15 = vadd.f32 %v8213_v2, %v2891_v35  ;;  %v2889_v54 = vadd.f32 %v2788_v52, %v2261_v37  ;;  %v2265_v40 = vadd.f32 %v8159_v1, %v1637_v13 }
 0x527   :  { %v8250_v0 = vpack.c.bf16 %v2930_v15, %v2929_v20  ;;  %v2928_v32 = vadd.f32 %v8213_v2, %v2889_v54 }
 0x529   :  { %8951 = vst [vmem:[#allocation16_spill] sm:$0xff] %v8250_v0  ;;  %v8253_v34 = vpack.c.bf16 %v2928_v32, %v2927_v43 }
 0x52b   :  { %8952 = vst [vmem:[#allocation19_spill] sm:$0xff] %v8253_v34 }
 0x52e   :  { %v6861_v24 = vpop.f32.mrf.mxu1 }
 0x52f   :  { %v2894_v31 = vadd.f32 %v6861_v24, %v8151_v59  ;;  %v8957_v24 = vld [vmem:[#allocation28_spill] sm:$0xff] }
 0x530   :  { %v2801_v28 = vpop.f32.mrf.mxu1  ;;  %v1001_v36 = vadd.f32 %v8958_v5, %v8957_v24  ;;  %v8964_v24 = vld [vmem:[#allocation34_spill] sm:$0xff] }
 0x531   :  { %v2892_v8 = vadd.f32 %v2801_v28, %v8154_v63  ;;  %v2933_v12 = vadd.f32 %v8213_v2, %v2894_v31 }
 0x532   :  { %v6862_v19 = vpop.f32.mrf.mxu1  ;;  %v1649_v28 = vadd.f32 %v8089_v58, %v1001_v36 }
 0x533   :  { %v2895_v50 = vadd.f32 %v6862_v19, %v8157_v47  ;;  %v2931_v38 = vadd.f32 %v8213_v2, %v2892_v8 }
 0x534   :  { %v2804_v60 = vpop.f32.mrf.mxu1  ;;  %v2277_v31 = vadd.f32 %v8192_v30, %v1649_v28  ;;  %v8960_v30 = vld [vmem:[#allocation29_spill] sm:$0xff] }
 0x535   :  { %v2934_v10 = vadd.f32 %v8213_v2, %v2895_v50  ;;  %v2893_v6 = vadd.f32 %v2804_v60, %v2265_v40 }
 0x537   :  { %v8265_v3 = vpack.c.bf16 %v2934_v10, %v2933_v12  ;;  %v2932_v25 = vadd.f32 %v8213_v2, %v2893_v6 }
 0x539   :  { %v8268_v59 = vpack.c.bf16 %v2932_v25, %v2931_v38 }
 0x53e   :  { %v6865_v62 = vpop.f32.mrf.mxu1 }
 0x53f   :  { %v2898_v63 = vadd.f32 %v6865_v62, %v8162_v49 }
 0x540   :  { %v8270_v1 = vpop.f32.mrf.mxu1 }
 0x541   :  { %v2937_v42 = vadd.f32 %v8213_v2, %v2898_v63 }
 0x542   :  { %v6866_v47 = vpop.f32.mrf.mxu1 }
 0x543   :  { %v2899_v7 = vadd.f32 %v6866_v47, %v8168_v46 }
 0x544   :  { %v8278_v37 = vpop.f32.mrf.mxu1 }
 0x545   :  { %v2938_v21 = vadd.f32 %v8213_v2, %v2899_v7 }
 0x547   :  { %v8276_v48 = vpack.c.bf16 %v2938_v21, %v2937_v42 }
 0x549   :  { %8955 = vst [vmem:[#allocation15_spill] sm:$0xff] %v8276_v48 }
 0x54e   :  { %v6869_v61 = vpop.f32.mrf.mxu1 }
 0x54f   :  { %v2902_v52 = vadd.f32 %v6869_v61, %v8173_v16 }
 0x550   :  { %v2833_v35 = vpop.f32.mrf.mxu1 }
 0x551   :  { %v2941_v49 = vadd.f32 %v8213_v2, %v2902_v52  ;;  %v2900_v36 = vadd.f32 %v2833_v35, %v8176_v17  ;;  %v2896_v17 = vadd.f32 %v8270_v1, %v8165_v14  ;;  %v7433_v14 = vld [vmem:[#allocation2] ss:$8 sps:$4 sm:$0xff]   ;;  %v7434_v1 = vld [vmem:[#allocation2 + $0x14] ss:$8 sps:$4 sm:$0xff]  }
 0x552   :  { %v6870_v20 = vpop.f32.mrf.mxu1 }
 0x553   :  { %v2903_v15 = vadd.f32 %v6870_v20, %v8179_v41  ;;  %v2939_v28 = vadd.f32 %v8213_v2, %v2900_v36  ;;  %v7463_v36 = vld [vmem:[#allocation2 + $0xf0] ss:$8 sps:$4 sm:$0xff]  }
 0x554   :  { %v2836_v43 = vpop.f32.mrf.mxu1 }
 0x555   :  { %v2942_v54 = vadd.f32 %v8213_v2, %v2903_v15 }
 0x557   :  { %v8284_v46 = vpack.c.bf16 %v2942_v54, %v2941_v49 }
 0x559   :  { %8956 = vst [vmem:[#allocation22_spill] sm:$0xff] %v8284_v46 }
 0x55e   :  { %v6873_v32 = vpop.f32.mrf.mxu1 }
 0x55f   :  { %v2906_v13 = vadd.f32 %v6873_v32, %v8184_v33  ;;  %v8963_v32 = vld [vmem:[#allocation26_spill] sm:$0xff] }
 0x560   :  { %v2849_v29 = vpop.f32.mrf.mxu1  ;;  %v969_v5 = vadd.f32 %v8964_v24, %v8963_v32  ;;  %v7460_v32 = vld [vmem:[#allocation2 + $0xe4] ss:$8 sps:$4 sm:$0xff]   ;;  %v7461_v24 = vld [vmem:[#allocation2 + $0xe0] ss:$8 sps:$4 sm:$0xff]  }
 0x561   :  { %v2904_v41 = vadd.f32 %v2849_v29, %v8187_v18  ;;  %v2945_v8 = vadd.f32 %v8213_v2, %v2906_v13  ;;  %v1017_v18 = vadd.f32 %v7991_v22, %v8960_v30  ;;  %v7446_v30 = vld [vmem:[#allocation2 + $0x74] ss:$8 sps:$4 sm:$0xff]  }
 0x562   :  { %v6874_v16 = vpop.f32.mrf.mxu1  ;;  %v1641_v29 = vadd.f32 %v8061_v56, %v969_v5  ;;  %v7462_v5 = vld [vmem:[#allocation2 + $0xf4] ss:$8 sps:$4 sm:$0xff]  }
 0x563   :  { %v2907_v19 = vadd.f32 %v6874_v16, %v8190_v9  ;;  %v2943_v12 = vadd.f32 %v8213_v2, %v2904_v41  ;;  %v1653_v9 = vadd.f32 %v8100_v51, %v1017_v18  ;;  %v7437_v16 = vld [vmem:[#allocation2 + $0x20] ss:$8 sps:$4 sm:$0xff]   ;;  %v7439_v41 = vld [vmem:[#allocation2 + $0x30] ss:$8 sps:$4 sm:$0xff]  }
 0x564   :  { %v2852_v40 = vpop.f32.mrf.mxu1  ;;  %v7385_v18 = vld [vmem:[#allocation8 + $0x70] sm:$0xff]  }
 0x565   :  { %v2946_v50 = vadd.f32 %v8213_v2, %v2907_v19  ;;  %v2905_v60 = vadd.f32 %v2852_v40, %v2277_v31  ;;  %v2281_v63 = vadd.f32 %v8203_v45, %v1653_v9  ;;  %v7438_v31 = vld [vmem:[#allocation2 + $0x34] ss:$8 sps:$4 sm:$0xff]   ;;  %v7440_v19 = vld [vmem:[#allocation2 + $0x44] ss:$8 sps:$4 sm:$0xff]  }
 0x566   :  { %v8367_v40 = vld [vmem:[#allocation8 + $0xf8] sm:$0xff]   ;;  %v7448_v9 = vld [vmem:[#allocation2 + $0x84] ss:$8 sps:$4 sm:$0xff]  }
 0x567   :  { %v8296_v10 = vpack.c.bf16 %v2946_v50, %v2945_v8  ;;  %v2944_v58 = vadd.f32 %v8213_v2, %v2905_v60  ;;  %v7441_v8 = vld [vmem:[#allocation2 + $0x40] ss:$8 sps:$4 sm:$0xff]   ;;  %v7442_v50 = vld [vmem:[#allocation2 + $0x54] ss:$8 sps:$4 sm:$0xff]   ;;  %v7443_v60 = vld [vmem:[#allocation2 + $0x50] ss:$8 sps:$4 sm:$0xff]  }
 0x569   :  { %v8299_v33 = vpack.c.bf16 %v2944_v58, %v2943_v12  ;;  %v7384_v12 = vld [vmem:[#allocation8 + $0x78] sm:$0xff]   ;;  %v7444_v58 = vld [vmem:[#allocation2 + $0x64] ss:$8 sps:$4 sm:$0xff]  }
 0x56a   :  { %6879 = vmatprep.subr.bf16.mxu0 %v7384_v12 }
 0x56b   :  { %8959 = vst [vmem:[#allocation30_spill] sm:$0xff] %v8299_v33  ;;  %6880 = vmatpush3.bf16.msra.mxu0 %v7384_v12  ;;  %v7392_v12 = vld [vmem:[#allocation8 + $0x38] sm:$0xff]  }
 0x56c   :  { %6881 = vmatprep.subr.bf16.mxu0 %v7385_v18 }
 0x56e   :  { %v6877_v6 = vpop.f32.mrf.mxu1 }
 0x56f   :  { %v2910_v25 = vadd.f32 %v6877_v6, %v8195_v57  ;;  %v7445_v6 = vld [vmem:[#allocation2 + $0x60] ss:$8 sps:$4 sm:$0xff]   ;;  %6882 = vmatpush3.bf16.msra.mxu0 %v7385_v18  ;;  %v7480_v18 = vld [vmem:[#allocation2 + $0x184] ss:$8 sps:$4 sm:$0xff]  }
 0x570   :  { %v2865_v38 = vpop.f32.mrf.mxu1 }
 0x571   :  { %v2908_v47 = vadd.f32 %v2865_v38, %v8198_v44  ;;  %v2949_v21 = vadd.f32 %v8213_v2, %v2910_v25  ;;  %v8961_v44 = vld [vmem:[#allocation27_spill] sm:$0xff]  ;;  %v7447_v38 = vld [vmem:[#allocation2 + $0x70] ss:$8 sps:$4 sm:$0xff]   ;;  %v7386_v25 = vld [vmem:[#allocation8 + $0x68] sm:$0xff]  }
 0x572   :  { %v6878_v62 = vpop.f32.mrf.mxu1  ;;  %6883 = vmatprep.subr.bf16.mxu0 %v7386_v25 }
 0x573   :  { %v2911_v7 = vadd.f32 %v6878_v62, %v8201_v23  ;;  %v2947_v22 = vadd.f32 %v8213_v2, %v2908_v47  ;;  %v8962_v23 = vld [vmem:[#allocation35_spill] sm:$0xff]  ;;  %6884 = vmatpush3.bf16.msra.mxu0 %v7386_v25  ;;  %v7450_v47 = vld [vmem:[#allocation2 + $0x94] ss:$8 sps:$4 sm:$0xff]  }
 0x574   :  { %v2868_v42 = vpop.f32.mrf.mxu1  ;;  %v985_v45 = vadd.f32 %v8962_v23, %v8961_v44  ;;  %v7387_v62 = vld [vmem:[#allocation8 + $0x60] sm:$0xff]   ;;  %v7454_v44 = vld [vmem:[#allocation2 + $0xb4] ss:$8 sps:$4 sm:$0xff]   ;;  %v7455_v23 = vld [vmem:[#allocation2 + $0xb0] ss:$8 sps:$4 sm:$0xff]  }
 0x575   :  { %v2950_v61 = vadd.f32 %v8213_v2, %v2911_v7  ;;  %v2909_v52 = vadd.f32 %v2868_v42, %v2281_v63  ;;  %v7449_v63 = vld [vmem:[#allocation2 + $0x80] ss:$8 sps:$4 sm:$0xff]   ;;  %6885 = vmatprep.subr.bf16.mxu0 %v7387_v62  ;;  %v7388_v7 = vld [vmem:[#allocation8 + $0x58] sm:$0xff]   ;;  %v7389_v42 = vld [vmem:[#allocation8 + $0x50] sm:$0xff]  }
 0x576   :  { %v1645_v15 = vadd.f32 %v8075_v27, %v985_v45  ;;  %v7456_v45 = vld [vmem:[#allocation2 + $0xc4] ss:$8 sps:$4 sm:$0xff]   ;;  %v7482_v25 = vld [vmem:[#allocation2 + $0x194] ss:$8 sps:$4 sm:$0xff]  }
 0x577   :  { %v8311_v20 = vpack.c.bf16 %v2950_v61, %v2949_v21  ;;  %v2948_v51 = vadd.f32 %v8213_v2, %v2909_v52  ;;  %6886 = vmatpush3.bf16.msra.mxu0 %v7387_v62  ;;  %v7451_v21 = vld [vmem:[#allocation2 + $0x90] ss:$8 sps:$4 sm:$0xff]   ;;  %v7452_v61 = vld [vmem:[#allocation2 + $0xa4] ss:$8 sps:$4 sm:$0xff]  }
 0x578   :  { %v2273_v49 = vadd.f32 %v8181_v53, %v1645_v15  ;;  %v2269_v53 = vadd.f32 %v8170_v39, %v1641_v29  ;;  %v2935_v39 = vadd.f32 %v8213_v2, %v2896_v17  ;;  %6887 = vmatprep.subr.bf16.mxu0 %v7388_v7  ;;  %v7390_v52 = vld [vmem:[#allocation8 + $0x48] sm:$0xff]   ;;  %v7379_v17 = vld [vmem:[#allocation8 + $0xe0] sm:$0xff]  }
 0x579   :  { %v8314_v57 = vpack.c.bf16 %v2948_v51, %v2947_v22  ;;  %6071 = vmatprep.subr.bf16.mxu1 %v8311_v20  ;;  %v7391_v22 = vld [vmem:[#allocation8 + $0x40] sm:$0xff]  }
 0x57a   :  { %6072 = vmatpush3.bf16.msra.mxu1 %v8265_v3  ;;  %v2901_v54 = vadd.f32 %v2836_v43, %v2273_v49  ;;  %v2897_v43 = vadd.f32 %v8278_v37, %v2269_v53  ;;  %v7436_v37 = vld [vmem:[#allocation2 + $0x24] ss:$8 sps:$4 sm:$0xff]   ;;  %v7453_v51 = vld [vmem:[#allocation2 + $0xa0] ss:$8 sps:$4 sm:$0xff]   ;;  %v7458_v49 = vld [vmem:[#allocation2 + $0xd4] ss:$8 sps:$4 sm:$0xff]  }
 0x57b   :  { %6073 = vmatprep.subr.bf16.mxu1 %v8314_v57  ;;  %6888 = vmatpush3.bf16.msra.mxu0 %v7388_v7  ;;  %v7457_v15 = vld [vmem:[#allocation2 + $0xc0] ss:$8 sps:$4 sm:$0xff]   ;;  %v7464_v29 = vld [vmem:[#allocation2 + $0x104] ss:$8 sps:$4 sm:$0xff]  }
 0x57c   :  { %v2940_v27 = vadd.f32 %v8213_v2, %v2901_v54  ;;  %v2936_v56 = vadd.f32 %v8213_v2, %v2897_v43  ;;  %v7435_v2 = vld [vmem:[#allocation2 + $0x10] ss:$8 sps:$4 sm:$0xff]   ;;  %6889 = vmatprep.subr.bf16.mxu0 %v7389_v42  ;;  %v7465_v53 = vld [vmem:[#allocation2 + $0x100] ss:$8 sps:$4 sm:$0xff]  }
 0x57d   :  { %v7459_v54 = vld [vmem:[#allocation2 + $0xd0] ss:$8 sps:$4 sm:$0xff]   ;;  %v7378_v43 = vld [vmem:[#allocation8 + $0xe8] sm:$0xff]  }
 0x57e   :  { %6074 = vmatpush3.bf16.msra.mxu1 %v8268_v59  ;;  %v8337_v13 = vpack.c.bf16 %v2940_v27, %v2939_v28  ;;  %v8347_v35 = vpack.c.bf16 %v2936_v56, %v2935_v39  ;;  %v7377_v27 = vld [vmem:[#allocation8 + $0xf0] sm:$0xff]   ;;  %v7468_v39 = vld [vmem:[#allocation2 + $0x124] ss:$8 sps:$4 sm:$0xff]  }
 0x57f   :  { %6075 = vmatprep.subr.bf16.mxu1 %v8296_v10  ;;  %6890 = vmatpush3.bf16.msra.mxu0 %v7389_v42  ;;  %v7466_v28 = vld [vmem:[#allocation2 + $0x114] ss:$8 sps:$4 sm:$0xff]   ;;  %v7467_v56 = vld [vmem:[#allocation2 + $0x110] ss:$8 sps:$4 sm:$0xff]  }
 0x580   :  { %8965 = vst [vmem:[#allocation23_spill] sm:$0xff] %v8337_v13  ;;  %8966 = vst [vmem:[#allocation31_spill] sm:$0xff] %v8347_v35  ;;  %6891 = vmatprep.subr.bf16.mxu0 %v7390_v52 }
 0x582   :  { %6076 = vmatpush3.bf16.msra.mxu1 %v8250_v0 }
 0x583   :  { %6077 = vmatprep.subr.bf16.mxu1 %v8299_v33  ;;  %6892 = vmatpush3.bf16.msra.mxu0 %v7390_v52 }
 0x584   :  { %6893 = vmatprep.subr.bf16.mxu0 %v7391_v22 }
 0x586   :  { %6078 = vmatpush3.bf16.msra.mxu1 %v8253_v34 }
 0x587   :  { %6079 = vmatprep.subr.bf16.mxu1 %v8284_v46  ;;  %6894 = vmatpush3.bf16.msra.mxu0 %v7391_v22  ;;  %v7484_v22 = vld [vmem:[#allocation2 + $0x1a4] ss:$8 sps:$4 sm:$0xff]  }
 0x588   :  { %6927 = vmatprep.subr.bf16.mxu0 %v7392_v12 }
 0x58a   :  { %6080 = vmatpush3.bf16.msra.mxu1 %v8235_v11 }
 0x58b   :  { %6081 = vmatprep.subr.bf16.mxu1 %v8337_v13 }
 0x58e   :  { %6082 = vmatpush3.bf16.msra.mxu1 %v8238_v55 }
 0x58f   :  { %6083 = vmatprep.subr.bf16.mxu1 %v8276_v48 }
 0x592   :  { %6084 = vmatpush3.bf16.msra.mxu1 %v8220_v4 }
 0x593   :  { %6085 = vmatprep.subr.bf16.mxu1 %v8347_v35 }
 0x596   :  { %6086 = vmatpush3.bf16.msra.mxu1 %v8223_v26 }
 0x597   :  { %6231 = vmatprep.subr.bf16.mxu1 %v8311_v20 }
 0x599   :  { %3016 = vmatmul.mubr.bf16.vlgmr.msra.gmra.mxu1 %v7433_v14  ;;  %v7380_v14 = vld [vmem:[#allocation8 + $0xd8] sm:$0xff]  }
 0x59a   :  { %6232 = vmatpush3.bf16.msra.mxu1 %v8265_v3  ;;  %3023 = vmatprep.mubr.bf16.mxu1 %v7434_v1  ;;  %v7381_v1 = vld [vmem:[#allocation8 + $0xd0] sm:$0xff]  }
 0x59b   :  { %6233 = vmatprep.subr.bf16.mxu1 %v8314_v57 }
 0x59e   :  { %6234 = vmatpush3.bf16.msra.mxu1 %v8268_v59 }
 0x59f   :  { %6235 = vmatprep.subr.bf16.mxu1 %v8296_v10 }
 0x5a1   :  { %3024 = vmatmul.mubr.bf16.gmra.mxu1 %v7435_v2  ;;  %v7469_v2 = vld [vmem:[#allocation2 + $0x120] ss:$8 sps:$4 sm:$0xff]  }
 0x5a2   :  { %6236 = vmatpush3.bf16.msra.mxu1 %v8250_v0  ;;  %3031 = vmatprep.mubr.bf16.mxu1 %v7436_v37  ;;  %v7470_v37 = vld [vmem:[#allocation2 + $0x134] ss:$8 sps:$4 sm:$0xff]  }
 0x5a3   :  { %6237 = vmatprep.subr.bf16.mxu1 %v8299_v33 }
 0x5a6   :  { %6238 = vmatpush3.bf16.msra.mxu1 %v8253_v34 }
 0x5a7   :  { %6239 = vmatprep.subr.bf16.mxu1 %v8284_v46 }
 0x5a9   :  { %3032 = vmatmul.mubr.bf16.gmra.mxu1 %v7437_v16  ;;  %v7382_v16 = vld [vmem:[#allocation8 + $0xc8] sm:$0xff]  }
 0x5aa   :  { %6240 = vmatpush3.bf16.msra.mxu1 %v8235_v11  ;;  %3039 = vmatprep.mubr.bf16.mxu1 %v7438_v31  ;;  %v7383_v31 = vld [vmem:[#allocation8 + $0xc0] sm:$0xff]  }
 0x5ab   :  { %6241 = vmatprep.subr.bf16.mxu1 %v8337_v13 }
 0x5ae   :  { %6242 = vmatpush3.bf16.msra.mxu1 %v8238_v55 }
 0x5af   :  { %6243 = vmatprep.subr.bf16.mxu1 %v8276_v48 }
 0x5b1   :  { %3040 = vmatmul.mubr.bf16.gmra.mxu1 %v7439_v41  ;;  %v7471_v41 = vld [vmem:[#allocation2 + $0x130] ss:$8 sps:$4 sm:$0xff]  }
 0x5b2   :  { %6244 = vmatpush3.bf16.msra.mxu1 %v8220_v4  ;;  %3047 = vmatprep.mubr.bf16.mxu1 %v7440_v19  ;;  %v7472_v19 = vld [vmem:[#allocation2 + $0x144] ss:$8 sps:$4 sm:$0xff]  }
 0x5b3   :  { %6245 = vmatprep.subr.bf16.mxu1 %v8347_v35 }
 0x5b6   :  { %6246 = vmatpush3.bf16.msra.mxu1 %v8223_v26 }
 0x5b7   :  { %7023 = vmatprep.subr.bf16.mxu1 %v8367_v40 }
 0x5b9   :  { %3048 = vmatmul.mubr.bf16.gmra.mxu1 %v7441_v8  ;;  %v7474_v8 = vld [vmem:[#allocation2 + $0x154] ss:$8 sps:$4 sm:$0xff]  }
 0x5ba   :  { %3055 = vmatprep.mubr.bf16.mxu1 %v7442_v50  ;;  %v7475_v50 = vld [vmem:[#allocation2 + $0x150] ss:$8 sps:$4 sm:$0xff]  }
 0x5c1   :  { %3056 = vmatmul.mubr.bf16.gmra.mxu1 %v7443_v60  ;;  %v7476_v60 = vld [vmem:[#allocation2 + $0x164] ss:$8 sps:$4 sm:$0xff]  }
 0x5c2   :  { %3063 = vmatprep.mubr.bf16.mxu1 %v7444_v58  ;;  %v7477_v58 = vld [vmem:[#allocation2 + $0x160] ss:$8 sps:$4 sm:$0xff]  }
 0x5c9   :  { %3064 = vmatmul.mubr.bf16.gmra.mxu1 %v7445_v6  ;;  %v7478_v6 = vld [vmem:[#allocation2 + $0x174] ss:$8 sps:$4 sm:$0xff]  }
 0x5ca   :  { %3071 = vmatprep.mubr.bf16.mxu1 %v7446_v30  ;;  %v7479_v30 = vld [vmem:[#allocation2 + $0x170] ss:$8 sps:$4 sm:$0xff]  }
 0x5d1   :  { %3072 = vmatmul.mubr.bf16.gmra.mxu1 %v7447_v38 }
 0x5d2   :  { %3079 = vmatprep.mubr.bf16.mxu1 %v7448_v9  ;;  %v7481_v9 = vld [vmem:[#allocation2 + $0x180] ss:$8 sps:$4 sm:$0xff]  }
 0x5d9   :  { %3080 = vmatmul.mubr.bf16.gmra.mxu1 %v7449_v63 }
 0x5da   :  { %3087 = vmatprep.mubr.bf16.mxu1 %v7450_v47 }
 0x5e1   :  { %3088 = vmatmul.mubr.bf16.gmra.mxu1 %v7451_v21 }
 0x5e2   :  { %3095 = vmatprep.mubr.bf16.mxu1 %v7452_v61  ;;  %v7483_v61 = vld [vmem:[#allocation2 + $0x190] ss:$8 sps:$4 sm:$0xff]  }
 0x5e9   :  { %3096 = vmatmul.mubr.bf16.gmra.mxu1 %v7453_v51 }
 0x5ea   :  { %3103 = vmatprep.mubr.bf16.mxu1 %v7454_v44 }
 0x5f1   :  { %3104 = vmatmul.mubr.bf16.gmra.mxu1 %v7455_v23 }
 0x5f2   :  { %3111 = vmatprep.mubr.bf16.mxu1 %v7456_v45 }
 0x5f9   :  { %3112 = vmatmul.mubr.bf16.gmra.mxu1 %v7457_v15 }
 0x5fa   :  { %3119 = vmatprep.mubr.bf16.mxu1 %v7458_v49 }
 0x601   :  { %3120 = vmatmul.mubr.bf16.gmra.mxu1 %v7459_v54  ;;  %v7485_v54 = vld [vmem:[#allocation2 + $0x1a0] ss:$8 sps:$4 sm:$0xff]  }
 0x602   :  { %3127 = vmatprep.mubr.bf16.mxu1 %v7460_v32 }
 0x609   :  { %3128 = vmatmul.mubr.bf16.gmra.mxu1 %v7461_v24  ;;  %v7486_v24 = vld [vmem:[#allocation2 + $0x1b4] ss:$8 sps:$4 sm:$0xff]  }
 0x60a   :  { %3135 = vmatprep.mubr.bf16.mxu1 %v7462_v5  ;;  %v7393_v5 = vld [vmem:[#allocation8 + $0x30] sm:$0xff]  }
 0x611   :  { %3136 = vmatmul.mubr.bf16.gmra.mxu1 %v7463_v36 }
 0x612   :  { %3627 = vmatprep.mubr.bf16.mxu1 %v7464_v29 }
 0x619   :  { %3628 = vmatmul.mubr.bf16.vlgmr.msra.gmra.mxu1 %v7465_v53 }
 0x61a   :  { %7024 = vmatpush3.bf16.msra.mxu1 %v8367_v40  ;;  %3635 = vmatprep.mubr.bf16.mxu1 %v7466_v28  ;;  %v7473_v40 = vld [vmem:[#allocation2 + $0x140] ss:$8 sps:$4 sm:$0xff]  }
 0x61b   :  { %7025 = vmatprep.subr.bf16.mxu1 %v7377_v27 }
 0x61e   :  { %7026 = vmatpush3.bf16.msra.mxu1 %v7377_v27  ;;  %v7394_v27 = vld [vmem:[#allocation8 + $0x28] sm:$0xff]  }
 0x61f   :  { %7027 = vmatprep.subr.bf16.mxu1 %v7378_v43 }
 0x621   :  { %3636 = vmatmul.mubr.bf16.gmra.mxu1 %v7467_v56  ;;  %v7487_v56 = vld [vmem:[#allocation2 + $0x1b0] ss:$8 sps:$4 sm:$0xff]  }
 0x622   :  { %7028 = vmatpush3.bf16.msra.mxu1 %v7378_v43  ;;  %3643 = vmatprep.mubr.bf16.mxu1 %v7468_v39 }
 0x623   :  { %7029 = vmatprep.subr.bf16.mxu1 %v7379_v17 }
 0x626   :  { %7030 = vmatpush3.bf16.msra.mxu1 %v7379_v17 }
 0x627   :  { %7031 = vmatprep.subr.bf16.mxu1 %v7380_v14 }
 0x629   :  { %3644 = vmatmul.mubr.bf16.gmra.mxu1 %v7469_v2 }
 0x62a   :  { %7032 = vmatpush3.bf16.msra.mxu1 %v7380_v14  ;;  %3651 = vmatprep.mubr.bf16.mxu1 %v7470_v37  ;;  %v7488_v14 = vld [vmem:[#allocation2 + $0x1c4] ss:$8 sps:$4 sm:$0xff]  }
 0x62b   :  { %7033 = vmatprep.subr.bf16.mxu1 %v7381_v1 }
 0x62e   :  { %7034 = vmatpush3.bf16.msra.mxu1 %v7381_v1  ;;  %v7395_v1 = vld [vmem:[#allocation8 + $0x20] sm:$0xff]  }
 0x62f   :  { %7035 = vmatprep.subr.bf16.mxu1 %v7382_v16 }
 0x631   :  { %3652 = vmatmul.mubr.bf16.gmra.mxu1 %v7471_v41 }
 0x632   :  { %7036 = vmatpush3.bf16.msra.mxu1 %v7382_v16  ;;  %3659 = vmatprep.mubr.bf16.mxu1 %v7472_v19  ;;  %v7396_v16 = vld [vmem:[#allocation8 + $0x18] sm:$0xff]  }
 0x633   :  { %7037 = vmatprep.subr.bf16.mxu1 %v7383_v31 }
 0x636   :  { %7038 = vmatpush3.bf16.msra.mxu1 %v7383_v31 }
 0x637   :  { %6503 = vmatprep.subr.bf16.mxu1 %v8311_v20 }
 0x639   :  { %3660 = vmatmul.mubr.bf16.gmra.mxu1 %v7473_v40 }
 0x63a   :  { %3667 = vmatprep.mubr.bf16.mxu1 %v7474_v8  ;;  %v7489_v8 = vld [vmem:[#allocation2 + $0x1c0] ss:$8 sps:$4 sm:$0xff]  }
 0x641   :  { %3668 = vmatmul.mubr.bf16.gmra.mxu1 %v7475_v50 }
 0x642   :  { %3675 = vmatprep.mubr.bf16.mxu1 %v7476_v60  ;;  %v7490_v60 = vld [vmem:[#allocation2 + $0x1d4] ss:$8 sps:$4 sm:$0xff]  }
 0x649   :  { %3676 = vmatmul.mubr.bf16.gmra.mxu1 %v7477_v58 }
 0x64a   :  { %3683 = vmatprep.mubr.bf16.mxu1 %v7478_v6 }
 0x651   :  { %3684 = vmatmul.mubr.bf16.gmra.mxu1 %v7479_v30  ;;  %v7398_v30 = vld [vmem:[#allocation8 + $0x8] sm:$0xff]  }
 0x652   :  { %3691 = vmatprep.mubr.bf16.mxu1 %v7480_v18 }
 0x659   :  { %v6087_v38 = vpop.f32.mrf.mxu1  ;;  %3692 = vmatmul.mubr.bf16.gmra.mxu1 %v7481_v9 }
 0x65a   :  { %3699 = vmatprep.mubr.bf16.mxu1 %v7482_v25 }
 0x65b   :  { %v6088_v62 = vpop.f32.mrf.mxu1 }
 0x65c   :  { %v6089_v7 = vadd.f32 %v6088_v62, %v6087_v38  ;;  %v7491_v62 = vld [vmem:[#allocation2 + $0x1d0] ss:$8 sps:$4 sm:$0xff]  }
 0x65d   :  { %v6090_v63 = vpop.f32.mrf.mxu1 }
 0x65f   :  { %v6091_v47 = vpop.f32.mrf.mxu1 }
 0x660   :  { %v6092_v42 = vadd.f32 %v6091_v47, %v6090_v63  ;;  %v7492_v47 = vld [vmem:[#allocation2 + $0x1e4] ss:$8 sps:$4 sm:$0xff]  }
 0x661   :  { %v6093_v21 = vpop.f32.mrf.mxu1  ;;  %3700 = vmatmul.mubr.bf16.gmra.mxu1 %v7483_v61  ;;  %v8373_v61 = vld [vmem:[#allocation8 + $0xb8] sm:$0xff]  }
 0x662   :  { %v3144_v52 = vpack.c.bf16 %v6092_v42, %v6089_v7  ;;  %3707 = vmatprep.mubr.bf16.mxu1 %v7484_v22  ;;  %v7399_v7 = vld [vmem:[#allocation8] sm:$0xff]  }
 0x663   :  { %v6094_v51 = vpop.f32.mrf.mxu1 }
 0x664   :  { %6895 = vmatprep.mubr.bf16.mxu0 %v3144_v52  ;;  %v6095_v45 = vadd.f32 %v6094_v51, %v6093_v21 }
 0x665   :  { %v6096_v44 = vpop.f32.mrf.mxu1 }
 0x667   :  { %v6097_v23 = vpop.f32.mrf.mxu1 }
 0x668   :  { %v6098_v15 = vadd.f32 %v6097_v23, %v6096_v44  ;;  %v7493_v23 = vld [vmem:[#allocation2 + $0x1e0] ss:$8 sps:$4 sm:$0xff]  }
 0x669   :  { %v6099_v49 = vpop.f32.mrf.mxu1  ;;  %3708 = vmatmul.mubr.bf16.gmra.mxu1 %v7485_v54 }
 0x66a   :  { %v3145_v32 = vpack.c.bf16 %v6098_v15, %v6095_v45  ;;  %3715 = vmatprep.mubr.bf16.mxu1 %v7486_v24  ;;  %v7494_v15 = vld [vmem:[#allocation2 + $0x1f4] ss:$8 sps:$4 sm:$0xff]  }
 0x66b   :  { %v6100_v36 = vpop.f32.mrf.mxu1 }
 0x66c   :  { %6896 = vmatmul.mubr.bf16.vlgmr.msra.gmra.mxu0 %v3145_v32  ;;  %v6101_v28 = vadd.f32 %v6100_v36, %v6099_v49 }
 0x66d   :  { %v6102_v29 = vpop.f32.mrf.mxu1  ;;  %6928 = vmatpush3.bf16.msra.mxu0 %v7392_v12  ;;  %v7397_v12 = vld [vmem:[#allocation8 + $0x10] sm:$0xff]  }
 0x66e   :  { %6929 = vmatprep.subr.bf16.mxu0 %v7393_v5 }
 0x66f   :  { %v6103_v53 = vpop.f32.mrf.mxu1 }
 0x670   :  { %v6104_v43 = vadd.f32 %v6103_v53, %v6102_v29  ;;  %v7495_v29 = vld [vmem:[#allocation2 + $0x1f0] ss:$8 sps:$4 sm:$0xff]  }
 0x671   :  { %v6105_v17 = vpop.f32.mrf.mxu1  ;;  %3716 = vmatmul.mubr.bf16.gmra.mxu1 %v7487_v56  ;;  %6930 = vmatpush3.bf16.msra.mxu0 %v7393_v5 }
 0x672   :  { %v3146_v39 = vpack.c.bf16 %v6104_v43, %v6101_v28  ;;  %3723 = vmatprep.mubr.bf16.mxu1 %v7488_v14  ;;  %6931 = vmatprep.subr.bf16.mxu0 %v7394_v27 }
 0x673   :  { %v6106_v2 = vpop.f32.mrf.mxu1 }
 0x674   :  { %6899 = vmatprep.mubr.bf16.mxu0 %v3146_v39  ;;  %v6107_v41 = vadd.f32 %v6106_v2, %v6105_v17 }
 0x675   :  { %v6108_v37 = vpop.f32.mrf.mxu1  ;;  %6932 = vmatpush3.bf16.msra.mxu0 %v7394_v27 }
 0x676   :  { %6933 = vmatprep.subr.bf16.mxu0 %v7395_v1 }
 0x677   :  { %v6109_v31 = vpop.f32.mrf.mxu1 }
 0x678   :  { %v6110_v19 = vadd.f32 %v6109_v31, %v6108_v37 }
 0x679   :  { %v6111_v40 = vpop.f32.mrf.mxu1  ;;  %3724 = vmatmul.mubr.bf16.gmra.mxu1 %v7489_v8  ;;  %6934 = vmatpush3.bf16.msra.mxu0 %v7395_v1 }
 0x67a   :  { %v3147_v50 = vpack.c.bf16 %v6110_v19, %v6107_v41  ;;  %3731 = vmatprep.mubr.bf16.mxu1 %v7490_v60  ;;  %6935 = vmatprep.subr.bf16.mxu0 %v7396_v16 }
 0x67b   :  { %v6112_v58 = vpop.f32.mrf.mxu1 }
 0x67c   :  { %6900 = vmatmul.mubr.bf16.gmra.mxu0 %v3147_v50  ;;  %v6113_v38 = vadd.f32 %v6112_v58, %v6111_v40 }
 0x67d   :  { %v6114_v6 = vpop.f32.mrf.mxu1  ;;  %6936 = vmatpush3.bf16.msra.mxu0 %v7396_v16 }
 0x67e   :  { %6937 = vmatprep.subr.bf16.mxu0 %v7397_v12 }
 0x67f   :  { %v6115_v18 = vpop.f32.mrf.mxu1 }
 0x680   :  { %v6116_v9 = vadd.f32 %v6115_v18, %v6114_v6 }
 0x681   :  { %v6117_v25 = vpop.f32.mrf.mxu1  ;;  %3732 = vmatmul.mubr.bf16.gmra.mxu1 %v7491_v62  ;;  %6938 = vmatpush3.bf16.msra.mxu0 %v7397_v12 }
 0x682   :  { %v3148_v63 = vpack.c.bf16 %v6116_v9, %v6113_v38  ;;  %3739 = vmatprep.mubr.bf16.mxu1 %v7492_v47  ;;  %6939 = vmatprep.subr.bf16.mxu0 %v7398_v30 }
 0x683   :  { %v6118_v42 = vpop.f32.mrf.mxu1 }
 0x684   :  { %6903 = vmatprep.mubr.bf16.mxu0 %v3148_v63  ;;  %v6119_v22 = vadd.f32 %v6118_v42, %v6117_v25 }
 0x685   :  { %v6120_v21 = vpop.f32.mrf.mxu1  ;;  %6940 = vmatpush3.bf16.msra.mxu0 %v7398_v30 }
 0x686   :  { %6941 = vmatprep.subr.bf16.mxu0 %v7399_v7 }
 0x687   :  { %v6121_v52 = vpop.f32.mrf.mxu1 }
 0x688   :  { %v6122_v51 = vadd.f32 %v6121_v52, %v6120_v21 }
 0x689   :  { %v6123_v44 = vpop.f32.mrf.mxu1  ;;  %3740 = vmatmul.mubr.bf16.gmra.mxu1 %v7493_v23  ;;  %6942 = vmatpush3.bf16.msra.mxu0 %v7399_v7 }
 0x68a   :  { %v3149_v45 = vpack.c.bf16 %v6122_v51, %v6119_v22  ;;  %3747 = vmatprep.mubr.bf16.mxu1 %v7494_v15  ;;  %6975 = vmatprep.subr.bf16.mxu0 %v8373_v61 }
 0x68b   :  { %v6124_v49 = vpop.f32.mrf.mxu1 }
 0x68c   :  { %6904 = vmatmul.mubr.bf16.gmra.mxu0 %v3149_v45  ;;  %v6125_v24 = vadd.f32 %v6124_v49, %v6123_v44 }
 0x68d   :  { %v6126_v54 = vpop.f32.mrf.mxu1 }
 0x68f   :  { %v6127_v32 = vpop.f32.mrf.mxu1 }
 0x690   :  { %v6128_v5 = vadd.f32 %v6127_v32, %v6126_v54 }
 0x691   :  { %v6129_v36 = vpop.f32.mrf.mxu1  ;;  %3748 = vmatmul.mubr.bf16.gmra.mxu1 %v7495_v29 }
 0x692   :  { %v3150_v27 = vpack.c.bf16 %v6128_v5, %v6125_v24 }
 0x693   :  { %v6130_v53 = vpop.f32.mrf.mxu1 }
 0x694   :  { %6907 = vmatprep.mubr.bf16.mxu0 %v3150_v27  ;;  %v6131_v17 = vadd.f32 %v6130_v53, %v6129_v36 }
 0x695   :  { %v6132_v28 = vpop.f32.mrf.mxu1 }
 0x697   :  { %v6133_v43 = vpop.f32.mrf.mxu1 }
 0x698   :  { %v6134_v56 = vadd.f32 %v6133_v43, %v6132_v28 }
 0x699   :  { %v6135_v39 = vpop.f32.mrf.mxu1 }
 0x69a   :  { %v3151_v14 = vpack.c.bf16 %v6134_v56, %v6131_v17 }
 0x69b   :  { %v6136_v1 = vpop.f32.mrf.mxu1 }
 0x69c   :  { %6908 = vmatmul.mubr.bf16.gmra.mxu0 %v3151_v14  ;;  %v6137_v16 = vadd.f32 %v6136_v1, %v6135_v39 }
 0x69d   :  { %v6138_v2 = vpop.f32.mrf.mxu1 }
 0x69f   :  { %v6139_v37 = vpop.f32.mrf.mxu1 }
 0x6a0   :  { %v6140_v31 = vadd.f32 %v6139_v37, %v6138_v2 }
 0x6a1   :  { %v6141_v41 = vpop.f32.mrf.mxu1 }
 0x6a2   :  { %v3152_v19 = vpack.c.bf16 %v6140_v31, %v6137_v16 }
 0x6a3   :  { %v6142_v40 = vpop.f32.mrf.mxu1 }
 0x6a4   :  { %6911 = vmatprep.mubr.bf16.mxu0 %v3152_v19  ;;  %v6143_v60 = vadd.f32 %v6142_v40, %v6141_v41 }
 0x6a5   :  { %v6144_v8 = vpop.f32.mrf.mxu1 }
 0x6a7   :  { %v6145_v50 = vpop.f32.mrf.mxu1 }
 0x6a8   :  { %v6146_v12 = vadd.f32 %v6145_v50, %v6144_v8 }
 0x6a9   :  { %v6147_v58 = vpop.f32.mrf.mxu1 }
 0x6aa   :  { %v3153_v6 = vpack.c.bf16 %v6146_v12, %v6143_v60 }
 0x6ab   :  { %v6148_v30 = vpop.f32.mrf.mxu1 }
 0x6ac   :  { %6912 = vmatmul.mubr.bf16.gmra.mxu0 %v3153_v6  ;;  %v6149_v9 = vadd.f32 %v6148_v30, %v6147_v58  ;;  %v7401_v6 = vld [vmem:[#allocation8 + $0xb0] sm:$0xff]  }
 0x6ad   :  { %v6150_v18 = vpop.f32.mrf.mxu1 }
 0x6af   :  { %v6151_v38 = vpop.f32.mrf.mxu1 }
 0x6b0   :  { %v6152_v25 = vadd.f32 %v6151_v38, %v6150_v18  ;;  %v7402_v38 = vld [vmem:[#allocation8 + $0xa8] sm:$0xff]  }
 0x6b1   :  { %v6153_v62 = vpop.f32.mrf.mxu1 }
 0x6b2   :  { %v3154_v63 = vpack.c.bf16 %v6152_v25, %v6149_v9 }
 0x6b3   :  { %v6154_v47 = vpop.f32.mrf.mxu1 }
 0x6b4   :  { %6915 = vmatprep.mubr.bf16.mxu0 %v3154_v63  ;;  %v6155_v21 = vadd.f32 %v6154_v47, %v6153_v62  ;;  %v7403_v62 = vld [vmem:[#allocation8 + $0xa0] sm:$0xff]   ;;  %v7404_v47 = vld [vmem:[#allocation8 + $0x98] sm:$0xff]  }
 0x6b5   :  { %v6156_v7 = vpop.f32.mrf.mxu1 }
 0x6b7   :  { %v6157_v42 = vpop.f32.mrf.mxu1 }
 0x6b8   :  { %v6158_v52 = vadd.f32 %v6157_v42, %v6156_v7 }
 0x6b9   :  { %v6159_v22 = vpop.f32.mrf.mxu1 }
 0x6ba   :  { %v3155_v51 = vpack.c.bf16 %v6158_v52, %v6155_v21  ;;  %v7405_v21 = vld [vmem:[#allocation8 + $0x90] sm:$0xff]  }
 0x6bb   :  { %v6160_v44 = vpop.f32.mrf.mxu1 }
 0x6bc   :  { %6916 = vmatmul.mubr.bf16.gmra.mxu0 %v3155_v51  ;;  %v6161_v15 = vadd.f32 %v6160_v44, %v6159_v22  ;;  %v7406_v51 = vld [vmem:[#allocation8 + $0x88] sm:$0xff]  }
 0x6bd   :  { %v6162_v23 = vpop.f32.mrf.mxu1 }
 0x6bf   :  { %v6163_v45 = vpop.f32.mrf.mxu1 }
 0x6c0   :  { %v6164_v49 = vadd.f32 %v6163_v45, %v6162_v23  ;;  %v7407_v45 = vld [vmem:[#allocation8 + $0x80] sm:$0xff]  }
 0x6c1   :  { %v6165_v54 = vpop.f32.mrf.mxu1 }
 0x6c2   :  { %v3156_v32 = vpack.c.bf16 %v6164_v49, %v6161_v15 }
 0x6c3   :  { %v6166_v24 = vpop.f32.mrf.mxu1 }
 0x6c4   :  { %6919 = vmatprep.mubr.bf16.mxu0 %v3156_v32  ;;  %v6167_v29 = vadd.f32 %v6166_v24, %v6165_v54 }
 0x6c5   :  { %v6168_v5 = vpop.f32.mrf.mxu1 }
 0x6c7   :  { %v6169_v36 = vpop.f32.mrf.mxu1 }
 0x6c8   :  { %v6170_v27 = vadd.f32 %v6169_v36, %v6168_v5 }
 0x6c9   :  { %v6171_v53 = vpop.f32.mrf.mxu1 }
 0x6ca   :  { %v3157_v28 = vpack.c.bf16 %v6170_v27, %v6167_v29 }
 0x6cb   :  { %v6172_v43 = vpop.f32.mrf.mxu1 }
 0x6cc   :  { %6920 = vmatmul.mubr.bf16.gmra.mxu0 %v3157_v28  ;;  %v6173_v39 = vadd.f32 %v6172_v43, %v6171_v53 }
 0x6cd   :  { %v6174_v17 = vpop.f32.mrf.mxu1 }
 0x6cf   :  { %v6175_v56 = vpop.f32.mrf.mxu1 }
 0x6d0   :  { %v6176_v14 = vadd.f32 %v6175_v56, %v6174_v17 }
 0x6d1   :  { %v6177_v1 = vpop.f32.mrf.mxu1 }
 0x6d2   :  { %v3158_v2 = vpack.c.bf16 %v6176_v14, %v6173_v39 }
 0x6d3   :  { %v6178_v37 = vpop.f32.mrf.mxu1 }
 0x6d4   :  { %6923 = vmatprep.mubr.bf16.mxu0 %v3158_v2  ;;  %v6179_v41 = vadd.f32 %v6178_v37, %v6177_v1 }
 0x6d5   :  { %v6180_v16 = vpop.f32.mrf.mxu1 }
 0x6d7   :  { %v6181_v31 = vpop.f32.mrf.mxu1 }
 0x6d8   :  { %v6182_v19 = vadd.f32 %v6181_v31, %v6180_v16 }
 0x6d9   :  { %v8376_v40 = vpop.f32.mrf.mxu1 }
 0x6da   :  { %v3159_v8 = vpack.c.bf16 %v6182_v19, %v6179_v41 }
 0x6db   :  { %v8378_v50 = vpop.f32.mrf.mxu1 }
 0x6dc   :  { %6924 = vmatmul.mubr.bf16.gmra.mxu0 %v3159_v8  ;;  %v6249_v1 = vadd.f32 %v8378_v50, %v8376_v40 }
 0x6dd   :  { %6943 = vmatprep.mubr.bf16.mxu0 %v8223_v26  ;;  %v8381_v60 = vpop.f32.mrf.mxu1 }
 0x6df   :  { %v8383_v12 = vpop.f32.mrf.mxu1 }
 0x6e0   :  { %v6252_v39 = vadd.f32 %v8383_v12, %v8381_v60 }
 0x6e1   :  { %v8385_v58 = vpop.f32.mrf.mxu1 }
 0x6e2   :  { %v3756_v37 = vpack.c.bf16 %v6252_v39, %v6249_v1 }
 0x6e3   :  { %v8387_v30 = vpop.f32.mrf.mxu1 }
 0x6e4   :  { %6944 = vmatmul.mubr.bf16.vlgmr.msra.gmra.mxu0 %v8220_v4 }
 0x6e5   :  { %6976 = vmatpush3.bf16.msra.mxu0 %v8373_v61  ;;  %6947 = vmatprep.mubr.bf16.mxu0 %v8238_v55  ;;  %v8392_v18 = vpop.f32.mrf.mxu1 }
 0x6e6   :  { %6977 = vmatprep.subr.bf16.mxu0 %v7401_v6 }
 0x6e7   :  { %v8394_v9 = vpop.f32.mrf.mxu1 }
 0x6e8   :  { %v6258_v41 = vadd.f32 %v8394_v9, %v8392_v18 }
 0x6e9   :  { %6978 = vmatpush3.bf16.msra.mxu0 %v7401_v6  ;;  %v8396_v25 = vpop.f32.mrf.mxu1  ;;  %v6255_v6 = vadd.f32 %v8387_v30, %v8385_v58 }
 0x6ea   :  { %6979 = vmatprep.subr.bf16.mxu0 %v7402_v38 }
 0x6eb   :  { %v8398_v63 = vpop.f32.mrf.mxu1  ;;  %v3757_v40 = vpack.c.bf16 %v6258_v41, %v6255_v6 }
 0x6ec   :  { %6948 = vmatmul.mubr.bf16.gmra.mxu0 %v8235_v11  ;;  %v6261_v60 = vadd.f32 %v8398_v63, %v8396_v25 }
 0x6ed   :  { %6980 = vmatpush3.bf16.msra.mxu0 %v7402_v38  ;;  %6951 = vmatprep.mubr.bf16.mxu0 %v8253_v34  ;;  %v6262_v61 = vpop.f32.mrf.mxu1 }
 0x6ee   :  { %6981 = vmatprep.subr.bf16.mxu0 %v7403_v62 }
 0x6ef   :  { %v6263_v7 = vpop.f32.mrf.mxu1 }
 0x6f0   :  { %v6264_v19 = vadd.f32 %v6263_v7, %v6262_v61 }
 0x6f1   :  { %6982 = vmatpush3.bf16.msra.mxu0 %v7403_v62  ;;  %v8402_v42 = vpop.f32.mrf.mxu1 }
 0x6f2   :  { %6983 = vmatprep.subr.bf16.mxu0 %v7404_v47  ;;  %v3758_v50 = vpack.c.bf16 %v6264_v19, %v6261_v60 }
 0x6f3   :  { %v8404_v52 = vpop.f32.mrf.mxu1 }
 0x6f4   :  { %6952 = vmatmul.mubr.bf16.gmra.mxu0 %v8250_v0  ;;  %v6267_v58 = vadd.f32 %v8404_v52, %v8402_v42 }
 0x6f5   :  { %6984 = vmatpush3.bf16.msra.mxu0 %v7404_v47  ;;  %6955 = vmatprep.mubr.bf16.mxu0 %v8268_v59  ;;  %v6268_v22 = vpop.f32.mrf.mxu1 }
 0x6f6   :  { %6985 = vmatprep.subr.bf16.mxu0 %v7405_v21 }
 0x6f7   :  { %v6269_v44 = vpop.f32.mrf.mxu1 }
 0x6f8   :  { %v6270_v62 = vadd.f32 %v6269_v44, %v6268_v22 }
 0x6f9   :  { %6986 = vmatpush3.bf16.msra.mxu0 %v7405_v21  ;;  %v6271_v23 = vpop.f32.mrf.mxu1 }
 0x6fa   :  { %6987 = vmatprep.subr.bf16.mxu0 %v7406_v51  ;;  %v3759_v63 = vpack.c.bf16 %v6270_v62, %v6267_v58 }
 0x6fb   :  { %v6272_v15 = vpop.f32.mrf.mxu1 }
 0x6fc   :  { %6956 = vmatmul.mubr.bf16.gmra.mxu0 %v8265_v3  ;;  %v6273_v30 = vadd.f32 %v6272_v15, %v6271_v23 }
 0x6fd   :  { %6988 = vmatpush3.bf16.msra.mxu0 %v7406_v51  ;;  %6959 = vmatprep.mubr.bf16.mxu0 %v8347_v35  ;;  %v6274_v49 = vpop.f32.mrf.mxu1 }
 0x6fe   :  { %6989 = vmatprep.subr.bf16.mxu0 %v7407_v45 }
 0x6ff   :  { %v6275_v54 = vpop.f32.mrf.mxu1 }
 0x700   :  { %v6276_v18 = vadd.f32 %v6275_v54, %v6274_v49 }
 0x701   :  { %6990 = vmatpush3.bf16.msra.mxu0 %v7407_v45  ;;  %v6277_v32 = vpop.f32.mrf.mxu1 }
 0x702   :  { %6367 = vmatprep.subr.bf16.mxu0 %v8311_v20  ;;  %v3760_v61 = vpack.c.bf16 %v6276_v18, %v6273_v30 }
 0x703   :  { %v6278_v24 = vpop.f32.mrf.mxu1 }
 0x704   :  { %6960 = vmatmul.mubr.bf16.gmra.mxu0 %v8276_v48  ;;  %v6279_v42 = vadd.f32 %v6278_v24, %v6277_v32 }
 0x705   :  { %6963 = vmatprep.mubr.bf16.mxu0 %v8337_v13  ;;  %v6280_v5 = vpop.f32.mrf.mxu1 }
 0x707   :  { %v6281_v36 = vpop.f32.mrf.mxu1 }
 0x708   :  { %v6282_v21 = vadd.f32 %v6281_v36, %v6280_v5 }
 0x709   :  { %v6283_v29 = vpop.f32.mrf.mxu1 }
 0x70a   :  { %v3761_v23 = vpack.c.bf16 %v6282_v21, %v6279_v42 }
 0x70b   :  { %v6284_v27 = vpop.f32.mrf.mxu1 }
 0x70c   :  { %6964 = vmatmul.mubr.bf16.gmra.mxu0 %v8284_v46  ;;  %v6285_v52 = vadd.f32 %v6284_v27, %v6283_v29 }
 0x70d   :  { %6967 = vmatprep.mubr.bf16.mxu0 %v8299_v33  ;;  %v6286_v53 = vpop.f32.mrf.mxu1 }
 0x70f   :  { %v6287_v28 = vpop.f32.mrf.mxu1 }
 0x710   :  { %v6288_v22 = vadd.f32 %v6287_v28, %v6286_v53 }
 0x711   :  { %v8415_v43 = vpop.f32.mrf.mxu1 }
 0x712   :  { %v3762_v45 = vpack.c.bf16 %v6288_v22, %v6285_v52 }
 0x713   :  { %v6290_v17 = vpop.f32.mrf.mxu1 }
 0x714   :  { %6968 = vmatmul.mubr.bf16.gmra.mxu0 %v8296_v10  ;;  %v6291_v32 = vadd.f32 %v6290_v17, %v8415_v43 }
 0x715   :  { %6971 = vmatprep.mubr.bf16.mxu0 %v8314_v57  ;;  %v6292_v56 = vpop.f32.mrf.mxu1 }
 0x717   :  { %v6293_v14 = vpop.f32.mrf.mxu1 }
 0x718   :  { %v6294_v54 = vadd.f32 %v6293_v14, %v6292_v56 }
 0x719   :  { %v6295_v2 = vpop.f32.mrf.mxu1 }
 0x71a   :  { %v3763_v27 = vpack.c.bf16 %v6294_v54, %v6291_v32 }
 0x71b   :  { %v6296_v16 = vpop.f32.mrf.mxu1 }
 0x71c   :  { %6972 = vmatmul.mubr.bf16.gmra.mxu0 %v8311_v20  ;;  %v6297_v24 = vadd.f32 %v6296_v16, %v6295_v2 }
 0x71d   :  { %v6298_v31 = vpop.f32.mrf.mxu1  ;;  %6991 = vmatprep.mubr.bf16.mxu0 %v3756_v37 }
 0x71f   :  { %v6299_v8 = vpop.f32.mrf.mxu1 }
 0x720   :  { %v6300_v5 = vadd.f32 %v6299_v8, %v6298_v31 }
 0x721   :  { %v6301_v12 = vpop.f32.mrf.mxu1 }
 0x722   :  { %v3764_v28 = vpack.c.bf16 %v6300_v5, %v6297_v24 }
 0x723   :  { %v6302_v38 = vpop.f32.mrf.mxu1 }
 0x724   :  { %6992 = vmatmul.mubr.bf16.vlgmr.msra.gmra.mxu0 %v3757_v40  ;;  %v6303_v2 = vadd.f32 %v6302_v38, %v6301_v12 }
 0x725   :  { %6368 = vmatpush3.bf16.msra.mxu0 %v8265_v3  ;;  %v6304_v20 = vpop.f32.mrf.mxu1  ;;  %6995 = vmatprep.mubr.bf16.mxu0 %v3758_v50 }
 0x726   :  { %6369 = vmatprep.subr.bf16.mxu0 %v8314_v57 }
 0x727   :  { %v6305_v9 = vpop.f32.mrf.mxu1 }
 0x728   :  { %v6306_v14 = vadd.f32 %v6305_v9, %v6304_v20 }
 0x729   :  { %6370 = vmatpush3.bf16.msra.mxu0 %v8268_v59  ;;  %v6307_v25 = vpop.f32.mrf.mxu1 }
 0x72a   :  { %6371 = vmatprep.subr.bf16.mxu0 %v8296_v10  ;;  %v3765_v31 = vpack.c.bf16 %v6306_v14, %v6303_v2  ;;  %v7498_v14 = vld [vmem:[#allocation2 + $0x214] ss:$8 sps:$4 sm:$0xff]  }
 0x72b   :  { %v6308_v47 = vpop.f32.mrf.mxu1 }
 0x72c   :  { %6996 = vmatmul.mubr.bf16.gmra.mxu0 %v3759_v63  ;;  %v8445_v53 = vpop.f32.mrf.mxu0  ;;  %v6309_v37 = vadd.f32 %v6308_v47, %v6307_v25 }
 0x72d   :  { %6372 = vmatpush3.bf16.msra.mxu0 %v8250_v0  ;;  %v6310_v7 = vpop.f32.mrf.mxu1  ;;  %6999 = vmatprep.mubr.bf16.mxu0 %v3760_v61 }
 0x72e   :  { %6373 = vmatprep.subr.bf16.mxu0 %v8299_v33  ;;  %v8449_v43 = vpop.f32.mrf.mxu0 }
 0x72f   :  { %v6311_v51 = vpop.f32.mrf.mxu1 }
 0x730   :  { %v6312_v17 = vadd.f32 %v6311_v51, %v6310_v7  ;;  %v8452_v41 = vpop.f32.mrf.mxu0 }
 0x731   :  { %6374 = vmatpush3.bf16.msra.mxu0 %v8253_v34  ;;  %v6313_v44 = vpop.f32.mrf.mxu1 }
 0x732   :  { %6375 = vmatprep.subr.bf16.mxu0 %v8284_v46  ;;  %v3766_v19 = vpack.c.bf16 %v6312_v17, %v6309_v37  ;;  %v8454_v40 = vpop.f32.mrf.mxu0  ;;  %v7500_v37 = vld [vmem:[#allocation2 + $0x224] ss:$8 sps:$4 sm:$0xff]  }
 0x733   :  { %v6314_v15 = vpop.f32.mrf.mxu1  ;;  %8967 = vst [vmem:[#allocation24_spill] sm:$0xff] %v8454_v40 }
 0x734   :  { %7000 = vmatmul.mubr.bf16.gmra.mxu0 %v3761_v23  ;;  %v6315_v62 = vadd.f32 %v6314_v15, %v6313_v44 }
 0x735   :  { %6376 = vmatpush3.bf16.msra.mxu0 %v8235_v11  ;;  %v6316_v49 = vpop.f32.mrf.mxu1  ;;  %7003 = vmatprep.mubr.bf16.mxu0 %v3762_v45 }
 0x736   :  { %6377 = vmatprep.subr.bf16.mxu0 %v8337_v13 }
 0x737   :  { %v6317_v36 = vpop.f32.mrf.mxu1 }
 0x738   :  { %v6318_v60 = vadd.f32 %v6317_v36, %v6316_v49 }
 0x739   :  { %6378 = vmatpush3.bf16.msra.mxu0 %v8238_v55  ;;  %v6319_v29 = vpop.f32.mrf.mxu1 }
 0x73a   :  { %6379 = vmatprep.subr.bf16.mxu0 %v8276_v48  ;;  %v3767_v9 = vpack.c.bf16 %v6318_v60, %v6315_v62 }
 0x73b   :  { %v6320_v39 = vpop.f32.mrf.mxu1 }
 0x73c   :  { %7004 = vmatmul.mubr.bf16.gmra.mxu0 %v3763_v27  ;;  %v8456_v18 = vpop.f32.mrf.mxu0  ;;  %v6321_v12 = vadd.f32 %v6320_v39, %v6319_v29  ;;  %v7496_v29 = vld [vmem:[#allocation2 + $0x204] ss:$8 sps:$4 sm:$0xff]   ;;  %v7497_v39 = vld [vmem:[#allocation2 + $0x200] ss:$8 sps:$4 sm:$0xff]  }
 0x73d   :  { %6380 = vmatpush3.bf16.msra.mxu0 %v8220_v4  ;;  %v6322_v56 = vpop.f32.mrf.mxu1  ;;  %7007 = vmatprep.mubr.bf16.mxu0 %v3764_v28 }
 0x73e   :  { %6381 = vmatprep.subr.bf16.mxu0 %v8347_v35  ;;  %v8458_v25 = vpop.f32.mrf.mxu0  ;;  %v7526_v35 = vld [vmem:[#allocation2 + $0x2f4] ss:$8 sps:$4 sm:$0xff]  }
 0x73f   :  { %v6323_v1 = vpop.f32.mrf.mxu1 }
 0x740   :  { %v6324_v50 = vadd.f32 %v6323_v1, %v6322_v56  ;;  %v8460_v51 = vpop.f32.mrf.mxu0  ;;  %v7499_v1 = vld [vmem:[#allocation2 + $0x210] ss:$8 sps:$4 sm:$0xff]  }
 0x741   :  { %6382 = vmatpush3.bf16.msra.mxu0 %v8223_v26  ;;  %v6325_v16 = vpop.f32.mrf.mxu1 }
 0x742   :  { %v3768_v58 = vpack.c.bf16 %v6324_v50, %v6321_v12  ;;  %v8462_v45 = vpop.f32.mrf.mxu0  ;;  %v7503_v50 = vld [vmem:[#allocation2 + $0x230] ss:$8 sps:$4 sm:$0xff]  }
 0x743   :  { %v6326_v8 = vpop.f32.mrf.mxu1  ;;  %8968 = vst [vmem:[#allocation32_spill] sm:$0xff] %v8462_v45 }
 0x744   :  { %7008 = vmatmul.mubr.bf16.gmra.mxu0 %v3765_v31  ;;  %v6327_v7 = vadd.f32 %v6326_v8, %v6325_v16  ;;  %v7502_v8 = vld [vmem:[#allocation2 + $0x234] ss:$8 sps:$4 sm:$0xff]  }
 0x745   :  { %v6328_v6 = vpop.f32.mrf.mxu1  ;;  %7011 = vmatprep.mubr.bf16.mxu0 %v3766_v19  ;;  %v7501_v19 = vld [vmem:[#allocation2 + $0x220] ss:$8 sps:$4 sm:$0xff]  }
 0x747   :  { %v6329_v20 = vpop.f32.mrf.mxu1 }
 0x748   :  { %v6330_v61 = vadd.f32 %v6329_v20, %v6328_v6  ;;  %v7504_v20 = vld [vmem:[#allocation2 + $0x244] ss:$8 sps:$4 sm:$0xff]  }
 0x749   :  { %v6331_v38 = vpop.f32.mrf.mxu1 }
 0x74a   :  { %v3769_v52 = vpack.c.bf16 %v6330_v61, %v6327_v7 }
 0x74b   :  { %v6332_v30 = vpop.f32.mrf.mxu1 }
 0x74c   :  { %7012 = vmatmul.mubr.bf16.gmra.mxu0 %v3767_v9  ;;  %v6333_v21 = vadd.f32 %v6332_v30, %v6331_v38  ;;  %v8464_v49 = vpop.f32.mrf.mxu0  ;;  %v7505_v38 = vld [vmem:[#allocation2 + $0x240] ss:$8 sps:$4 sm:$0xff]  }
 0x74d   :  { %v6334_v63 = vpop.f32.mrf.mxu1  ;;  %7015 = vmatprep.mubr.bf16.mxu0 %v3768_v58  ;;  %v7506_v58 = vld [vmem:[#allocation2 + $0x254] ss:$8 sps:$4 sm:$0xff]  }
 0x74e   :  { %v8466_v24 = vpop.f32.mrf.mxu0 }
 0x74f   :  { %v6335_v47 = vpop.f32.mrf.mxu1 }
 0x750   :  { %v6336_v22 = vadd.f32 %v6335_v47, %v6334_v63  ;;  %v8468_v27 = vpop.f32.mrf.mxu0  ;;  %v7507_v63 = vld [vmem:[#allocation2 + $0x250] ss:$8 sps:$4 sm:$0xff]   ;;  %v7508_v47 = vld [vmem:[#allocation2 + $0x264] ss:$8 sps:$4 sm:$0xff]  }
 0x751   :  { %v6337_v42 = vpop.f32.mrf.mxu1 }
 0x752   :  { %v3770_v44 = vpack.c.bf16 %v6336_v22, %v6333_v21  ;;  %v8470_v28 = vpop.f32.mrf.mxu0  ;;  %v7509_v22 = vld [vmem:[#allocation2 + $0x260] ss:$8 sps:$4 sm:$0xff]  }
 0x753   :  { %v6338_v23 = vpop.f32.mrf.mxu1  ;;  %8969 = vst [vmem:[#allocation25_spill] sm:$0xff] %v8470_v28  ;;  %v7522_v28 = vld [vmem:[#allocation2 + $0x2d4] ss:$8 sps:$4 sm:$0xff]  }
 0x754   :  { %7016 = vmatmul.mubr.bf16.gmra.mxu0 %v3769_v52  ;;  %v6339_v5 = vadd.f32 %v6338_v23, %v6337_v42  ;;  %v7510_v42 = vld [vmem:[#allocation2 + $0x274] ss:$8 sps:$4 sm:$0xff]  }
 0x755   :  { %v6340_v15 = vpop.f32.mrf.mxu1  ;;  %7019 = vmatprep.mubr.bf16.mxu0 %v3770_v44 }
 0x757   :  { %v6341_v54 = vpop.f32.mrf.mxu1 }
 0x758   :  { %v6342_v36 = vadd.f32 %v6341_v54, %v6340_v15  ;;  %v7511_v15 = vld [vmem:[#allocation2 + $0x270] ss:$8 sps:$4 sm:$0xff]   ;;  %v7512_v54 = vld [vmem:[#allocation2 + $0x284] ss:$8 sps:$4 sm:$0xff]  }
 0x75a   :  { %v3771_v32 = vpack.c.bf16 %v6342_v36, %v6339_v5 }
 0x75c   :  { %7020 = vmatmul.mubr.bf16.gmra.mxu0 %v3771_v32  ;;  %v8472_v56 = vpop.f32.mrf.mxu0 }
 0x75d   :  { %4062 = vmatprep.mubr.bf16.mxu0 %v7496_v29 }
 0x75e   :  { %v8474_v17 = vpop.f32.mrf.mxu0 }
 0x760   :  { %v8476_v2 = vpop.f32.mrf.mxu0 }
 0x762   :  { %v8478_v16 = vpop.f32.mrf.mxu0 }
 0x763   :  { %8970 = vst [vmem:[#allocation33_spill] sm:$0xff] %v8478_v16 }
 0x764   :  { %4063 = vmatmul.mubr.bf16.vlgmr.msra.gmra.mxu0 %v7497_v39  ;;  %v7513_v39 = vld [vmem:[#allocation2 + $0x280] ss:$8 sps:$4 sm:$0xff]  }
 0x765   :  { %4070 = vmatprep.mubr.bf16.mxu0 %v7498_v14  ;;  %v7514_v14 = vld [vmem:[#allocation2 + $0x294] ss:$8 sps:$4 sm:$0xff]  }
 0x76c   :  { %4071 = vmatmul.mubr.bf16.gmra.mxu0 %v7499_v1  ;;  %v8480_v31 = vpop.f32.mrf.mxu0 }
 0x76d   :  { %4078 = vmatprep.mubr.bf16.mxu0 %v7500_v37 }
 0x76e   :  { %v8482_v6 = vpop.f32.mrf.mxu0 }
 0x770   :  { %v8484_v60 = vpop.f32.mrf.mxu0 }
 0x772   :  { %v8486_v62 = vpop.f32.mrf.mxu0 }
 0x773   :  { %8971 = vst [vmem:[#allocation28_spill] sm:$0xff] %v8486_v62 }
 0x774   :  { %4079 = vmatmul.mubr.bf16.gmra.mxu0 %v7501_v19 }
 0x775   :  { %4086 = vmatprep.mubr.bf16.mxu0 %v7502_v8 }
 0x77c   :  { %4087 = vmatmul.mubr.bf16.gmra.mxu0 %v7503_v50  ;;  %v8488_v12 = vpop.f32.mrf.mxu0  ;;  %v7515_v50 = vld [vmem:[#allocation2 + $0x290] ss:$8 sps:$4 sm:$0xff]  }
 0x77d   :  { %4094 = vmatprep.mubr.bf16.mxu0 %v7504_v20  ;;  %v7516_v20 = vld [vmem:[#allocation2 + $0x2a4] ss:$8 sps:$4 sm:$0xff]  }
 0x77e   :  { %v8490_v9 = vpop.f32.mrf.mxu0 }
 0x780   :  { %v8492_v30 = vpop.f32.mrf.mxu0 }
 0x782   :  { %v8494_v61 = vpop.f32.mrf.mxu0 }
 0x783   :  { %8972 = vst [vmem:[#allocation36_spill] sm:$0xff] %v8494_v61 }
 0x784   :  { %4095 = vmatmul.mubr.bf16.gmra.mxu0 %v7505_v38 }
 0x785   :  { %4102 = vmatprep.mubr.bf16.mxu0 %v7506_v58 }
 0x78c   :  { %4103 = vmatmul.mubr.bf16.gmra.mxu0 %v7507_v63  ;;  %v8496_v7 = vpop.f32.mrf.mxu0 }
 0x78d   :  { %4110 = vmatprep.mubr.bf16.mxu0 %v7508_v47 }
 0x78e   :  { %v8498_v21 = vpop.f32.mrf.mxu0 }
 0x790   :  { %v8500_v52 = vpop.f32.mrf.mxu0 }
 0x792   :  { %v8502_v44 = vpop.f32.mrf.mxu0 }
 0x794   :  { %4111 = vmatmul.mubr.bf16.gmra.mxu0 %v7509_v22  ;;  %v7517_v22 = vld [vmem:[#allocation2 + $0x2a0] ss:$8 sps:$4 sm:$0xff]  }
 0x795   :  { %4118 = vmatprep.mubr.bf16.mxu0 %v7510_v42  ;;  %v7518_v42 = vld [vmem:[#allocation2 + $0x2b4] ss:$8 sps:$4 sm:$0xff]  }
 0x79c   :  { %v8504_v23 = vpop.f32.mrf.mxu0  ;;  %4119 = vmatmul.mubr.bf16.gmra.mxu0 %v7511_v15 }
 0x79d   :  { %4126 = vmatprep.mubr.bf16.mxu0 %v7512_v54 }
 0x79e   :  { %v8506_v5 = vpop.f32.mrf.mxu0 }
 0x7a0   :  { %v8508_v36 = vpop.f32.mrf.mxu0 }
 0x7a2   :  { %v8510_v32 = vpop.f32.mrf.mxu0 }
 0x7a4   :  { %v8512_v29 = vpop.f32.mrf.mxu0  ;;  %4127 = vmatmul.mubr.bf16.gmra.mxu0 %v7513_v39 }
 0x7a5   :  { %4134 = vmatprep.mubr.bf16.mxu0 %v7514_v14  ;;  %v3477_v46 = vadd.f32 %v8512_v29, %v8445_v53 }
 0x7a6   :  { %v3468_v1 = vpop.f32.mrf.mxu0 }
 0x7a7   :  { %v3469_v33 = vadd.f32 %v3468_v1, %v8449_v43 }
 0x7a8   :  { %v8514_v37 = vpop.f32.mrf.mxu0 }
 0x7aa   :  { %v8516_v19 = vpop.f32.mrf.mxu0 }
 0x7ab   :  { %8973 = vst [vmem:[#allocation29_spill] sm:$0xff] %v8516_v19  ;;  %v7524_v19 = vld [vmem:[#allocation2 + $0x2e4] ss:$8 sps:$4 sm:$0xff]  }
 0x7ac   :  { %v8518_v8 = vpop.f32.mrf.mxu0  ;;  %4135 = vmatmul.mubr.bf16.gmra.mxu0 %v7515_v50  ;;  %v7519_v50 = vld [vmem:[#allocation2 + $0x2b0] ss:$8 sps:$4 sm:$0xff]  }
 0x7ad   :  { %4142 = vmatprep.mubr.bf16.mxu0 %v7516_v20  ;;  %v7520_v20 = vld [vmem:[#allocation2 + $0x2c4] ss:$8 sps:$4 sm:$0xff]  }
 0x7ae   :  { %v8520_v38 = vpop.f32.mrf.mxu0 }
 0x7af   :  { %v3485_v43 = vadd.f32 %v8520_v38, %v8458_v25 }
 0x7b0   :  { %v8522_v58 = vpop.f32.mrf.mxu0 }
 0x7b2   :  { %v8524_v63 = vpop.f32.mrf.mxu0 }
 0x7b3   :  { %8974 = vst [vmem:[#allocation27_spill] sm:$0xff] %v8524_v63 }
 0x7b4   :  { %v8526_v47 = vpop.f32.mrf.mxu0  ;;  %4143 = vmatmul.mubr.bf16.gmra.mxu0 %v7517_v22 }
 0x7b5   :  { %4150 = vmatprep.mubr.bf16.mxu0 %v7518_v42  ;;  %v7521_v42 = vld [vmem:[#allocation2 + $0x2c0] ss:$8 sps:$4 sm:$0xff]  }
 0x7b6   :  { %v8528_v15 = vpop.f32.mrf.mxu0 }
 0x7b7   :  { %v3501_v25 = vadd.f32 %v8528_v15, %v8466_v24 }
 0x7b8   :  { %v8530_v54 = vpop.f32.mrf.mxu0 }
 0x7ba   :  { %v8532_v39 = vpop.f32.mrf.mxu0 }
 0x7bb   :  { %8975 = vst [vmem:[#allocation35_spill] sm:$0xff] %v8532_v39 }
 0x7bc   :  { %v8534_v14 = vpop.f32.mrf.mxu0  ;;  %4151 = vmatmul.mubr.bf16.gmra.mxu0 %v7519_v50 }
 0x7bd   :  { %4158 = vmatprep.mubr.bf16.mxu0 %v7520_v20  ;;  %v7523_v20 = vld [vmem:[#allocation2 + $0x2d0] ss:$8 sps:$4 sm:$0xff]  }
 0x7be   :  { %v8536_v61 = vpop.f32.mrf.mxu0 }
 0x7bf   :  { %v3517_v24 = vadd.f32 %v8536_v61, %v8474_v17 }
 0x7c0   :  { %v8538_v62 = vpop.f32.mrf.mxu0 }
 0x7c2   :  { %v8540_v16 = vpop.f32.mrf.mxu0 }
 0x7c3   :  { %8976 = vst [vmem:[#allocation26_spill] sm:$0xff] %v8540_v16 }
 0x7c4   :  { %v8542_v22 = vpop.f32.mrf.mxu0  ;;  %4159 = vmatmul.mubr.bf16.gmra.mxu0 %v7521_v42 }
 0x7c5   :  { %4166 = vmatprep.mubr.bf16.mxu0 %v7522_v28  ;;  %v7525_v28 = vld [vmem:[#allocation2 + $0x2e0] ss:$8 sps:$4 sm:$0xff]  }
 0x7c6   :  { %v8544_v63 = vpop.f32.mrf.mxu0 }
 0x7c7   :  { %v3533_v17 = vadd.f32 %v8544_v63, %v8482_v6 }
 0x7c8   :  { %v8546_v39 = vpop.f32.mrf.mxu0 }
 0x7ca   :  { %v8548_v45 = vpop.f32.mrf.mxu0 }
 0x7cb   :  { %8977 = vst [vmem:[#allocation34_spill] sm:$0xff] %v8548_v45 }
 0x7cc   :  { %v8550_v50 = vpop.f32.mrf.mxu0  ;;  %4167 = vmatmul.mubr.bf16.gmra.mxu0 %v7523_v20 }
 0x7cd   :  { %4174 = vmatprep.mubr.bf16.mxu0 %v7524_v19  ;;  %v7527_v19 = vld [vmem:[#allocation2 + $0x2f0] ss:$8 sps:$4 sm:$0xff]  }
 0x7ce   :  { %v8552_v40 = vpop.f32.mrf.mxu0 }
 0x7cf   :  { %v3549_v6 = vadd.f32 %v8552_v40, %v8490_v9 }
 0x7d0   :  { %v8554_v16 = vpop.f32.mrf.mxu0 }
 0x7d2   :  { %v8556_v26 = vpop.f32.mrf.mxu0 }
 0x7d3   :  { %8978 = vst [vmem:[#allocation37_spill] sm:$0xff] %v8556_v26 }
 0x7d4   :  { %v8558_v42 = vpop.f32.mrf.mxu0  ;;  %4175 = vmatmul.mubr.bf16.gmra.mxu0 %v7525_v28 }
 0x7d5   :  { %4182 = vmatprep.mubr.bf16.mxu0 %v7526_v35 }
 0x7d6   :  { %v8560_v4 = vpop.f32.mrf.mxu0 }
 0x7d7   :  { %v3565_v40 = vadd.f32 %v8560_v4, %v8498_v21 }
 0x7d8   :  { %v8562_v45 = vpop.f32.mrf.mxu0 }
 0x7da   :  { %v8564_v48 = vpop.f32.mrf.mxu0 }
 0x7dc   :  { %v6973_v20 = vpop.f32.mrf.mxu0  ;;  %4183 = vmatmul.mubr.bf16.gmra.mxu0 %v7527_v19 }
 0x7dd   :  { %v8567_v55 = vadd.f32 %v6973_v20, %v8504_v23  ;;  %v3480_v20 = vadd.f32 %v8514_v37, %v8452_v41  ;;  %v3496_v41 = vadd.f32 %v8522_v58, %v8460_v51  ;;  %v3512_v51 = vadd.f32 %v8530_v54, %v8468_v27 }
 0x7de   :  { %v3580_v13 = vpop.f32.mrf.mxu0  ;;  %v3528_v27 = vadd.f32 %v8538_v62, %v8476_v2  ;;  %v3544_v2 = vadd.f32 %v8546_v39, %v8484_v60  ;;  %v3560_v60 = vadd.f32 %v8554_v16, %v8492_v30  ;;  %v3576_v16 = vadd.f32 %v8562_v45, %v8500_v52 }
 0x7df   :  { %v8570_v26 = vadd.f32 %v3580_v13, %v8506_v5 }
 0x7e0   :  { %v6974_v11 = vpop.f32.mrf.mxu0 }
 0x7e1   :  { %v8573_v28 = vadd.f32 %v6974_v11, %v8508_v36  ;;  %v3493_v36 = vadd.f32 %v8518_v8, %v8456_v18  ;;  %v3509_v18 = vadd.f32 %v8526_v47, %v8464_v49  ;;  %v3525_v49 = vadd.f32 %v8534_v14, %v8472_v56 }
 0x7e2   :  { %v8575_v35 = vpop.f32.mrf.mxu0  ;;  %v3541_v56 = vadd.f32 %v8542_v22, %v8480_v31  ;;  %v3557_v31 = vadd.f32 %v8550_v50, %v8488_v12  ;;  %v3573_v12 = vadd.f32 %v8558_v42, %v8496_v7 }
 0x7e3   :  { %v3584_v52 = vadd.f32 %v8575_v35, %v8510_v32 }
 0x7e4   :  { %v6993_v34 = vpop.f32.mrf.mxu0 }
 0x7e5   :  { %v8580_v19 = vadd.f32 %v6993_v34, %v3477_v46 }
 0x7e6   :  { %v3871_v23 = vpop.f32.mrf.mxu0 }
 0x7e7   :  { %v8584_v13 = vadd.f32 %v3871_v23, %v3469_v33 }
 0x7e8   :  { %v6994_v5 = vpop.f32.mrf.mxu0 }
 0x7e9   :  { %v8586_v0 = vadd.f32 %v6994_v5, %v3480_v20 }
 0x7ea   :  { %v8588_v11 = vpop.f32.mrf.mxu0 }
 0x7ec   :  { %v6997_v53 = vpop.f32.mrf.mxu0 }
 0x7ed   :  { %v8594_v34 = vadd.f32 %v6997_v53, %v3493_v36 }
 0x7ee   :  { %v3887_v46 = vpop.f32.mrf.mxu0 }
 0x7ef   :  { %v8598_v33 = vadd.f32 %v3887_v46, %v3485_v43 }
 0x7f0   :  { %v6998_v29 = vpop.f32.mrf.mxu0 }
 0x7f1   :  { %v8600_v1 = vadd.f32 %v6998_v29, %v3496_v41 }
 0x7f2   :  { %v8602_v37 = vpop.f32.mrf.mxu0 }
 0x7f4   :  { %v7001_v8 = vpop.f32.mrf.mxu0 }
 0x7f5   :  { %v8608_v38 = vadd.f32 %v7001_v8, %v3509_v18 }
 0x7f6   :  { %v3903_v23 = vpop.f32.mrf.mxu0 }
 0x7f7   :  { %v8612_v58 = vadd.f32 %v3903_v23, %v3501_v25 }
 0x7f8   :  { %v7002_v20 = vpop.f32.mrf.mxu0 }
 0x7f9   :  { %v8614_v5 = vadd.f32 %v7002_v20, %v3512_v51 }
 0x7fa   :  { %v8616_v36 = vpop.f32.mrf.mxu0 }
 0x7fc   :  { %v7005_v47 = vpop.f32.mrf.mxu0 }
 0x7fd   :  { %v8622_v15 = vadd.f32 %v7005_v47, %v3525_v49 }
 0x7fe   :  { %v3919_v53 = vpop.f32.mrf.mxu0 }
 0x7ff   :  { %v8626_v54 = vadd.f32 %v3919_v53, %v3517_v24  ;;  %v3568_v53 = vadd.f32 %v8564_v48, %v8502_v44 }
 0x800   :  { %v7006_v43 = vpop.f32.mrf.mxu0 }
 0x801   :  { %v8628_v46 = vadd.f32 %v7006_v43, %v3528_v27 }
 0x802   :  { %v8630_v41 = vpop.f32.mrf.mxu0 }
 0x804   :  { %v7009_v14 = vpop.f32.mrf.mxu0 }
 0x805   :  { %v8636_v61 = vadd.f32 %v7009_v14, %v3541_v56 }
 0x806   :  { %v3935_v29 = vpop.f32.mrf.mxu0 }
 0x807   :  { %v8640_v62 = vadd.f32 %v3935_v29, %v3533_v17 }
 0x808   :  { %v7010_v18 = vpop.f32.mrf.mxu0 }
 0x809   :  { %v8642_v8 = vadd.f32 %v7010_v18, %v3544_v2 }
 0x80a   :  { %v8644_v25 = vpop.f32.mrf.mxu0 }
 0x80c   :  { %v7013_v22 = vpop.f32.mrf.mxu0 }
 0x80d   :  { %v8650_v63 = vadd.f32 %v7013_v22, %v3557_v31 }
 0x80e   :  { %v3951_v23 = vpop.f32.mrf.mxu0 }
 0x80f   :  { %v8654_v39 = vadd.f32 %v3951_v23, %v3549_v6 }
 0x810   :  { %v7014_v51 = vpop.f32.mrf.mxu0 }
 0x811   :  { %v8656_v20 = vadd.f32 %v7014_v51, %v3560_v60 }
 0x812   :  { %v8658_v49 = vpop.f32.mrf.mxu0 }
 0x814   :  { %v7017_v50 = vpop.f32.mrf.mxu0 }
 0x815   :  { %v8664_v9 = vadd.f32 %v7017_v50, %v3573_v12 }
 0x816   :  { %v3967_v47 = vpop.f32.mrf.mxu0 }
 0x817   :  { %v8668_v30 = vadd.f32 %v3967_v47, %v3565_v40 }
 0x818   :  { %v7018_v24 = vpop.f32.mrf.mxu0 }
 0x819   :  { %v8672_v27 = vadd.f32 %v7018_v24, %v3576_v16 }
 0x81a   :  { %v3970_v43 = vpop.f32.mrf.mxu0 }
 0x81b   :  { %v8674_v7 = vadd.f32 %v3970_v43, %v3568_v53 }
 0x81c   :  { %v7021_v42 = vpop.f32.mrf.mxu0 }
 0x81d   :  { %v8677_v4 = vadd.f32 %v7021_v42, %v8567_v55  ;;  %v8979_v42 = vld [vmem:[#allocation16_spill] sm:$0xff] }
 0x81e   :  { %v3983_v21 = vpop.f32.mrf.mxu0 }
 0x81f   :  { %v8680_v56 = vadd.f32 %v3983_v21, %v8570_v26 }
 0x820   :  { %v7022_v45 = vpop.f32.mrf.mxu0 }
 0x821   :  { %v8685_v14 = vadd.f32 %v7022_v45, %v8573_v28  ;;  %v8980_v45 = vld [vmem:[#allocation30_spill] sm:$0xff] }
 0x822   :  { %v3986_v48 = vpop.f32.mrf.mxu0 }
 0x823   :  { %v8687_v44 = vadd.f32 %v3986_v48, %v3584_v52 }
 0x824   :  { %v6383_v17 = vpop.f32.mrf.mxu0 }
 0x826   :  { %v6384_v29 = vpop.f32.mrf.mxu0 }
 0x827   :  { %v6385_v55 = vadd.f32 %v6384_v29, %v6383_v17 }
 0x828   :  { %v6386_v2 = vpop.f32.mrf.mxu0 }
 0x82a   :  { %v6387_v18 = vpop.f32.mrf.mxu0 }
 0x82b   :  { %v6388_v31 = vadd.f32 %v6387_v18, %v6386_v2  ;;  %v8982_v2 = vld [vmem:[#allocation22_spill] sm:$0xff]  ;;  %v8983_v18 = vld [vmem:[#allocation17_spill] sm:$0xff] }
 0x82c   :  { %v6389_v22 = vpop.f32.mrf.mxu0 }
 0x82d   :  { %v4191_v6 = vpack.c.bf16 %v6388_v31, %v6385_v55  ;;  %v8984_v55 = vld [vmem:[#allocation23_spill] sm:$0xff] }
 0x82e   :  { %v6390_v26 = vpop.f32.mrf.mxu0 }
 0x82f   :  { %7039 = vmatprep.mubr.bf16.mxu1 %v4191_v6  ;;  %v6391_v51 = vadd.f32 %v6390_v26, %v6389_v22  ;;  %v8985_v26 = vld [vmem:[#allocation20_spill] sm:$0xff] }
 0x830   :  { %v6392_v23 = vpop.f32.mrf.mxu0 }
 0x832   :  { %v6393_v60 = vpop.f32.mrf.mxu0 }
 0x833   :  { %v6394_v32 = vadd.f32 %v6393_v60, %v6392_v23 }
 0x834   :  { %v6395_v35 = vpop.f32.mrf.mxu0 }
 0x835   :  { %v4192_v28 = vpack.c.bf16 %v6394_v32, %v6391_v51  ;;  %v8986_v51 = vld [vmem:[#allocation15_spill] sm:$0xff] }
 0x836   :  { %v6396_v12 = vpop.f32.mrf.mxu0 }
 0x837   :  { %7040 = vmatmul.mubr.bf16.vlgmr.msra.gmra.mxu1 %v4192_v28  ;;  %v6397_v47 = vadd.f32 %v6396_v12, %v6395_v35  ;;  %v8987_v35 = vld [vmem:[#allocation18_spill] sm:$0xff]  ;;  %v8988_v12 = vld [vmem:[#allocation31_spill] sm:$0xff] }
 0x838   :  { %6504 = vmatpush3.bf16.msra.mxu1 %v8265_v3  ;;  %v6398_v50 = vpop.f32.mrf.mxu0 }
 0x839   :  { %6505 = vmatprep.subr.bf16.mxu1 %v8314_v57  ;;  %v8981_v57 = vld [vmem:[#allocation19_spill] sm:$0xff] }
 0x83a   :  { %v6399_v40 = vpop.f32.mrf.mxu0 }
 0x83b   :  { %v6400_v16 = vadd.f32 %v6399_v40, %v6398_v50 }
 0x83c   :  { %6506 = vmatpush3.bf16.msra.mxu1 %v8268_v59  ;;  %v6401_v24 = vpop.f32.mrf.mxu0 }
 0x83d   :  { %v4193_v53 = vpack.c.bf16 %v6400_v16, %v6397_v47  ;;  %6507 = vmatprep.subr.bf16.mxu1 %v8296_v10  ;;  %v8989_v16 = vld [vmem:[#allocation21_spill] sm:$0xff] }
 0x83e   :  { %v6402_v43 = vpop.f32.mrf.mxu0 }
 0x83f   :  { %7043 = vmatprep.mubr.bf16.mxu1 %v4193_v53  ;;  %v6403_v52 = vadd.f32 %v6402_v43, %v6401_v24 }
 0x840   :  { %6508 = vmatpush3.bf16.msra.mxu1 %v8979_v42  ;;  %v6404_v21 = vpop.f32.mrf.mxu0 }
 0x841   :  { %6509 = vmatprep.subr.bf16.mxu1 %v8980_v45 }
 0x842   :  { %v6405_v3 = vpop.f32.mrf.mxu0 }
 0x843   :  { %v6406_v48 = vadd.f32 %v6405_v3, %v6404_v21 }
 0x844   :  { %6510 = vmatpush3.bf16.msra.mxu1 %v8981_v57  ;;  %v6407_v17 = vpop.f32.mrf.mxu0 }
 0x845   :  { %v4194_v29 = vpack.c.bf16 %v6406_v48, %v6403_v52  ;;  %6511 = vmatprep.subr.bf16.mxu1 %v8982_v2 }
 0x846   :  { %v6408_v59 = vpop.f32.mrf.mxu0 }
 0x847   :  { %7044 = vmatmul.mubr.bf16.gmra.mxu1 %v4194_v29  ;;  %v6409_v22 = vadd.f32 %v6408_v59, %v6407_v17 }
 0x848   :  { %6512 = vmatpush3.bf16.msra.mxu1 %v8983_v18  ;;  %v6410_v10 = vpop.f32.mrf.mxu0 }
 0x849   :  { %6513 = vmatprep.subr.bf16.mxu1 %v8984_v55 }
 0x84a   :  { %v6411_v31 = vpop.f32.mrf.mxu0 }
 0x84b   :  { %v6412_v6 = vadd.f32 %v6411_v31, %v6410_v10 }
 0x84c   :  { %6514 = vmatpush3.bf16.msra.mxu1 %v8985_v26  ;;  %v6413_v23 = vpop.f32.mrf.mxu0 }
 0x84d   :  { %v4195_v60 = vpack.c.bf16 %v6412_v6, %v6409_v22  ;;  %6515 = vmatprep.subr.bf16.mxu1 %v8986_v51 }
 0x84e   :  { %v6414_v32 = vpop.f32.mrf.mxu0 }
 0x84f   :  { %7047 = vmatprep.mubr.bf16.mxu1 %v4195_v60  ;;  %v6415_v40 = vadd.f32 %v6414_v32, %v6413_v23 }
 0x850   :  { %6516 = vmatpush3.bf16.msra.mxu1 %v8987_v35  ;;  %v6416_v28 = vpop.f32.mrf.mxu0 }
 0x851   :  { %6517 = vmatprep.subr.bf16.mxu1 %v8988_v12 }
 0x852   :  { %v6417_v50 = vpop.f32.mrf.mxu0 }
 0x853   :  { %v6418_v47 = vadd.f32 %v6417_v50, %v6416_v28 }
 0x854   :  { %6518 = vmatpush3.bf16.msra.mxu1 %v8989_v16  ;;  %v6419_v24 = vpop.f32.mrf.mxu0 }
 0x855   :  { %v4196_v53 = vpack.c.bf16 %v6418_v47, %v6415_v40 }
 0x856   :  { %v6420_v43 = vpop.f32.mrf.mxu0 }
 0x857   :  { %7048 = vmatmul.mubr.bf16.gmra.mxu1 %v4196_v53  ;;  %v6421_v45 = vadd.f32 %v6420_v43, %v6419_v24 }
 0x858   :  { %v6422_v42 = vpop.f32.mrf.mxu0 }
 0x85a   :  { %v6423_v21 = vpop.f32.mrf.mxu0 }
 0x85b   :  { %v6424_v3 = vadd.f32 %v6423_v21, %v6422_v42 }
 0x85c   :  { %v6425_v52 = vpop.f32.mrf.mxu0 }
 0x85d   :  { %v4197_v48 = vpack.c.bf16 %v6424_v3, %v6421_v45 }
 0x85e   :  { %v6426_v57 = vpop.f32.mrf.mxu0 }
 0x85f   :  { %7051 = vmatprep.mubr.bf16.mxu1 %v4197_v48  ;;  %v6427_v2 = vadd.f32 %v6426_v57, %v6425_v52 }
 0x860   :  { %v6428_v17 = vpop.f32.mrf.mxu0 }
 0x862   :  { %v6429_v29 = vpop.f32.mrf.mxu0 }
 0x863   :  { %v6430_v59 = vadd.f32 %v6429_v29, %v6428_v17 }
 0x864   :  { %v6431_v18 = vpop.f32.mrf.mxu0 }
 0x865   :  { %v4198_v10 = vpack.c.bf16 %v6430_v59, %v6427_v2 }
 0x866   :  { %v6432_v55 = vpop.f32.mrf.mxu0 }
 0x867   :  { %7052 = vmatmul.mubr.bf16.gmra.mxu1 %v4198_v10  ;;  %v6433_v6 = vadd.f32 %v6432_v55, %v6431_v18 }
 0x868   :  { %v6434_v31 = vpop.f32.mrf.mxu0 }
 0x86a   :  { %v6435_v22 = vpop.f32.mrf.mxu0 }
 0x86b   :  { %v6436_v26 = vadd.f32 %v6435_v22, %v6434_v31 }
 0x86c   :  { %v6437_v23 = vpop.f32.mrf.mxu0 }
 0x86d   :  { %v4199_v60 = vpack.c.bf16 %v6436_v26, %v6433_v6 }
 0x86e   :  { %v6438_v51 = vpop.f32.mrf.mxu0 }
 0x86f   :  { %7055 = vmatprep.mubr.bf16.mxu1 %v4199_v60  ;;  %v6439_v28 = vadd.f32 %v6438_v51, %v6437_v23 }
 0x870   :  { %v6440_v32 = vpop.f32.mrf.mxu0 }
 0x872   :  { %v6441_v35 = vpop.f32.mrf.mxu0 }
 0x873   :  { %v6442_v12 = vadd.f32 %v6441_v35, %v6440_v32 }
 0x874   :  { %v6443_v50 = vpop.f32.mrf.mxu0 }
 0x875   :  { %v4200_v40 = vpack.c.bf16 %v6442_v12, %v6439_v28 }
 0x876   :  { %v6444_v47 = vpop.f32.mrf.mxu0 }
 0x877   :  { %7056 = vmatmul.mubr.bf16.gmra.mxu1 %v4200_v40  ;;  %v6445_v53 = vadd.f32 %v6444_v47, %v6443_v50 }
 0x878   :  { %v6446_v16 = vpop.f32.mrf.mxu0 }
 0x87a   :  { %v6447_v24 = vpop.f32.mrf.mxu0 }
 0x87b   :  { %v6448_v43 = vadd.f32 %v6447_v24, %v6446_v16 }
 0x87c   :  { %v6449_v42 = vpop.f32.mrf.mxu0 }
 0x87d   :  { %v4201_v21 = vpack.c.bf16 %v6448_v43, %v6445_v53 }
 0x87e   :  { %v6450_v45 = vpop.f32.mrf.mxu0 }
 0x87f   :  { %7059 = vmatprep.mubr.bf16.mxu1 %v4201_v21  ;;  %v6451_v48 = vadd.f32 %v6450_v45, %v6449_v42 }
 0x880   :  { %v6452_v3 = vpop.f32.mrf.mxu0 }
 0x882   :  { %v6453_v52 = vpop.f32.mrf.mxu0 }
 0x883   :  { %v6454_v57 = vadd.f32 %v6453_v52, %v6452_v3  ;;  %v7528_v52 = vld [vmem:[#allocation2 + $0x304] ss:$8 sps:$4 sm:$0xff]  }
 0x884   :  { %v6455_v17 = vpop.f32.mrf.mxu0 }
 0x885   :  { %v4202_v29 = vpack.c.bf16 %v6454_v57, %v6451_v48  ;;  %v7529_v48 = vld [vmem:[#allocation2 + $0x300] ss:$8 sps:$4 sm:$0xff]   ;;  %v7530_v57 = vld [vmem:[#allocation2 + $0x314] ss:$8 sps:$4 sm:$0xff]  }
 0x886   :  { %v6456_v2 = vpop.f32.mrf.mxu0 }
 0x887   :  { %7060 = vmatmul.mubr.bf16.gmra.mxu1 %v4202_v29  ;;  %v6457_v10 = vadd.f32 %v6456_v2, %v6455_v17  ;;  %v7531_v17 = vld [vmem:[#allocation2 + $0x310] ss:$8 sps:$4 sm:$0xff]   ;;  %v7532_v29 = vld [vmem:[#allocation2 + $0x324] ss:$8 sps:$4 sm:$0xff]   ;;  %v7533_v2 = vld [vmem:[#allocation2 + $0x320] ss:$8 sps:$4 sm:$0xff]  }
 0x888   :  { %v6458_v59 = vpop.f32.mrf.mxu0 }
 0x88a   :  { %v6459_v18 = vpop.f32.mrf.mxu0 }
 0x88b   :  { %v6460_v55 = vadd.f32 %v6459_v18, %v6458_v59  ;;  %v7534_v59 = vld [vmem:[#allocation2 + $0x334] ss:$8 sps:$4 sm:$0xff]   ;;  %v7535_v18 = vld [vmem:[#allocation2 + $0x330] ss:$8 sps:$4 sm:$0xff]  }
 0x88c   :  { %v6461_v31 = vpop.f32.mrf.mxu0 }
 0x88d   :  { %v4203_v22 = vpack.c.bf16 %v6460_v55, %v6457_v10  ;;  %v7536_v10 = vld [vmem:[#allocation2 + $0x344] ss:$8 sps:$4 sm:$0xff]   ;;  %v7537_v55 = vld [vmem:[#allocation2 + $0x340] ss:$8 sps:$4 sm:$0xff]  }
 0x88e   :  { %v6462_v6 = vpop.f32.mrf.mxu0 }
 0x88f   :  { %7063 = vmatprep.mubr.bf16.mxu1 %v4203_v22  ;;  %v6463_v60 = vadd.f32 %v6462_v6, %v6461_v31  ;;  %v7538_v31 = vld [vmem:[#allocation2 + $0x354] ss:$8 sps:$4 sm:$0xff]   ;;  %v7539_v22 = vld [vmem:[#allocation2 + $0x350] ss:$8 sps:$4 sm:$0xff]   ;;  %v7540_v6 = vld [vmem:[#allocation2 + $0x364] ss:$8 sps:$4 sm:$0xff]  }
 0x890   :  { %v6464_v26 = vpop.f32.mrf.mxu0 }
 0x892   :  { %v6465_v23 = vpop.f32.mrf.mxu0 }
 0x893   :  { %v6466_v51 = vadd.f32 %v6465_v23, %v6464_v26  ;;  %v7408_v26 = vld [vmem:[#allocation8 + $0x138] sm:$0xff]   ;;  %v7409_v23 = vld [vmem:[#allocation8 + $0x130] sm:$0xff]  }
 0x894   :  { %v6467_v32 = vpop.f32.mrf.mxu0  ;;  %7071 = vmatprep.subr.bf16.mxu0 %v7408_v26 }
 0x895   :  { %v4204_v35 = vpack.c.bf16 %v6466_v51, %v6463_v60  ;;  %7072 = vmatpush3.bf16.msra.mxu0 %v7408_v26  ;;  %v7541_v60 = vld [vmem:[#allocation2 + $0x360] ss:$8 sps:$4 sm:$0xff]   ;;  %v7542_v51 = vld [vmem:[#allocation2 + $0x374] ss:$8 sps:$4 sm:$0xff]  }
 0x896   :  { %v6468_v28 = vpop.f32.mrf.mxu0  ;;  %7073 = vmatprep.subr.bf16.mxu0 %v7409_v23  ;;  %v8993_v26 = vld [vmem:[#allocation27_spill] sm:$0xff] }
 0x897   :  { %7064 = vmatmul.mubr.bf16.gmra.mxu1 %v4204_v35  ;;  %v6469_v40 = vadd.f32 %v6468_v28, %v6467_v32  ;;  %v7543_v32 = vld [vmem:[#allocation2 + $0x370] ss:$8 sps:$4 sm:$0xff]   ;;  %v7544_v35 = vld [vmem:[#allocation2 + $0x384] ss:$8 sps:$4 sm:$0xff]  }
 0x898   :  { %v6470_v12 = vpop.f32.mrf.mxu0  ;;  %v7410_v28 = vld [vmem:[#allocation8 + $0x128] sm:$0xff]  }
 0x899   :  { %7074 = vmatpush3.bf16.msra.mxu0 %v7409_v23 }
 0x89a   :  { %v6471_v50 = vpop.f32.mrf.mxu0  ;;  %7075 = vmatprep.subr.bf16.mxu0 %v7410_v28 }
 0x89b   :  { %v6472_v47 = vadd.f32 %v6471_v50, %v6470_v12  ;;  %v7411_v12 = vld [vmem:[#allocation8 + $0x120] sm:$0xff]  }
 0x89c   :  { %v6473_v16 = vpop.f32.mrf.mxu0  ;;  %v7545_v50 = vld [vmem:[#allocation2 + $0x380] ss:$8 sps:$4 sm:$0xff]  }
 0x89d   :  { %v4205_v24 = vpack.c.bf16 %v6472_v47, %v6469_v40  ;;  %7076 = vmatpush3.bf16.msra.mxu0 %v7410_v28  ;;  %v7546_v40 = vld [vmem:[#allocation2 + $0x394] ss:$8 sps:$4 sm:$0xff]  }
 0x89e   :  { %v6474_v53 = vpop.f32.mrf.mxu0  ;;  %7077 = vmatprep.subr.bf16.mxu0 %v7411_v12  ;;  %v7412_v47 = vld [vmem:[#allocation8 + $0x118] sm:$0xff]  }
 0x89f   :  { %7067 = vmatprep.mubr.bf16.mxu1 %v4205_v24  ;;  %v6475_v21 = vadd.f32 %v6474_v53, %v6473_v16  ;;  %v7413_v16 = vld [vmem:[#allocation8 + $0x110] sm:$0xff]  }
 0x8a0   :  { %v6476_v43 = vpop.f32.mrf.mxu0  ;;  %v7547_v53 = vld [vmem:[#allocation2 + $0x390] ss:$8 sps:$4 sm:$0xff]  }
 0x8a1   :  { %7078 = vmatpush3.bf16.msra.mxu0 %v7411_v12 }
 0x8a2   :  { %v6477_v42 = vpop.f32.mrf.mxu0  ;;  %7079 = vmatprep.subr.bf16.mxu0 %v7412_v47 }
 0x8a3   :  { %v6478_v45 = vadd.f32 %v6477_v42, %v6476_v43  ;;  %v7548_v42 = vld [vmem:[#allocation2 + $0x3a4] ss:$8 sps:$4 sm:$0xff]  }
 0x8a5   :  { %v4206_v3 = vpack.c.bf16 %v6478_v45, %v6475_v21  ;;  %7080 = vmatpush3.bf16.msra.mxu0 %v7412_v47  ;;  %v7414_v45 = vld [vmem:[#allocation8 + $0x108] sm:$0xff]   ;;  %v7555_v47 = vld [vmem:[#allocation2 + $0x3d0] ss:$8 sps:$4 sm:$0xff]  }
 0x8a6   :  { %7081 = vmatprep.subr.bf16.mxu0 %v7413_v16 }
 0x8a7   :  { %7068 = vmatmul.mubr.bf16.gmra.mxu1 %v4206_v3  ;;  %v8990_v3 = vld [vmem:[#allocation24_spill] sm:$0xff] }
 0x8a8   :  { %4497 = vmatprep.mubr.bf16.mxu1 %v7528_v52  ;;  %v8991_v52 = vld [vmem:[#allocation29_spill] sm:$0xff] }
 0x8a9   :  { %7082 = vmatpush3.bf16.msra.mxu0 %v7413_v16 }
 0x8aa   :  { %7083 = vmatprep.subr.bf16.mxu0 %v7414_v45 }
 0x8ad   :  { %7084 = vmatpush3.bf16.msra.mxu0 %v7414_v45 }
 0x8af   :  { %4498 = vmatmul.mubr.bf16.vlgmr.msra.gmra.mxu1 %v7529_v48  ;;  %v3472_v48 = vadd.f32 %v8991_v52, %v8990_v3 }
 0x8b0   :  { %4505 = vmatprep.mubr.bf16.mxu1 %v7530_v57 }
 0x8b7   :  { %4506 = vmatmul.mubr.bf16.gmra.mxu1 %v7531_v17 }
 0x8b8   :  { %4513 = vmatprep.mubr.bf16.mxu1 %v7532_v29  ;;  %v3999_v29 = vadd.f32 %v8588_v11, %v3472_v48  ;;  %v7552_v11 = vld [vmem:[#allocation2 + $0x3c4] ss:$8 sps:$4 sm:$0xff]  }
 0x8bf   :  { %4514 = vmatmul.mubr.bf16.gmra.mxu1 %v7533_v2 }
 0x8c0   :  { %4521 = vmatprep.mubr.bf16.mxu1 %v7534_v59  ;;  %v7415_v59 = vld [vmem:[#allocation8 + $0x100] sm:$0xff]  }
 0x8c1   :  { %7085 = vmatprep.subr.bf16.mxu0 %v7415_v59 }
 0x8c2   :  { %7086 = vmatpush3.bf16.msra.mxu0 %v7415_v59 }
 0x8c7   :  { %4522 = vmatmul.mubr.bf16.gmra.mxu1 %v7535_v18 }
 0x8c8   :  { %4529 = vmatprep.mubr.bf16.mxu1 %v7536_v10  ;;  %v7549_v10 = vld [vmem:[#allocation2 + $0x3a0] ss:$8 sps:$4 sm:$0xff]  }
 0x8cf   :  { %4530 = vmatmul.mubr.bf16.gmra.mxu1 %v7537_v55  ;;  %v7550_v55 = vld [vmem:[#allocation2 + $0x3b4] ss:$8 sps:$4 sm:$0xff]  }
 0x8d0   :  { %4537 = vmatprep.mubr.bf16.mxu1 %v7538_v31  ;;  %v7551_v31 = vld [vmem:[#allocation2 + $0x3b0] ss:$8 sps:$4 sm:$0xff]  }
 0x8d7   :  { %4538 = vmatmul.mubr.bf16.gmra.mxu1 %v7539_v22 }
 0x8d8   :  { %4545 = vmatprep.mubr.bf16.mxu1 %v7540_v6  ;;  %v8992_v6 = vld [vmem:[#allocation32_spill] sm:$0xff] }
 0x8d9   :  { %v3488_v23 = vadd.f32 %v8993_v26, %v8992_v6 }
 0x8df   :  { %4546 = vmatmul.mubr.bf16.gmra.mxu1 %v7541_v60 }
 0x8e0   :  { %4553 = vmatprep.mubr.bf16.mxu1 %v7542_v51 }
 0x8e7   :  { %4554 = vmatmul.mubr.bf16.gmra.mxu1 %v7543_v32  ;;  %v4003_v32 = vadd.f32 %v8602_v37, %v3488_v23  ;;  %v8994_v37 = vld [vmem:[#allocation25_spill] sm:$0xff] }
 0x8e8   :  { %4561 = vmatprep.mubr.bf16.mxu1 %v7544_v35 }
 0x8ef   :  { %4562 = vmatmul.mubr.bf16.gmra.mxu1 %v7545_v50  ;;  %v7554_v50 = vld [vmem:[#allocation2 + $0x3d4] ss:$8 sps:$4 sm:$0xff]  }
 0x8f0   :  { %4569 = vmatprep.mubr.bf16.mxu1 %v7546_v40 }
 0x8f7   :  { %v7041_v24 = vpop.f32.mrf.mxu1  ;;  %4570 = vmatmul.mubr.bf16.gmra.mxu1 %v7547_v53  ;;  %v8995_v53 = vld [vmem:[#allocation35_spill] sm:$0xff] }
 0x8f8   :  { %v8705_v43 = vadd.f32 %v7041_v24, %v8580_v19  ;;  %4577 = vmatprep.mubr.bf16.mxu1 %v7548_v42 }
 0x8f9   :  { %v4306_v21 = vpop.f32.mrf.mxu1 }
 0x8fa   :  { %v8710_v57 = vadd.f32 %v4306_v21, %v8584_v13 }
 0x8fb   :  { %v7042_v17 = vpop.f32.mrf.mxu1 }
 0x8fc   :  { %v8714_v2 = vadd.f32 %v7042_v17, %v8586_v0  ;;  %v7558_v17 = vld [vmem:[#allocation2 + $0x3f4] ss:$8 sps:$4 sm:$0xff]  }
 0x8fd   :  { %v4309_v19 = vpop.f32.mrf.mxu1 }
 0x8fe   :  { %v8716_v18 = vadd.f32 %v4309_v19, %v3999_v29  ;;  %v7559_v19 = vld [vmem:[#allocation2 + $0x3f0] ss:$8 sps:$4 sm:$0xff]  }
 0x8ff   :  { %4578 = vmatmul.mubr.bf16.gmra.mxu1 %v7549_v10  ;;  %v8996_v10 = vld [vmem:[#allocation33_spill] sm:$0xff] }
 0x900   :  { %4585 = vmatprep.mubr.bf16.mxu1 %v7550_v55  ;;  %v8997_v55 = vld [vmem:[#allocation26_spill] sm:$0xff] }
 0x907   :  { %v7045_v13 = vpop.f32.mrf.mxu1  ;;  %4586 = vmatmul.mubr.bf16.gmra.mxu1 %v7551_v31 }
 0x908   :  { %v8719_v22 = vadd.f32 %v7045_v13, %v8594_v34  ;;  %4593 = vmatprep.mubr.bf16.mxu1 %v7552_v11  ;;  %v7553_v34 = vld [vmem:[#allocation2 + $0x3c0] ss:$8 sps:$4 sm:$0xff]  }
 0x909   :  { %v4322_v0 = vpop.f32.mrf.mxu1 }
 0x90a   :  { %v8724_v60 = vadd.f32 %v4322_v0, %v8598_v33  ;;  %v7556_v33 = vld [vmem:[#allocation2 + $0x3e4] ss:$8 sps:$4 sm:$0xff]  }
 0x90b   :  { %v7046_v51 = vpop.f32.mrf.mxu1 }
 0x90c   :  { %v8728_v35 = vadd.f32 %v7046_v51, %v8600_v1  ;;  %v3504_v1 = vadd.f32 %v8995_v53, %v8994_v37  ;;  %v8998_v51 = vld [vmem:[#allocation28_spill] sm:$0xff]  ;;  %v9001_v37 = vld [vmem:[#allocation37_spill] sm:$0xff] }
 0x90d   :  { %v4325_v28 = vpop.f32.mrf.mxu1 }
 0x90e   :  { %v8730_v12 = vadd.f32 %v4325_v28, %v4003_v32  ;;  %v4007_v45 = vadd.f32 %v8616_v36, %v3504_v1  ;;  %v3520_v36 = vadd.f32 %v8997_v55, %v8996_v10  ;;  %v8999_v32 = vld [vmem:[#allocation34_spill] sm:$0xff] }
 0x90f   :  { %4594 = vmatmul.mubr.bf16.gmra.mxu1 %v7553_v34  ;;  %v3536_v28 = vadd.f32 %v8999_v32, %v8998_v51 }
 0x910   :  { %4601 = vmatprep.mubr.bf16.mxu1 %v7554_v50  ;;  %v4011_v31 = vadd.f32 %v8630_v41, %v3520_v36 }
 0x911   :  { %v4015_v41 = vadd.f32 %v8644_v25, %v3536_v28 }
 0x917   :  { %v7049_v40 = vpop.f32.mrf.mxu1  ;;  %4602 = vmatmul.mubr.bf16.gmra.mxu1 %v7555_v47 }
 0x918   :  { %v8733_v16 = vadd.f32 %v7049_v40, %v8608_v38  ;;  %4609 = vmatprep.mubr.bf16.mxu1 %v7556_v33  ;;  %v7557_v38 = vld [vmem:[#allocation2 + $0x3e0] ss:$8 sps:$4 sm:$0xff]  }
 0x919   :  { %v4338_v24 = vpop.f32.mrf.mxu1 }
 0x91a   :  { %v8738_v42 = vadd.f32 %v4338_v24, %v8612_v58  ;;  %v9000_v24 = vld [vmem:[#allocation36_spill] sm:$0xff] }
 0x91b   :  { %v7050_v21 = vpop.f32.mrf.mxu1  ;;  %v3552_v53 = vadd.f32 %v9001_v37, %v9000_v24 }
 0x91c   :  { %v8742_v3 = vadd.f32 %v7050_v21, %v8614_v5 }
 0x91d   :  { %v4341_v52 = vpop.f32.mrf.mxu1  ;;  %v4019_v25 = vadd.f32 %v8658_v49, %v3552_v53 }
 0x91e   :  { %v8744_v48 = vadd.f32 %v4341_v52, %v4007_v45 }
 0x91f   :  { %4610 = vmatmul.mubr.bf16.gmra.mxu1 %v7557_v38 }
 0x920   :  { %4617 = vmatprep.mubr.bf16.mxu1 %v7558_v17 }
 0x927   :  { %v7053_v29 = vpop.f32.mrf.mxu1  ;;  %4618 = vmatmul.mubr.bf16.gmra.mxu1 %v7559_v19 }
 0x928   :  { %v8747_v59 = vadd.f32 %v7053_v29, %v8622_v15 }
 0x929   :  { %v4354_v58 = vpop.f32.mrf.mxu1 }
 0x92a   :  { %v8752_v5 = vadd.f32 %v4354_v58, %v8626_v54 }
 0x92b   :  { %v7054_v13 = vpop.f32.mrf.mxu1 }
 0x92c   :  { %v8756_v11 = vadd.f32 %v7054_v13, %v8628_v46 }
 0x92d   :  { %v4357_v0 = vpop.f32.mrf.mxu1 }
 0x92e   :  { %v8758_v6 = vadd.f32 %v4357_v0, %v4011_v31 }
 0x937   :  { %v7057_v26 = vpop.f32.mrf.mxu1 }
 0x938   :  { %v8761_v15 = vadd.f32 %v7057_v26, %v8636_v61 }
 0x939   :  { %v4370_v23 = vpop.f32.mrf.mxu1 }
 0x93a   :  { %v8766_v54 = vadd.f32 %v4370_v23, %v8640_v62 }
 0x93b   :  { %v7058_v34 = vpop.f32.mrf.mxu1 }
 0x93c   :  { %v8770_v46 = vadd.f32 %v7058_v34, %v8642_v8 }
 0x93d   :  { %v4373_v50 = vpop.f32.mrf.mxu1 }
 0x93e   :  { %v8772_v40 = vadd.f32 %v4373_v50, %v4015_v41 }
 0x947   :  { %v7061_v47 = vpop.f32.mrf.mxu1 }
 0x948   :  { %v8775_v61 = vadd.f32 %v7061_v47, %v8650_v63 }
 0x949   :  { %v4386_v33 = vpop.f32.mrf.mxu1 }
 0x94a   :  { %v8780_v62 = vadd.f32 %v4386_v33, %v8654_v39 }
 0x94b   :  { %v7062_v1 = vpop.f32.mrf.mxu1 }
 0x94c   :  { %v8784_v8 = vadd.f32 %v7062_v1, %v8656_v20 }
 0x94d   :  { %v4389_v21 = vpop.f32.mrf.mxu1 }
 0x94e   :  { %v8786_v45 = vadd.f32 %v4389_v21, %v4019_v25 }
 0x957   :  { %v7065_v52 = vpop.f32.mrf.mxu1 }
 0x958   :  { %v8789_v63 = vadd.f32 %v7065_v52, %v8664_v9 }
 0x959   :  { %v4402_v38 = vpop.f32.mrf.mxu1 }
 0x95a   :  { %v8792_v17 = vadd.f32 %v4402_v38, %v8668_v30 }
 0x95b   :  { %v7066_v29 = vpop.f32.mrf.mxu1 }
 0x95c   :  { %v8795_v39 = vadd.f32 %v7066_v29, %v8672_v27 }
 0x95d   :  { %v4405_v19 = vpop.f32.mrf.mxu1 }
 0x95e   :  { %v8798_v49 = vadd.f32 %v4405_v19, %v8674_v7 }
 0x967   :  { %v7069_v20 = vpop.f32.mrf.mxu1 }
 0x968   :  { %v8801_v58 = vadd.f32 %v7069_v20, %v8677_v4 }
 0x969   :  { %v4418_v10 = vpop.f32.mrf.mxu1 }
 0x96a   :  { %v8804_v9 = vadd.f32 %v4418_v10, %v8680_v56 }
 0x96b   :  { %v7070_v55 = vpop.f32.mrf.mxu1 }
 0x96c   :  { %v8807_v30 = vadd.f32 %v7070_v55, %v8685_v14 }
 0x96d   :  { %v4421_v36 = vpop.f32.mrf.mxu1 }
 0x96e   :  { %v8810_v27 = vadd.f32 %v4421_v36, %v8687_v44 }
 0x96f   :  { %v6519_v13 = vpop.f32.mrf.mxu1 }
 0x971   :  { %v6520_v31 = vpop.f32.mrf.mxu1 }
 0x972   :  { %v6521_v26 = vadd.f32 %v6520_v31, %v6519_v13 }
 0x973   :  { %v6522_v7 = vpop.f32.mrf.mxu1 }
 0x975   :  { %v6523_v0 = vpop.f32.mrf.mxu1 }
 0x976   :  { %v6524_v23 = vadd.f32 %v6523_v0, %v6522_v7 }
 0x977   :  { %v6525_v4 = vpop.f32.mrf.mxu1 }
 0x978   :  { %v4626_v51 = vpack.c.bf16 %v6524_v23, %v6521_v26 }
 0x979   :  { %v6526_v32 = vpop.f32.mrf.mxu1 }
 0x97a   :  { %7087 = vmatprep.mubr.bf16.mxu0 %v4626_v51  ;;  %v6527_v34 = vadd.f32 %v6526_v32, %v6525_v4 }
 0x97b   :  { %v6528_v56 = vpop.f32.mrf.mxu1 }
 0x97d   :  { %v6529_v28 = vpop.f32.mrf.mxu1 }
 0x97e   :  { %v6530_v41 = vadd.f32 %v6529_v28, %v6528_v56 }
 0x97f   :  { %v6531_v14 = vpop.f32.mrf.mxu1 }
 0x980   :  { %v4627_v50 = vpack.c.bf16 %v6530_v41, %v6527_v34 }
 0x981   :  { %v6532_v47 = vpop.f32.mrf.mxu1 }
 0x982   :  { %7088 = vmatmul.mubr.bf16.vlgmr.msra.gmra.mxu0 %v4627_v50  ;;  %v6533_v24 = vadd.f32 %v6532_v47, %v6531_v14 }
 0x983   :  { %v6534_v44 = vpop.f32.mrf.mxu1 }
 0x985   :  { %v6535_v33 = vpop.f32.mrf.mxu1 }
 0x986   :  { %v6536_v37 = vadd.f32 %v6535_v33, %v6534_v44 }
 0x987   :  { %v6537_v53 = vpop.f32.mrf.mxu1 }
 0x988   :  { %v4628_v1 = vpack.c.bf16 %v6536_v37, %v6533_v24 }
 0x989   :  { %v6538_v25 = vpop.f32.mrf.mxu1 }
 0x98a   :  { %7091 = vmatprep.mubr.bf16.mxu0 %v4628_v1  ;;  %v6539_v38 = vadd.f32 %v6538_v25, %v6537_v53 }
 0x98b   :  { %v6540_v21 = vpop.f32.mrf.mxu1 }
 0x98d   :  { %v6541_v52 = vpop.f32.mrf.mxu1 }
 0x98e   :  { %v6542_v29 = vadd.f32 %v6541_v52, %v6540_v21 }
 0x98f   :  { %v6543_v19 = vpop.f32.mrf.mxu1 }
 0x990   :  { %v4629_v20 = vpack.c.bf16 %v6542_v29, %v6539_v38 }
 0x991   :  { %v6544_v10 = vpop.f32.mrf.mxu1 }
 0x992   :  { %7092 = vmatmul.mubr.bf16.gmra.mxu0 %v4629_v20  ;;  %v6545_v13 = vadd.f32 %v6544_v10, %v6543_v19 }
 0x993   :  { %v6546_v55 = vpop.f32.mrf.mxu1 }
 0x995   :  { %v6547_v36 = vpop.f32.mrf.mxu1 }
 0x996   :  { %v6548_v31 = vadd.f32 %v6547_v36, %v6546_v55 }
 0x997   :  { %v6549_v7 = vpop.f32.mrf.mxu1 }
 0x998   :  { %v4630_v0 = vpack.c.bf16 %v6548_v31, %v6545_v13 }
 0x999   :  { %v6550_v26 = vpop.f32.mrf.mxu1 }
 0x99a   :  { %7095 = vmatprep.mubr.bf16.mxu0 %v4630_v0  ;;  %v6551_v51 = vadd.f32 %v6550_v26, %v6549_v7 }
 0x99b   :  { %v6552_v23 = vpop.f32.mrf.mxu1 }
 0x99d   :  { %v6553_v4 = vpop.f32.mrf.mxu1 }
 0x99e   :  { %v6554_v32 = vadd.f32 %v6553_v4, %v6552_v23 }
 0x99f   :  { %v6555_v56 = vpop.f32.mrf.mxu1 }
 0x9a0   :  { %v4631_v28 = vpack.c.bf16 %v6554_v32, %v6551_v51 }
 0x9a1   :  { %v6556_v34 = vpop.f32.mrf.mxu1 }
 0x9a2   :  { %7096 = vmatmul.mubr.bf16.gmra.mxu0 %v4631_v28  ;;  %v6557_v50 = vadd.f32 %v6556_v34, %v6555_v56 }
 0x9a3   :  { %v6558_v41 = vpop.f32.mrf.mxu1 }
 0x9a5   :  { %v6559_v14 = vpop.f32.mrf.mxu1 }
 0x9a6   :  { %v6560_v47 = vadd.f32 %v6559_v14, %v6558_v41 }
 0x9a7   :  { %v6561_v44 = vpop.f32.mrf.mxu1 }
 0x9a8   :  { %v4632_v33 = vpack.c.bf16 %v6560_v47, %v6557_v50 }
 0x9a9   :  { %v6562_v24 = vpop.f32.mrf.mxu1 }
 0x9aa   :  { %7099 = vmatprep.mubr.bf16.mxu0 %v4632_v33  ;;  %v6563_v1 = vadd.f32 %v6562_v24, %v6561_v44 }
 0x9ab   :  { %v6564_v37 = vpop.f32.mrf.mxu1 }
 0x9ad   :  { %v6565_v53 = vpop.f32.mrf.mxu1 }
 0x9ae   :  { %v6566_v25 = vadd.f32 %v6565_v53, %v6564_v37 }
 0x9af   :  { %v6567_v21 = vpop.f32.mrf.mxu1 }
 0x9b0   :  { %v4633_v52 = vpack.c.bf16 %v6566_v25, %v6563_v1 }
 0x9b1   :  { %v6568_v38 = vpop.f32.mrf.mxu1 }
 0x9b2   :  { %7100 = vmatmul.mubr.bf16.gmra.mxu0 %v4633_v52  ;;  %v6569_v20 = vadd.f32 %v6568_v38, %v6567_v21 }
 0x9b3   :  { %v6570_v29 = vpop.f32.mrf.mxu1 }
 0x9b5   :  { %v6571_v19 = vpop.f32.mrf.mxu1 }
 0x9b6   :  { %v6572_v10 = vadd.f32 %v6571_v19, %v6570_v29 }
 0x9b7   :  { %v6573_v55 = vpop.f32.mrf.mxu1 }
 0x9b8   :  { %v4634_v36 = vpack.c.bf16 %v6572_v10, %v6569_v20 }
 0x9b9   :  { %v6574_v13 = vpop.f32.mrf.mxu1 }
 0x9ba   :  { %7103 = vmatprep.mubr.bf16.mxu0 %v4634_v36  ;;  %v6575_v0 = vadd.f32 %v6574_v13, %v6573_v55 }
 0x9bb   :  { %v6576_v31 = vpop.f32.mrf.mxu1 }
 0x9bd   :  { %v6577_v7 = vpop.f32.mrf.mxu1 }
 0x9be   :  { %v6578_v26 = vadd.f32 %v6577_v7, %v6576_v31 }
 0x9bf   :  { %v6579_v23 = vpop.f32.mrf.mxu1 }
 0x9c0   :  { %v4635_v4 = vpack.c.bf16 %v6578_v26, %v6575_v0 }
 0x9c1   :  { %v6580_v51 = vpop.f32.mrf.mxu1 }
 0x9c2   :  { %7104 = vmatmul.mubr.bf16.gmra.mxu0 %v4635_v4  ;;  %v6581_v28 = vadd.f32 %v6580_v51, %v6579_v23 }
 0x9c3   :  { %v6582_v32 = vpop.f32.mrf.mxu1 }
 0x9c5   :  { %v6583_v56 = vpop.f32.mrf.mxu1 }
 0x9c6   :  { %v6584_v34 = vadd.f32 %v6583_v56, %v6582_v32 }
 0x9c7   :  { %v6585_v41 = vpop.f32.mrf.mxu1 }
 0x9c8   :  { %v4636_v14 = vpack.c.bf16 %v6584_v34, %v6581_v28 }
 0x9c9   :  { %v6586_v50 = vpop.f32.mrf.mxu1 }
 0x9ca   :  { %7107 = vmatprep.mubr.bf16.mxu0 %v4636_v14  ;;  %v6587_v33 = vadd.f32 %v6586_v50, %v6585_v41 }
 0x9cb   :  { %v6588_v47 = vpop.f32.mrf.mxu1 }
 0x9cd   :  { %v6589_v44 = vpop.f32.mrf.mxu1 }
 0x9ce   :  { %v6590_v24 = vadd.f32 %v6589_v44, %v6588_v47 }
 0x9cf   :  { %v6591_v37 = vpop.f32.mrf.mxu1 }
 0x9d0   :  { %v4637_v53 = vpack.c.bf16 %v6590_v24, %v6587_v33 }
 0x9d1   :  { %v6592_v1 = vpop.f32.mrf.mxu1 }
 0x9d2   :  { %7108 = vmatmul.mubr.bf16.gmra.mxu0 %v4637_v53  ;;  %v6593_v52 = vadd.f32 %v6592_v1, %v6591_v37  ;;  %v8816_v37 = vld [vmem:[%s8892_s5] ss:$0 sm:$0xff]  ;;  %s7676_s5 = smov [#allocation10]  }
 0x9d3   :  { %v6594_v25 = vpop.f32.mrf.mxu1  ;;  %s5104_s20 = sshll.u32 %s7676_s5, 4  ;;  %s5105_s20 = int_to_ptr.vmem [resolvable:$true] %s5104_s20 }
 0x9d4   :  { %s7640_s21 = scalar_lea.vmem %s5105_s20, 2048  ;;  %p7645_p7 = scmp.lt.s32.totalorder %s5105_s20, %s5105_s20 }
 0x9d5   :  { %v6595_v21 = vpop.f32.mrf.mxu1  ;;  %p7641_p6 = scmp.ne.s32.totalorder %s5105_s20, %s7640_s21  ;;  %p7646_p8 = scmp.lt.s32.totalorder %s7640_s21, %s7640_s21 }
 0x9d6   :  { %v6596_v38 = vadd.f32 %v6595_v21, %v6594_v25 }
 0x9d7   :  { %v6597_v29 = vpop.f32.mrf.mxu1  ;;  %p7647_p9 = por %p7646_p8, %p7645_p7 }
 0x9d8   :  { %v4638_v19 = vpack.c.bf16 %v6596_v38, %v6593_v52 }
 0x9d9   :  { %v6598_v20 = vpop.f32.mrf.mxu1  ;;  %p7648_p10 = pnand %p7647_p9, %p7641_p6 }
 0x9da   :  { %7111 = vmatprep.mubr.bf16.mxu0 %v4638_v19  ;;  %v6599_v36 = vadd.f32 %v6598_v20, %v6597_v29 }
 0x9db   :  { %v6600_v10 = vpop.f32.mrf.mxu1 }
 0x9dd   :  { %v6601_v55 = vpop.f32.mrf.mxu1 }
 0x9de   :  { %v6602_v13 = vadd.f32 %v6601_v55, %v6600_v10 }
 0x9df   :  { %v6603_v31 = vpop.f32.mrf.mxu1 }
 0x9e0   :  { %v4639_v7 = vpack.c.bf16 %v6602_v13, %v6599_v36 }
 0x9e1   :  { %v6604_v0 = vpop.f32.mrf.mxu1 }
 0x9e2   :  { %7112 = vmatmul.mubr.bf16.gmra.mxu0 %v4639_v7  ;;  %v6605_v4 = vadd.f32 %v6604_v0, %v6603_v31 }
 0x9e3   :  { %v6606_v26 = vpop.f32.mrf.mxu1 }
 0x9e5   :  { %v6607_v23 = vpop.f32.mrf.mxu1 }
 0x9e6   :  { %v6608_v51 = vadd.f32 %v6607_v23, %v6606_v26 }
 0x9e7   :  { %v6609_v32 = vpop.f32.mrf.mxu1 }
 0x9e8   :  { %v4640_v56 = vpack.c.bf16 %v6608_v51, %v6605_v4 }
 0x9e9   :  { %v6610_v28 = vpop.f32.mrf.mxu1 }
 0x9ea   :  { %7115 = vmatprep.mubr.bf16.mxu0 %v4640_v56  ;;  %v6611_v14 = vadd.f32 %v6610_v28, %v6609_v32 }
 0x9eb   :  { %v6612_v34 = vpop.f32.mrf.mxu1 }
 0x9ed   :  { %v6613_v41 = vpop.f32.mrf.mxu1 }
 0x9ee   :  { %v6614_v50 = vadd.f32 %v6613_v41, %v6612_v34 }
 0x9f0   :  { %v4641_v47 = vpack.c.bf16 %v6614_v50, %v6611_v14 }
 0x9f2   :  { %7116 = vmatmul.mubr.bf16.gmra.mxu0 %v4641_v47 }
 0xa42   :  { %v7089_v44 = vpop.f32.mrf.mxu0 }
 0xa43   :  { %v4870_v24 = vadd.f32 %v7089_v44, %v8705_v43 }
 0xa44   :  { %v4741_v33 = vpop.f32.mrf.mxu0 }
 0xa45   :  { %v4868_v1 = vadd.f32 %v4741_v33, %v8710_v57  ;;  %v4909_v52 = vadd.f32 %v8816_v37, %v4870_v24 }
 0xa46   :  { %v7090_v53 = vpop.f32.mrf.mxu0 }
 0xa47   :  { %v4871_v25 = vadd.f32 %v7090_v53, %v8714_v2  ;;  %v4907_v19 = vadd.f32 %v8816_v37, %v4868_v1 }
 0xa48   :  { %v4744_v21 = vpop.f32.mrf.mxu0 }
 0xa49   :  { %v4910_v38 = vadd.f32 %v8816_v37, %v4871_v25  ;;  %v4869_v29 = vadd.f32 %v4744_v21, %v8716_v18 }
 0xa4b   :  { %v5416_v43 = vpack.c.bf16 %v4910_v38, %v4909_v52  ;;  %v4908_v20 = vadd.f32 %v8816_v37, %v4869_v29 }
 0xa4d   :  { %5488 = vst [vmem:[#allocation10 + $0x8] sm:$0xff] %v5416_v43   ;;  %v5411_v10 = vpack.c.bf16 %v4908_v20, %v4907_v19 }
 0xa4f   :  { %5412 = vst [vmem:[#allocation10] sm:$0xff] %v5411_v10  }
 0xa52   :  { %v7093_v55 = vpop.f32.mrf.mxu0 }
 0xa53   :  { %v4874_v57 = vadd.f32 %v7093_v55, %v8719_v22 }
 0xa54   :  { %v4757_v36 = vpop.f32.mrf.mxu0 }
 0xa55   :  { %v4872_v13 = vadd.f32 %v4757_v36, %v8724_v60  ;;  %v4913_v18 = vadd.f32 %v8816_v37, %v4874_v57 }
 0xa56   :  { %v7094_v2 = vpop.f32.mrf.mxu0 }
 0xa57   :  { %v4875_v31 = vadd.f32 %v7094_v2, %v8728_v35  ;;  %v4911_v23 = vadd.f32 %v8816_v37, %v4872_v13 }
 0xa58   :  { %v4760_v7 = vpop.f32.mrf.mxu0 }
 0xa59   :  { %v4914_v0 = vadd.f32 %v8816_v37, %v4875_v31  ;;  %v4873_v26 = vadd.f32 %v4760_v7, %v8730_v12 }
 0xa5b   :  { %v5426_v4 = vpack.c.bf16 %v4914_v0, %v4913_v18  ;;  %v4912_v51 = vadd.f32 %v8816_v37, %v4873_v26 }
 0xa5d   :  { %5490 = vst [vmem:[#allocation10 + $0x18] sm:$0xff] %v5426_v4   ;;  %v5421_v32 = vpack.c.bf16 %v4912_v51, %v4911_v23 }
 0xa5f   :  { %5489 = vst [vmem:[#allocation10 + $0x10] sm:$0xff] %v5421_v32  }
 0xa62   :  { %v7097_v22 = vpop.f32.mrf.mxu0 }
 0xa63   :  { %v4878_v60 = vadd.f32 %v7097_v22, %v8733_v16 }
 0xa64   :  { %v4773_v56 = vpop.f32.mrf.mxu0 }
 0xa65   :  { %v4876_v28 = vadd.f32 %v4773_v56, %v8738_v42  ;;  %v4917_v12 = vadd.f32 %v8816_v37, %v4878_v60 }
 0xa66   :  { %v7098_v35 = vpop.f32.mrf.mxu0 }
 0xa67   :  { %v4879_v34 = vadd.f32 %v7098_v35, %v8742_v3  ;;  %v4915_v47 = vadd.f32 %v8816_v37, %v4876_v28 }
 0xa68   :  { %v4776_v41 = vpop.f32.mrf.mxu0 }
 0xa69   :  { %v4918_v14 = vadd.f32 %v8816_v37, %v4879_v34  ;;  %v4877_v50 = vadd.f32 %v4776_v41, %v8744_v48 }
 0xa6b   :  { %v5436_v44 = vpack.c.bf16 %v4918_v14, %v4917_v12  ;;  %v4916_v33 = vadd.f32 %v8816_v37, %v4877_v50 }
 0xa6d   :  { %5492 = vst [vmem:[#allocation10 + $0x28] sm:$0xff] %v5436_v44   ;;  %v5431_v24 = vpack.c.bf16 %v4916_v33, %v4915_v47 }
 0xa6f   :  { %5491 = vst [vmem:[#allocation10 + $0x20] sm:$0xff] %v5431_v24  }
 0xa72   :  { %v7101_v16 = vpop.f32.mrf.mxu0 }
 0xa73   :  { %v4882_v42 = vadd.f32 %v7101_v16, %v8747_v59 }
 0xa74   :  { %v4789_v53 = vpop.f32.mrf.mxu0 }
 0xa75   :  { %v4880_v1 = vadd.f32 %v4789_v53, %v8752_v5  ;;  %v4921_v48 = vadd.f32 %v8816_v37, %v4882_v42 }
 0xa76   :  { %v7102_v3 = vpop.f32.mrf.mxu0 }
 0xa77   :  { %v4883_v25 = vadd.f32 %v7102_v3, %v8756_v11  ;;  %v4919_v29 = vadd.f32 %v8816_v37, %v4880_v1 }
 0xa78   :  { %v4792_v21 = vpop.f32.mrf.mxu0 }
 0xa79   :  { %v4922_v52 = vadd.f32 %v8816_v37, %v4883_v25  ;;  %v4881_v38 = vadd.f32 %v4792_v21, %v8758_v6 }
 0xa7b   :  { %v5446_v19 = vpack.c.bf16 %v4922_v52, %v4921_v48  ;;  %v4920_v43 = vadd.f32 %v8816_v37, %v4881_v38 }
 0xa7d   :  { %5494 = vst [vmem:[#allocation10 + $0x38] sm:$0xff] %v5446_v19   ;;  %v5441_v20 = vpack.c.bf16 %v4920_v43, %v4919_v29 }
 0xa7f   :  { %5493 = vst [vmem:[#allocation10 + $0x30] sm:$0xff] %v5441_v20  }
 0xa82   :  { %v7105_v59 = vpop.f32.mrf.mxu0 }
 0xa83   :  { %v4886_v5 = vadd.f32 %v7105_v59, %v8761_v15 }
 0xa84   :  { %v4805_v10 = vpop.f32.mrf.mxu0 }
 0xa85   :  { %v4884_v55 = vadd.f32 %v4805_v10, %v8766_v54  ;;  %v4925_v6 = vadd.f32 %v8816_v37, %v4886_v5 }
 0xa86   :  { %v7106_v11 = vpop.f32.mrf.mxu0 }
 0xa87   :  { %v4887_v36 = vadd.f32 %v7106_v11, %v8770_v46  ;;  %v4923_v31 = vadd.f32 %v8816_v37, %v4884_v55 }
 0xa88   :  { %v4808_v57 = vpop.f32.mrf.mxu0 }
 0xa89   :  { %v4926_v2 = vadd.f32 %v8816_v37, %v4887_v36  ;;  %v4885_v13 = vadd.f32 %v4808_v57, %v8772_v40 }
 0xa8b   :  { %v5456_v7 = vpack.c.bf16 %v4926_v2, %v4925_v6  ;;  %v4924_v18 = vadd.f32 %v8816_v37, %v4885_v13 }
 0xa8d   :  { %5496 = vst [vmem:[#allocation10 + $0x48] sm:$0xff] %v5456_v7   ;;  %v5451_v0 = vpack.c.bf16 %v4924_v18, %v4923_v31 }
 0xa8f   :  { %5495 = vst [vmem:[#allocation10 + $0x40] sm:$0xff] %v5451_v0  }
 0xa92   :  { %v7109_v15 = vpop.f32.mrf.mxu0 }
 0xa93   :  { %v4890_v54 = vadd.f32 %v7109_v15, %v8775_v61 }
 0xa94   :  { %v4821_v26 = vpop.f32.mrf.mxu0 }
 0xa95   :  { %v4888_v23 = vadd.f32 %v4821_v26, %v8780_v62  ;;  %v4929_v40 = vadd.f32 %v8816_v37, %v4890_v54 }
 0xa96   :  { %v7110_v46 = vpop.f32.mrf.mxu0 }
 0xa97   :  { %v4891_v4 = vadd.f32 %v7110_v46, %v8784_v8  ;;  %v4927_v56 = vadd.f32 %v8816_v37, %v4888_v23 }
 0xa98   :  { %v4824_v51 = vpop.f32.mrf.mxu0 }
 0xa99   :  { %v4930_v32 = vadd.f32 %v8816_v37, %v4891_v4  ;;  %v4889_v22 = vadd.f32 %v4824_v51, %v8786_v45 }
 0xa9b   :  { %v5466_v60 = vpack.c.bf16 %v4930_v32, %v4929_v40  ;;  %v4928_v35 = vadd.f32 %v8816_v37, %v4889_v22 }
 0xa9d   :  { %5498 = vst [vmem:[#allocation10 + $0x58] sm:$0xff] %v5466_v60   ;;  %v5461_v28 = vpack.c.bf16 %v4928_v35, %v4927_v56 }
 0xa9f   :  { %5497 = vst [vmem:[#allocation10 + $0x50] sm:$0xff] %v5461_v28  }
 0xaa2   :  { %v7113_v61 = vpop.f32.mrf.mxu0 }
 0xaa3   :  { %v4894_v62 = vadd.f32 %v7113_v61, %v8789_v63 }
 0xaa4   :  { %v4837_v34 = vpop.f32.mrf.mxu0 }
 0xaa5   :  { %v4892_v41 = vadd.f32 %v4837_v34, %v8792_v17  ;;  %v4933_v45 = vadd.f32 %v8816_v37, %v4894_v62 }
 0xaa6   :  { %v7114_v8 = vpop.f32.mrf.mxu0 }
 0xaa7   :  { %v4895_v12 = vadd.f32 %v7114_v8, %v8795_v39  ;;  %v4931_v44 = vadd.f32 %v8816_v37, %v4892_v41 }
 0xaa8   :  { %v4840_v14 = vpop.f32.mrf.mxu0 }
 0xaa9   :  { %v4934_v50 = vadd.f32 %v8816_v37, %v4895_v12  ;;  %v4893_v47 = vadd.f32 %v4840_v14, %v8798_v49 }
 0xaab   :  { %v5476_v33 = vpack.c.bf16 %v4934_v50, %v4933_v45  ;;  %v4932_v24 = vadd.f32 %v8816_v37, %v4893_v47 }
 0xaad   :  { %5500 = vst [vmem:[#allocation10 + $0x68] sm:$0xff] %v5476_v33   ;;  %v5471_v16 = vpack.c.bf16 %v4932_v24, %v4931_v44 }
 0xaaf   :  { %5499 = vst [vmem:[#allocation10 + $0x60] sm:$0xff] %v5471_v16  }
 0xab2   :  { %v7117_v63 = vpop.f32.mrf.mxu0 }
 0xab3   :  { %v4898_v17 = vadd.f32 %v7117_v63, %v8801_v58 }
 0xab4   :  { %v4853_v53 = vpop.f32.mrf.mxu0 }
 0xab5   :  { %v4896_v42 = vadd.f32 %v4853_v53, %v8804_v9  ;;  %v4937_v49 = vadd.f32 %v8816_v37, %v4898_v17 }
 0xab6   :  { %v7118_v39 = vpop.f32.mrf.mxu0 }
 0xab7   :  { %v4899_v3 = vadd.f32 %v7118_v39, %v8807_v30  ;;  %v4935_v48 = vadd.f32 %v8816_v37, %v4896_v42 }
 0xab8   :  { %v4856_v1 = vpop.f32.mrf.mxu0 }
 0xab9   :  { %v4938_v25 = vadd.f32 %v8816_v37, %v4899_v3  ;;  %v4897_v21 = vadd.f32 %v4856_v1, %v8810_v27 }
 0xabb   :  { %v5486_v52 = vpack.c.bf16 %v4938_v25, %v4937_v49  ;;  %v4936_v38 = vadd.f32 %v8816_v37, %v4897_v21 }
 0xabd   :  { %5502 = vst [vmem:[#allocation10 + $0x78] sm:$0xff] %v5486_v52   ;;  %v5481_v58 = vpack.c.bf16 %v4936_v38, %v4935_v48 }
 0xabf   :  { %5501 = vst [vmem:[#allocation10 + $0x70] sm:$0xff] %v5481_v58  }
 0xac0   :  { %7651 = shalt.err (!%p7648_p10)
}
 0xac1   :  { %5110 = dma.vmem_to_hbm [thread:$0]  %s5105_s20, 2048, %s8893_s6, [#allocation4], %s7669_s24, %s7669_s24, %s7670_s25  }
 0xac2   :  { %7666 = dma.done.wait [#allocation4], 2048  }
 0xac3   :  { %7667 = vsyncadd [#allocation4], 4294965248 }
 0xac4   :  { %5114 = vsyncpa [#allocation3], 1 }
 0xac5   :  { %5115 = vsyncpa [#allocation6], 1 }
 0xac6   :  { %5116 = vsyncpa [#allocation9], 1 }
 0xac7   :  { %5117 = vsyncpa [#allocation4], 1 }

</bundles_post_ra>
